<compile_context>
chip_gen: v5e
topology: v5e:2x2
jax: 0.10.0
libtpu: 0.0.40
codegen_flags: <defaults>
</compile_context>

<pallas_src>
import functools

import jax
import jax.numpy as jnp
from jax.experimental import pallas as pl
from jax.experimental.pallas import tpu as pltpu


def _msd_kernel(x_ref, o_ref, *, C, num_feat, eps):
    """One block of TM batch-groups per grid step.

    x_ref : (G, TM, C, H, W)      all G members of TM groups, native dtype
    o_ref : (G, TM, C + F, H, W)  pass-through channels followed by F std channels
    """
    G, TM, _, H, W = x_ref.shape
    c = C // num_feat

    # Pass-through channels (the concat): direct ref->ref copy, native dtype.
    o_ref[:, :, :C, :, :] = x_ref[...]

    # Per-feature group statistics, accumulated in f32.
    ys = []
    for f in range(num_feat):                                   # static; tiny F
        xf = x_ref[:, :, f * c:(f + 1) * c, :, :].astype(jnp.float32)  # (G,TM,c,H,W)
        mu = jnp.mean(xf, axis=0, keepdims=True)                       # (1,TM,c,H,W)
        var = jnp.mean(jnp.square(xf - mu), axis=0)                    # (TM,c,H,W)
        std = jnp.sqrt(var + eps)                                      # (TM,c,H,W)
        ys.append(jnp.mean(std, axis=(1, 2, 3), keepdims=True))        # (TM,1,1,1)
    y = ys[0] if num_feat == 1 else jnp.concatenate(ys, axis=1)        # (TM,F,1,1)

    # One broadcast store for all F std channels over group members and space.
    o_ref[:, :, C:, :, :] = jnp.broadcast_to(
        y.astype(o_ref.dtype)[None], (G, TM, num_feat, H, W))


def _round_up(v, m):
    return ((v + m - 1) // m) * m


def _choose_tm(M, per_tm_vmem_bytes, budget_bytes=10 << 20):
    """Largest divisor of M whose double-buffered in+out blocks fit the budget,
    keeping >= 2 grid steps when M >= 2 (so both v7x TensorCores get work)."""
    cap = max(1, budget_bytes // max(1, per_tm_vmem_bytes))
    tm = 1
    for d in range(1, M + 1):
        if M % d == 0 and d <= cap and (M == 1 or M // d >= 2):
            tm = d
    return tm


def minibatch_stddev(x, *, group_size, num_channels=1):
    """MinibatchStdDev forward. x: (N, C, H, W) -> (N, C + num_channels, H, W)."""
    N, C, H, W = x.shape
    G = group_size if N % group_size == 0 else N
    M = N // G
    Fch = num_channels
    assert C % Fch == 0, (C, Fch)

    # Leading-dim split only (pure bitcast; batch index n = g*M + m, g-major
    # exactly like torch.reshape). No minor-dim reshape -> no boundary relayout.
    xg = x.reshape(G, M, C, H, W)

    # VMEM cost of one TM unit: account for (sublane, lane) padding of the two
    # minor dims and for the double-buffered input+output pipeline buffers.
    itemsize = jnp.dtype(x.dtype).itemsize
    sub = 8 * max(1, 4 // itemsize)                 # f32 -> 8, bf16 -> 16
    hp, wp = _round_up(H, sub), _round_up(W, 128)
    per_tm = 2 * (G * C + G * (C + Fch)) * hp * wp * itemsize
    TM = _choose_tm(M, per_tm)

    kernel = functools.partial(_msd_kernel, C=C, num_feat=Fch, eps=1e-8)

    out = pl.pallas_call(
        kernel,
        out_shape=jax.ShapeDtypeStruct((G, M, C + Fch, H, W), x.dtype),
        grid=(M // TM,),
        in_specs=[pl.BlockSpec((G, TM, C, H, W), lambda i: (0, i, 0, 0, 0))],
        out_specs=pl.BlockSpec((G, TM, C + Fch, H, W), lambda i: (0, i, 0, 0, 0)),
        compiler_params=pltpu.CompilerParams(dimension_semantics=("parallel",)),
    )(xg)

    # Leading-dim merge back (bitcast): out[g, m] -> batch index g*M + m, which
    # matches torch's y.repeat(G, 1, H, W) placement of the std feature.
    return out.reshape(N, C + Fch, H, W)


def minibatch_stddev_ref(x, *, group_size, num_channels=1):
    """Pure-JAX reference mirroring the PyTorch forward (stats in f32)."""
    N, C, H, W = x.shape
    G = group_size if N % group_size == 0 else N
    Fch = num_channels
    c = C // Fch
    y = x.astype(jnp.float32).reshape(G, -1, Fch, c, H, W)
    y = y - jnp.mean(y, axis=0)
    y = jnp.mean(jnp.square(y), axis=0)
    y = jnp.sqrt(y + 1e-8)
    y = jnp.mean(y, axis=(2, 3, 4))              # (M, F)
    y = y.reshape(-1, Fch, 1, 1)
    y = jnp.tile(y, (G, 1, H, W))                # == torch y.repeat(G, 1, H, W)
    return jnp.concatenate([x, y.astype(x.dtype)], axis=1)


if __name__ == "__main__":
    key = jax.random.PRNGKey(0)
    k1, k3 = jax.random.split(key)

    # Case 1: f32, divisible batch (G=4, M=2, F=1).
    x1 = jax.random.normal(k1, (8, 16, 16, 16), dtype=jnp.float32)
    out1 = jax.block_until_ready(minibatch_stddev(x1, group_size=4, num_channels=1))
    ref1 = minibatch_stddev_ref(x1, group_size=4, num_channels=1)
    assert out1.shape == (8, 17, 16, 16), out1.shape
    assert jnp.allclose(out1, ref1, atol=1e-5, rtol=1e-5), \
        float(jnp.max(jnp.abs(out1 - ref1)))

    # Case 2: native bf16 I/O (stats still accumulated in f32 inside the kernel).
    x2 = x1.astype(jnp.bfloat16)
    out2 = jax.block_until_ready(minibatch_stddev(x2, group_size=4, num_channels=1))
    ref2 = minibatch_stddev_ref(x2, group_size=4, num_channels=1)
    assert out2.dtype == jnp.bfloat16 and out2.shape == (8, 17, 16, 16)
    assert jnp.allclose(out2.astype(jnp.float32), ref2.astype(jnp.float32),
                        atol=3e-2), \
        float(jnp.max(jnp.abs(out2.astype(jnp.float32) - ref2.astype(jnp.float32))))

    # Case 3: N % group_size != 0 fallback (G=N, M=1) with num_channels=2.
    x3 = jax.random.normal(k3, (6, 16, 16, 16), dtype=jnp.float32)
    out3 = jax.block_until_ready(minibatch_stddev(x3, group_size=4, num_channels=2))
    ref3 = minibatch_stddev_ref(x3, group_size=4, num_channels=2)
    assert out3.shape == (6, 18, 16, 16), out3.shape
    assert jnp.allclose(out3, ref3, atol=1e-5, rtol=1e-5), \
        float(jnp.max(jnp.abs(out3 - ref3)))

    print("KERNEL_OK")
</pallas_src>

<mosaic_0001>
module attributes {stable_mosaic.version = 11 : i64} {
  func.func @_msd_kernel(%arg0: i32, %arg1: memref<4x1x16x16x16xf32, #tpu.memory_space<vmem>>, %arg2: memref<4x1x17x16x16xf32, #tpu.memory_space<vmem>>) attributes {dimension_semantics = [#tpu.dimension_semantics<parallel>], iteration_bounds = array<i64: 2>, scalar_prefetch = 0 : i64, scratch_operands = 0 : i64, tpu.core_type = #tpu.core_type<tc>, window_params = [{transform_indices = @transform_0, window_bounds = array<i64: 4, 1, 16, 16, 16>}, {transform_indices = @transform_1, window_bounds = array<i64: 4, 1, 17, 16, 16>}]} {
    %c0 = arith.constant 0 : index
    %c0_0 = arith.constant 0 : index
    %c0_1 = arith.constant 0 : index
    %c0_2 = arith.constant 0 : index
    %c0_3 = arith.constant 0 : index
    %0 = vector.load %arg1[%c0, %c0_0, %c0_1, %c0_2, %c0_3] : memref<4x1x16x16x16xf32, #tpu.memory_space<vmem>>, vector<4x1x16x16x16xf32>
    %c0_4 = arith.constant 0 : index
    %c0_5 = arith.constant 0 : index
    %c0_6 = arith.constant 0 : index
    %c0_7 = arith.constant 0 : index
    %c0_8 = arith.constant 0 : index
    %1 = vector.load %arg2[%c0_4, %c0_5, %c0_6, %c0_7, %c0_8] : memref<4x1x17x16x16xf32, #tpu.memory_space<vmem>>, vector<4x1x16x16x16xf32>
    tpu.vector_store %arg2[%c0_4, %c0_5, %c0_6, %c0_7, %c0_8], %0 {strides = array<i32>} : memref<4x1x17x16x16xf32, #tpu.memory_space<vmem>>, vector<4x1x16x16x16xf32>,
    %c0_9 = arith.constant 0 : index
    %c0_10 = arith.constant 0 : index
    %c0_11 = arith.constant 0 : index
    %c0_12 = arith.constant 0 : index
    %c0_13 = arith.constant 0 : index
    %2 = vector.load %arg1[%c0_9, %c0_10, %c0_11, %c0_12, %c0_13] : memref<4x1x16x16x16xf32, #tpu.memory_space<vmem>>, vector<4x1x16x16x16xf32>
    %cst = arith.constant dense<0.000000e+00> : vector<1x16x16x16xf32>
    %3 = vector.multi_reduction <add>, %2, %cst [0] : vector<4x1x16x16x16xf32> to vector<1x16x16x16xf32>
    %4 = vector.shape_cast %3 : vector<1x16x16x16xf32> to vector<1x1x16x16x16xf32>
    %cst_14 = arith.constant 4.000000e+00 : f32
    %5 = vector.broadcast %cst_14 : f32 to vector<1x1x16x16x16xf32>
    %6 = arith.divf %4, %5 : vector<1x1x16x16x16xf32>
    %7 = vector.broadcast %6 : vector<1x1x16x16x16xf32> to vector<4x1x16x16x16xf32>
    %8 = arith.subf %2, %7 : vector<4x1x16x16x16xf32>
    %9 = arith.mulf %8, %8 : vector<4x1x16x16x16xf32>
    %cst_15 = arith.constant dense<0.000000e+00> : vector<1x16x16x16xf32>
    %10 = vector.multi_reduction <add>, %9, %cst_15 [0] : vector<4x1x16x16x16xf32> to vector<1x16x16x16xf32>
    %cst_16 = arith.constant 4.000000e+00 : f32
    %11 = vector.broadcast %cst_16 : f32 to vector<1x16x16x16xf32>
    %12 = arith.divf %10, %11 : vector<1x16x16x16xf32>
    %cst_17 = arith.constant 9.99999993E-9 : f32
    %13 = vector.broadcast %cst_17 : f32 to vector<1x16x16x16xf32>
    %14 = arith.addf %12, %13 : vector<1x16x16x16xf32>
    %15 = math.sqrt %14 : vector<1x16x16x16xf32>
    %cst_18 = arith.constant dense<0.000000e+00> : vector<1xf32>
    %16 = vector.multi_reduction <add>, %15, %cst_18 [1, 2, 3] : vector<1x16x16x16xf32> to vector<1xf32>
    %17 = vector.shape_cast %16 : vector<1xf32> to vector<1x1x1x1xf32>
    %cst_19 = arith.constant 4.096000e+03 : f32
    %18 = vector.broadcast %cst_19 : f32 to vector<1x1x1x1xf32>
    %19 = arith.divf %17, %18 : vector<1x1x1x1xf32>
    %20 = vector.shape_cast %19 : vector<1x1x1x1xf32> to vector<1x1x1x1x1xf32>
    %21 = vector.shape_cast %20 : vector<1x1x1x1x1xf32> to vector<1x1x1x1x1xf32>
    %22 = vector.broadcast %21 : vector<1x1x1x1x1xf32> to vector<4x1x1x16x16xf32>
    %c0_20 = arith.constant 0 : index
    %c0_21 = arith.constant 0 : index
    %c16 = arith.constant 16 : index
    %c0_22 = arith.constant 0 : index
    %c0_23 = arith.constant 0 : index
    %23 = vector.load %arg2[%c0_20, %c0_21, %c16, %c0_22, %c0_23] : memref<4x1x17x16x16xf32, #tpu.memory_space<vmem>>, vector<4x1x1x16x16xf32>
    tpu.vector_store %arg2[%c0_20, %c0_21, %c16, %c0_22, %c0_23], %22 {strides = array<i32>} : memref<4x1x17x16x16xf32, #tpu.memory_space<vmem>>, vector<4x1x1x16x16xf32>,
    return
  }
  func.func @transform_0(%arg0: i32) -> (i32, i32, i32, i32, i32) {
    %c0_i32 = arith.constant 0 : i32
    %c0_i32_0 = arith.constant 0 : i32
    %c0_i32_1 = arith.constant 0 : i32
    %c0_i32_2 = arith.constant 0 : i32
    %c0_i32_3 = arith.constant 0 : i32
    return %c0_i32, %arg0, %c0_i32_0, %c0_i32_1, %c0_i32_2 : i32, i32, i32, i32, i32
  }
  func.func @transform_1(%arg0: i32) -> (i32, i32, i32, i32, i32) {
    %c0_i32 = arith.constant 0 : i32
    %c0_i32_0 = arith.constant 0 : i32
    %c0_i32_1 = arith.constant 0 : i32
    %c0_i32_2 = arith.constant 0 : i32
    %c0_i32_3 = arith.constant 0 : i32
    return %c0_i32, %arg0, %c0_i32_0, %c0_i32_1, %c0_i32_2 : i32, i32, i32, i32, i32
  }
}

</mosaic_0001>

<bundles_post_ra>
// kernel: tpu_custom_call.1
= control target key start
LH: loop header
LB: loop body
LE: loop exit
PB: predicated region body
PF: predicated region fallthrough
CT: control target
= control target key end

     0   :  { %6 = vsyncpa [#allocation3], 0  ;;  %s6110_s0 = inlined_call_operand.hbm [shape: f32[4,2,16,16,16], index: 0, kind: input, shape index: {}]   ;;  %s6111_s1 = inlined_call_operand.vmem [shape: f32[4,2,17,16,16], index: 1, kind: output, shape index: {}]  }
   0x1   :  { %8 = vsyncpa [#allocation3 + $0x1], 0  ;;  %s2662_s6 = smov 0   ;;  %s2664_s7 = smov 0  }
   0x2   :  { %s2666_s8 = smov 0   ;;  %s2668_s9 = smov 0  }
   0x3 LB: > { %s2681_s10 = sadd.s32 4294967295, %s2642_s9   ;;  %s2684_s11 = sadd.s32 1, %s2642_s9   ;;  %s2642_s9 = sphi %s2668_s9, %s6876_s9   ;;  %s2638_s8 = sphi %s2666_s8, %s6875_s8   ;;  %s2634_s7 = sphi %s2664_s7, %s6874_s7   ;;  %s2630_s6 = sphi %s2662_s6, %s6873_s6  }
   0x4   : > { %s18_s12 = ssub.s32 %s2642_s9, %s2684_s11  ;;  %s21_s13 = sadd.s32 1, %s2638_s8 }
   0x5   : > { %p19_p0 = scmp.eq.s32.totalorder %s18_s12, 0  ;;  %p28_p1 = scmp.ne.s32.totalorder %s2638_s8, %s2634_s7 }
   0x6   : > { %p29_p2 = scmp.eq.s32.totalorder %s2642_s9, 0  ;;  %p34_p3 = scmp.ne.s32.totalorder %s2634_s7, %s2630_s6 }
   0x7   : > { %s2694_s14 = scalar_select %p19_p0, %s2638_s8, %s21_s13  }
   0x8   : > { %p2696_p4 = por %p29_p2, %p28_p1  ;;  %p35_p5 = scmp.eq.s32.totalorder %s2681_s10, 0 }
   0x9   : > { %p58_p6 = scmp.eq.s32.totalorder %s2681_s10, 1  ;;  %p2469_p9 = scmp.ge.s32.totalorder %s2642_s9, 2 }
   0xa   : > { %p2702_p7 = por %p35_p5, %p34_p3 }
   0xb   : > { %p2706_p8 = por %p58_p6, %p28_p1  ;;  %80 = sbr.rel (%p2469_p9) target bundleno = 30 (0x1e), region = 16 }
  0x10   : > { %s84_s18 = sand.u32 1, %s2638_s8   ;;  %s2488_s19 = sshll.u32 %s2642_s9, 8 }
  0x11   : > { %s2470_s20 = sshll.u32 %s84_s18, 10  ;;  %s93_s23 = scalar_lea.hbm %s6110_s0, %s2488_s19 }
  0x12   : > { %s2491_s24 = scalar_select %p2696_p4, [#allocation0], [#allocation7] }
  0x13   : > { %s106_s25 = sshll.u32 %s93_s23, 4  ;;  %s88_s26 = scalar_lea.vmem [#allocation2], %s2470_s20  ;;  %s107_s25 = int_to_ptr.hbm [resolvable:$true] %s106_s25 }
  0x14   : > { %s108_s27 = sshll.u32 %s88_s26, 4  ;;  %s98_s28 = sld [smem:[%s2491_s24]]   ;;  %s109_s27 = int_to_ptr.vmem [resolvable:$true] %s108_s27 }
  0x15   : > { %s2644_s29 = smov 8192   ;;  %s2645_s30 = smov 4096  }
  0x16   : > { %2492 = sst [smem:[#allocation6]] (%p2696_p4), %s2644_s29  ;;  %s2646_s2 = smov 32  }
  0x17   : > { %2493 = sst [smem:[#allocation6 + $0x1]] (%p2696_p4), %s2645_s30  ;;  %s2647_s3 = smov 128  }
  0x18   : > { %2494 = sst [smem:[#allocation6 + $0x2]] (%p2696_p4), %s2646_s2  ;;  %s2648_s6 = smov 8  }
  0x19   : > { %2495 = sst [smem:[#allocation6 + $0x3]] (%p2696_p4), %s2647_s3  ;;  %s85_s12 = scalar_lea.sflag [#allocation3], %s84_s18 }
  0x1a   : > { %s2473_s4 = sshll.u32 %s98_s28, 26  ;;  %2496 = sst [smem:[#allocation6 + $0x4]] (%p2696_p4), %s2647_s3 }
  0x1b   : > { %s2474_s5 = sadd.s32 134217728, %s2473_s4  ;;  %2497 = sst [smem:[#allocation6 + $0x5]] (%p2696_p4), %s2648_s6 }
  0x1c   : > { %s2649_s13 = smov [#allocation5]  }
  0x1d   : > { %2498 = dma.general (%p2696_p4), %s107_s25, 16384, %s109_s27, %s85_s12, %s2649_s13, [#allocation6], %s2474_s5, 0  }
  0x1e PF: > { %p2475_p10 = scmp.ge.s32.totalorder %s2642_s9, 1  ;;  %p129_p11 = scmp.lt.s32.totalorder %s2642_s9, 3 }
  0x20   : > { %p130_p12 = pnand %p2475_p10, %p129_p11 }
  0x22   : > { %133 = sbr.rel (%p130_p12) target bundleno = 782 (0x30e), region = 24 }
  0x27   : > { %s135_s19 = sand.u32 1, %s2634_s7  }
  0x28   : > { %s2476_s20 = sshll.u32 %s135_s19, 10  ;;  %s136_s21 = scalar_lea.sflag [#allocation3], %s135_s19 }
  0x29   : > { %s2735_s22 = scalar_lea.vmem [#allocation2], %s2476_s20 }
  0x2a   : > { %2625 = dma.done.wait (%p2702_p7), %s136_s21, 16384  }
  0x2b   : > { %2627 = vsyncadd (%p2702_p7), %s136_s21, 4294950912  ;;  %s2489_s9 = smul.u32 1088, %s135_s19  ;;  %v2742_v0 = vld [vmem:[%s2735_s22] sm:$0xff]  ;;  %vm286_vm0 = vcmask 130048   ;;  %v2745_v1 = vld [vmem:[%s2735_s22 + $0x8] sm:$0xff] }
  0x2c   : > { %6307 = vst [vmem:[#allocation9_spill] sm:$0xff] %v2742_v0  ;;  %v2753_v2 = vld [vmem:[%s2735_s22 + $0x10] sm:$0xff]  ;;  %v2759_v3 = vld [vmem:[%s2735_s22 + $0x18] sm:$0xff]  ;;  %v2765_v4 = vld [vmem:[%s2735_s22 + $0x20] sm:$0xff]  ;;  %s2490_s16 = smul.u32 (%p2706_p8), 272, %s2681_s10 }
  0x2d   : > { %6308 = vst [vmem:[#allocation10_spill] sm:$0xff] %v2745_v1  ;;  %s2747_s15 = scalar_lea.vmem [#allocation4], %s2489_s9  ;;  %v2771_v5 = vld [vmem:[%s2735_s22 + $0x28] sm:$0xff]  ;;  %v2777_v6 = vld [vmem:[%s2735_s22 + $0x30] sm:$0xff]  ;;  %v2783_v7 = vld [vmem:[%s2735_s22 + $0x38] sm:$0xff] }
  0x2e   : > { %287 = vst.msk [vmem:[%s2747_s15] sm:$0xff] %vm286_vm0, %v2742_v0  ;;  %v2789_v8 = vld [vmem:[%s2735_s22 + $0x40] sm:$0xff]  ;;  %v2795_v9 = vld [vmem:[%s2735_s22 + $0x48] sm:$0xff]  ;;  %v2801_v10 = vld [vmem:[%s2735_s22 + $0x50] sm:$0xff]  ;;  %s5825_s24 = scalar_lea.vmem (%p2706_p8), %s6111_s1, %s2490_s16 }
  0x2f   : > { %6309 = vst [vmem:[#allocation11_spill] sm:$0xff] %v2753_v2  ;;  %v2807_v11 = vld [vmem:[%s2735_s22 + $0x58] sm:$0xff]  ;;  %v2813_v12 = vld [vmem:[%s2735_s22 + $0x60] sm:$0xff]  ;;  %v2819_v13 = vld [vmem:[%s2735_s22 + $0x68] sm:$0xff] }
  0x30   : > { %288 = vst.msk [vmem:[%s2747_s15 + $0x8] sm:$0xff] %vm286_vm0, %v2745_v1  ;;  %v2825_v14 = vld [vmem:[%s2735_s22 + $0x70] sm:$0xff]  ;;  %v2831_v15 = vld [vmem:[%s2735_s22 + $0x78] sm:$0xff]  ;;  %v2837_v16 = vld [vmem:[%s2735_s22 + $0x80] sm:$0xff]  ;;  %v634_v24 = vsel %vm286_vm0, %v2819_v13, 0.0  ;;  %v627_v27 = vsel %vm286_vm0, %v2813_v12, 0.0 }
  0x31   : > { %6310 = vst [vmem:[#allocation12_spill] sm:$0xff] %v2759_v3  ;;  %v2843_v17 = vld [vmem:[%s2735_s22 + $0x88] sm:$0xff]  ;;  %v2849_v18 = vld [vmem:[%s2735_s22 + $0x90] sm:$0xff]  ;;  %v2858_v20 = vld [vmem:[%s2735_s22 + $0x98] sm:$0xff]  ;;  %v641_v48 = vsel %vm286_vm0, %v2825_v14, 0.0  ;;  %v648_v53 = vsel %vm286_vm0, %v2831_v15, 0.0 }
  0x32   : > { %289 = vst.msk [vmem:[%s2747_s15 + $0x10] sm:$0xff] %vm286_vm0, %v2753_v2  ;;  %v2852_v19 = vld [vmem:[%s2735_s22 + $0x168] sm:$0xff]  ;;  %v2861_v21 = vld [vmem:[%s2735_s22 + $0x160] sm:$0xff]  ;;  %v2883_v26 = vld [vmem:[%s2735_s22 + $0xb0] sm:$0xff]  ;;  %v655_v59 = vsel %vm286_vm0, %v2837_v16, 0.0 }
  0x33   : > { %6311 = vst [vmem:[#allocation13_spill] sm:$0xff] %v2765_v4  ;;  %v2867_v22 = vld [vmem:[%s2735_s22 + $0xa0] sm:$0xff]  ;;  %v2873_v23 = vld [vmem:[%s2735_s22 + $0xa8] sm:$0xff]  ;;  %v635_v25 = vsel %vm286_vm0, %v2852_v19, 0.0  ;;  %v628_v28 = vsel %vm286_vm0, %v2861_v21, 0.0  ;;  %v2893_v30 = vld [vmem:[%s2735_s22 + $0xb8] sm:$0xff] }
  0x34   : > { %290 = vst.msk [vmem:[%s2747_s15 + $0x18] sm:$0xff] %vm286_vm0, %v2759_v3  ;;  %v636_v29 = vadd.f32 %v635_v25, %v634_v24  ;;  %v2899_v31 = vld [vmem:[%s2735_s22 + $0xc0] sm:$0xff]  ;;  %v2905_v32 = vld [vmem:[%s2735_s22 + $0xc8] sm:$0xff]  ;;  %v629_v35 = vadd.f32 %v628_v28, %v627_v27  ;;  %v2917_v36 = vld [vmem:[%s2735_s22 + $0xd0] sm:$0xff]  ;;  %v2650_v28 = vmov 4.0  }
  0x35   : > { %6312 = vst [vmem:[#allocation14_spill] sm:$0xff] %v2771_v5  ;;  %v2908_v33 = vld [vmem:[%s2735_s22 + $0x260] sm:$0xff]  ;;  %v2911_v34 = vld [vmem:[%s2735_s22 + $0x268] sm:$0xff]  ;;  %v2920_v37 = vld [vmem:[%s2735_s22 + $0x170] sm:$0xff]  ;;  %2540 = vrcp.f32 %v2650_v28 }
  0x36   : > { %291 = vst.msk [vmem:[%s2747_s15 + $0x20] sm:$0xff] %vm286_vm0, %v2765_v4  ;;  %v2926_v38 = vld [vmem:[%s2735_s22 + $0xd8] sm:$0xff]  ;;  %v2929_v39 = vld [vmem:[%s2735_s22 + $0x270] sm:$0xff]  ;;  %v2935_v40 = vld [vmem:[%s2735_s22 + $0xe0] sm:$0xff]  ;;  %v630_v42 = vsel %vm286_vm0, %v2908_v33, 0.0  ;;  %v637_v43 = vsel %vm286_vm0, %v2911_v34, 0.0 }
  0x37   : > { %6313 = vst [vmem:[#allocation15_spill] sm:$0xff] %v2777_v6  ;;  %v2938_v41 = vld [vmem:[%s2735_s22 + $0x178] sm:$0xff]  ;;  %v2948_v44 = vld [vmem:[%s2735_s22 + $0xe8] sm:$0xff]  ;;  %v2951_v45 = vld [vmem:[%s2735_s22 + $0x180] sm:$0xff]  ;;  %v2956_v46 = vadd.f32 %v630_v42, %v629_v35  ;;  %v2958_v47 = vadd.f32 %v637_v43, %v636_v29  ;;  %v642_v49 = vsel %vm286_vm0, %v2920_v37, 0.0  ;;  %v644_v52 = vsel %vm286_vm0, %v2929_v39, 0.0 }
  0x38   : > { %292 = vst.msk [vmem:[%s2747_s15 + $0x28] sm:$0xff] %vm286_vm0, %v2771_v5  ;;  %v2965_v50 = vld [vmem:[%s2735_s22 + $0xf0] sm:$0xff]  ;;  %v643_v51 = vadd.f32 %v642_v49, %v641_v48  ;;  %v2975_v54 = vld [vmem:[%s2735_s22 + $0xf8] sm:$0xff]  ;;  %v649_v55 = vsel %vm286_vm0, %v2938_v41, 0.0  ;;  %v2983_v56 = vld [vmem:[%s2735_s22 + $0x100] sm:$0xff]  ;;  %v656_v60 = vsel %vm286_vm0, %v2951_v45, 0.0 }
  0x39   : > { %6314 = vst [vmem:[#allocation16_spill] sm:$0xff] %v2783_v7  ;;  %v650_v58 = vadd.f32 %v649_v55, %v648_v53  ;;  %v2995_v61 = vld [vmem:[%s2735_s22 + $0x108] sm:$0xff]  ;;  %v657_v62 = vadd.f32 %v656_v60, %v655_v59  ;;  %v3001_v63 = vld [vmem:[%s2735_s22 + $0x110] sm:$0xff]  ;;  %v3004_v24 = vld [vmem:[%s2735_s22 + $0x278] sm:$0xff] }
  0x3a   : > { %293 = vst.msk [vmem:[%s2747_s15 + $0x30] sm:$0xff] %vm286_vm0, %v2777_v6  ;;  %v2988_v57 = vadd.f32 %v644_v52, %v643_v51  ;;  %v3010_v25 = vld [vmem:[%s2735_s22 + $0x118] sm:$0xff]  ;;  %v3016_v27 = vld [vmem:[%s2735_s22 + $0x120] sm:$0xff]  ;;  %v3022_v29 = vld [vmem:[%s2735_s22 + $0x128] sm:$0xff]  ;;  %v651_v35 = vsel %vm286_vm0, %v3004_v24, 0.0  ;;  %v683_v6 = vsel %vm286_vm0, %v2867_v22, 0.0 }
  0x3b   : > { %6315 = vst [vmem:[#allocation17_spill] sm:$0xff] %v2789_v8  ;;  %v3030_v42 = vld [vmem:[%s2735_s22 + $0x130] sm:$0xff]  ;;  %v3033_v43 = vld [vmem:[%s2735_s22 + $0x280] sm:$0xff]  ;;  %v3039_v48 = vld [vmem:[%s2735_s22 + $0x138] sm:$0xff]  ;;  %v3056_v53 = vadd.f32 %v651_v35, %v650_v58 }
  0x3c   : > { %294 = vst.msk [vmem:[%s2747_s15 + $0x38] sm:$0xff] %vm286_vm0, %v2783_v7  ;;  %v3045_v49 = vld [vmem:[%s2735_s22 + $0x140] sm:$0xff]  ;;  %v3048_v51 = vld [vmem:[%s2735_s22 + $0x188] sm:$0xff]  ;;  %v3062_v59 = vld [vmem:[%s2735_s22 + $0x190] sm:$0xff]  ;;  %v658_v28 = vsel %vm286_vm0, %v3033_v43, 0.0 }
  0x3d   : > { %6316 = vst [vmem:[#allocation18_spill] sm:$0xff] %v2795_v9  ;;  %v3051_v52 = vld [vmem:[%s2735_s22 + $0x288] sm:$0xff]  ;;  %v3065_v60 = vld [vmem:[%s2735_s22 + $0x290] sm:$0xff]  ;;  %v3078_v58 = vld [vmem:[%s2735_s22 + $0x198] sm:$0xff]  ;;  %v3083_v35 = vadd.f32 %v658_v28, %v657_v62  ;;  %v669_v28 = vsel %vm286_vm0, %v2849_v18, 0.0 }
  0x3e   : > { %295 = vst.msk [vmem:[%s2747_s15 + $0x40] sm:$0xff] %vm286_vm0, %v2789_v8  ;;  %v3059_v55 = vld [vmem:[%s2735_s22 + $0x148] sm:$0xff]  ;;  %v665_v62 = vsel %vm286_vm0, %v3051_v52, 0.0  ;;  %v3168_v1 = vld [vmem:[%s2735_s22 + $0x1b8] sm:$0xff] }
  0x3f   : > { %6317 = vst [vmem:[#allocation19_spill] sm:$0xff] %v2801_v10  ;;  %v3127_v8 = vld [vmem:[%s2735_s22 + $0x2a8] sm:$0xff] }
  0x40   : > { %296 = vst.msk [vmem:[%s2747_s15 + $0x48] sm:$0xff] %vm286_vm0, %v2795_v9  ;;  %v662_v9 = vsel %vm286_vm0, %v2843_v17, 0.0  ;;  %v693_v3 = vsel %vm286_vm0, %v3127_v8, 0.0 }
  0x41   : > { %6318 = vst [vmem:[#allocation20_spill] sm:$0xff] %v2807_v11 }
  0x42   : > { %297 = vst.msk [vmem:[%s2747_s15 + $0x50] sm:$0xff] %vm286_vm0, %v2801_v10  ;;  %v3075_v10 = vld [vmem:[%s2735_s22 + $0x150] sm:$0xff] }
  0x43   : > { %298 = vst.msk [vmem:[%s2747_s15 + $0x58] sm:$0xff] %vm286_vm0, %v2807_v11  ;;  %v3072_v11 = vpop.eup %2540 }
  0x44   : > { %299 = vst.msk [vmem:[%s2747_s15 + $0x60] sm:$0xff] %vm286_vm0, %v2813_v12  ;;  %vm772_vm1 = vweird.f32 %v3072_v11 }
  0x45   : > { %300 = vst.msk [vmem:[%s2747_s15 + $0x68] sm:$0xff] %vm286_vm0, %v2819_v13 }
  0x46   : > { %301 = vst.msk [vmem:[%s2747_s15 + $0x70] sm:$0xff] %vm286_vm0, %v2825_v14 }
  0x47   : > { %302 = vst.msk [vmem:[%s2747_s15 + $0x78] sm:$0xff] %vm286_vm0, %v2831_v15 }
  0x48   : > { %303 = vst.msk [vmem:[%s2747_s15 + $0x80] sm:$0xff] %vm286_vm0, %v2837_v16 }
  0x49   : > { %6319 = vst [vmem:[#allocation21_spill] sm:$0xff] %v2852_v19 }
  0x4a   : > { %304 = vst.msk [vmem:[%s2747_s15 + $0x88] sm:$0xff] %vm286_vm0, %v2843_v17 }
  0x4b   : > { %6320 = vst [vmem:[#allocation22_spill] sm:$0xff] %v2861_v21 }
  0x4c   : > { %305 = vst.msk [vmem:[%s2747_s15 + $0x90] sm:$0xff] %vm286_vm0, %v2849_v18 }
  0x4d   : > { %306 = vst.msk [vmem:[%s2747_s15 + $0x98] sm:$0xff] %vm286_vm0, %v2858_v20 }
  0x4e   : > { %307 = vst.msk [vmem:[%s2747_s15 + $0xa0] sm:$0xff] %vm286_vm0, %v2867_v22 }
  0x4f   : > { %6321 = vst [vmem:[#allocation23_spill] sm:$0xff] %v2883_v26 }
  0x50   : > { %308 = vst.msk [vmem:[%s2747_s15 + $0xa8] sm:$0xff] %vm286_vm0, %v2873_v23 }
  0x51   : > { %6322 = vst [vmem:[#allocation24_spill] sm:$0xff] %v2893_v30 }
  0x52   : > { %309 = vst.msk [vmem:[%s2747_s15 + $0xb0] sm:$0xff] %vm286_vm0, %v2883_v26 }
  0x53   : > { %6323 = vst [vmem:[#allocation25_spill] sm:$0xff] %v2899_v31 }
  0x54   : > { %310 = vst.msk [vmem:[%s2747_s15 + $0xb8] sm:$0xff] %vm286_vm0, %v2893_v30 }
  0x55   : > { %6324 = vst [vmem:[#allocation26_spill] sm:$0xff] %v2905_v32 }
  0x56   : > { %311 = vst.msk [vmem:[%s2747_s15 + $0xc0] sm:$0xff] %vm286_vm0, %v2899_v31 }
  0x57   : > { %6325 = vst [vmem:[#allocation27_spill] sm:$0xff] %v2917_v36 }
  0x58   : > { %6326 = vst [vmem:[#allocation28_spill] sm:$0xff] %v2920_v37 }
  0x59   : > { %312 = vst.msk [vmem:[%s2747_s15 + $0xc8] sm:$0xff] %vm286_vm0, %v2905_v32 }
  0x5a   : > { %6327 = vst [vmem:[#allocation29_spill] sm:$0xff] %v2926_v38 }
  0x5b   : > { %313 = vst.msk [vmem:[%s2747_s15 + $0xd0] sm:$0xff] %vm286_vm0, %v2917_v36 }
  0x5c   : > { %6328 = vst [vmem:[#allocation30_spill] sm:$0xff] %v2935_v40 }
  0x5d   : > { %6329 = vst [vmem:[#allocation31_spill] sm:$0xff] %v2938_v41 }
  0x5e   : > { %314 = vst.msk [vmem:[%s2747_s15 + $0xd8] sm:$0xff] %vm286_vm0, %v2926_v38 }
  0x5f   : > { %6330 = vst [vmem:[#allocation32_spill] sm:$0xff] %v2948_v44 }
  0x60   : > { %6331 = vst [vmem:[#allocation33_spill] sm:$0xff] %v2951_v45 }
  0x61   : > { %315 = vst.msk [vmem:[%s2747_s15 + $0xe0] sm:$0xff] %vm286_vm0, %v2935_v40 }
  0x62   : > { %6332 = vst [vmem:[#allocation34_spill] sm:$0xff] %v2965_v50 }
  0x63   : > { %316 = vst.msk [vmem:[%s2747_s15 + $0xe8] sm:$0xff] %vm286_vm0, %v2948_v44 }
  0x64   : > { %6333 = vst [vmem:[#allocation35_spill] sm:$0xff] %v2975_v54 }
  0x65   : > { %317 = vst.msk [vmem:[%s2747_s15 + $0xf0] sm:$0xff] %vm286_vm0, %v2965_v50 }
  0x66   : > { %6334 = vst [vmem:[#allocation36_spill] sm:$0xff] %v2983_v56 }
  0x67   : > { %318 = vst.msk [vmem:[%s2747_s15 + $0xf8] sm:$0xff] %vm286_vm0, %v2975_v54 }
  0x68   : > { %6335 = vst [vmem:[#allocation37_spill] sm:$0xff] %v2995_v61 }
  0x69   : > { %319 = vst.msk [vmem:[%s2747_s15 + $0x110] sm:$0xff] %vm286_vm0, %v2983_v56  ;;  %v3182_v56 = vld [vmem:[%s2735_s22 + $0x360] sm:$0xff] }
  0x6a   : > { %6336 = vst [vmem:[#allocation38_spill] sm:$0xff] %v3001_v63 }
  0x6b   : > { %320 = vst.msk [vmem:[%s2747_s15 + $0x118] sm:$0xff] %vm286_vm0, %v2995_v61  ;;  %v676_v61 = vsel %vm286_vm0, %v2858_v20, 0.0 }
  0x6c   : > { %6337 = vst [vmem:[#allocation39_spill] sm:$0xff] %v3010_v25 }
  0x6d   : > { %321 = vst.msk [vmem:[%s2747_s15 + $0x120] sm:$0xff] %vm286_vm0, %v3001_v63 }
  0x6e   : > { %6338 = vst [vmem:[#allocation40_spill] sm:$0xff] %v3016_v27 }
  0x6f   : > { %322 = vst.msk [vmem:[%s2747_s15 + $0x128] sm:$0xff] %vm286_vm0, %v3010_v25  ;;  %v672_v25 = vsel %vm286_vm0, %v3065_v60, 0.0 }
  0x70   : > { %6339 = vst [vmem:[#allocation41_spill] sm:$0xff] %v3022_v29 }
  0x71   : > { %323 = vst.msk [vmem:[%s2747_s15 + $0x130] sm:$0xff] %vm286_vm0, %v3016_v27  ;;  %v670_v27 = vsel %vm286_vm0, %v3062_v59, 0.0 }
  0x72   : > { %6340 = vst [vmem:[#allocation42_spill] sm:$0xff] %v3030_v42  ;;  %v671_v63 = vadd.f32 %v670_v27, %v669_v28 }
  0x73   : > { %324 = vst.msk [vmem:[%s2747_s15 + $0x138] sm:$0xff] %vm286_vm0, %v3022_v29  ;;  %v3106_v29 = vld [vmem:[%s2735_s22 + $0x2a0] sm:$0xff] }
  0x74   : > { %6341 = vst [vmem:[#allocation43_spill] sm:$0xff] %v3039_v48  ;;  %v3139_v7 = vadd.f32 %v672_v25, %v671_v63 }
  0x75   : > { %325 = vst.msk [vmem:[%s2747_s15 + $0x140] sm:$0xff] %vm286_vm0, %v3030_v42  ;;  %v663_v42 = vsel %vm286_vm0, %v3048_v51, 0.0 }
  0x76   : > { %6342 = vst [vmem:[#allocation44_spill] sm:$0xff] %v3045_v49 }
  0x77   : > { %6343 = vst [vmem:[#allocation45_spill] sm:$0xff] %v3048_v51 }
  0x78   : > { %326 = vst.msk [vmem:[%s2747_s15 + $0x148] sm:$0xff] %vm286_vm0, %v3039_v48  ;;  %v3091_v48 = vld [vmem:[%s2735_s22 + $0x298] sm:$0xff] }
  0x79   : > { %6344 = vst [vmem:[#allocation46_spill] sm:$0xff] %v3059_v55  ;;  %v679_v28 = vsel %vm286_vm0, %v3091_v48, 0.0 }
  0x7a   : > { %6345 = vst [vmem:[#allocation47_spill] sm:$0xff] %v3062_v59 }
  0x7b   : > { %327 = vst.msk [vmem:[%s2747_s15 + $0x150] sm:$0xff] %vm286_vm0, %v3045_v49  ;;  %v3088_v49 = vld [vmem:[%s2735_s22 + $0x158] sm:$0xff] }
  0x7c   : > { %6346 = vst [vmem:[#allocation48_spill] sm:$0xff] %v3075_v10 }
  0x7d   : > { %6347 = vst [vmem:[#allocation49_spill] sm:$0xff] %v3078_v58 }
  0x7e   : > { %328 = vst.msk [vmem:[%s2747_s15 + $0x158] sm:$0xff] %vm286_vm0, %v3059_v55  ;;  %v3103_v55 = vld [vmem:[%s2735_s22 + $0x1a0] sm:$0xff] }
  0x7f   : > { %6348 = vst [vmem:[#allocation50_spill] sm:$0xff] %v3088_v49  ;;  %v684_v5 = vsel %vm286_vm0, %v3103_v55, 0.0 }
  0x80   : > { %6349 = vst [vmem:[#allocation51_spill] sm:$0xff] %v3091_v48  ;;  %v685_v25 = vadd.f32 %v684_v5, %v683_v6 }
  0x81   : > { %329 = vst.msk [vmem:[%s2747_s15 + $0x160] sm:$0xff] %vm286_vm0, %v3075_v10  ;;  %v664_v10 = vadd.f32 %v663_v42, %v662_v9  ;;  %v768_v9 = vmul.f32 4.0, %v3072_v11  ;;  %v3124_v42 = vld [vmem:[%s2735_s22 + $0x1a8] sm:$0xff] }
  0x82   : > { %6350 = vst [vmem:[#allocation52_spill] sm:$0xff] %v3103_v55  ;;  %v691_v4 = vsel %vm286_vm0, %v3124_v42, 0.0 }
  0x83   : > { %6351 = vst [vmem:[#allocation53_spill] sm:$0xff] %v3106_v29  ;;  %v769_v2 = vsub.f32 1.0, %v768_v9  ;;  %v697_v9 = vsel %vm286_vm0, %v2883_v26, 0.0 }
  0x84   : > { %330 = vst.msk [vmem:[%s2747_s15 + $0x168] sm:$0xff] %vm286_vm0, %v3088_v49  ;;  %v677_v49 = vsel %vm286_vm0, %v3078_v58, 0.0 }
  0x85   : > { %331 = vst.msk [vmem:[%s2747_s15 + $0x170] sm:$0xff] %vm286_vm0, %v2861_v21  ;;  %v3132_v21 = vadd.f32 %v665_v62, %v664_v10  ;;  %v678_v27 = vadd.f32 %v677_v49, %v676_v61  ;;  %v686_v10 = vsel %vm286_vm0, %v3106_v29, 0.0  ;;  %v3148_v61 = vld [vmem:[%s2735_s22 + $0x1b0] sm:$0xff]  ;;  %v690_v62 = vsel %vm286_vm0, %v2873_v23, 0.0  ;;  %v3360_v29 = vld [vmem:[%s2735_s22 + $0x3e8] sm:$0xff] }
  0x86   : > { %6352 = vst [vmem:[#allocation54_spill] sm:$0xff] %v3124_v42  ;;  %v3151_v49 = vld [vmem:[%s2735_s22 + $0x2b0] sm:$0xff]  ;;  %v3176_v5 = vadd.f32 %v686_v10, %v685_v25  ;;  %v692_v6 = vadd.f32 %v691_v4, %v690_v62  ;;  %v698_v0 = vsel %vm286_vm0, %v3148_v61, 0.0  ;;  %v3194_v25 = vld [vmem:[%s2735_s22 + $0x2c0] sm:$0xff]  ;;  %v3197_v4 = vld [vmem:[%s2735_s22 + $0x368] sm:$0xff]  ;;  %v751_v48 = vsel %vm286_vm0, %v3360_v29, 0.0 }
  0x87   : > { %6353 = vst [vmem:[#allocation55_spill] sm:$0xff] %v3127_v8  ;;  %v3156_v63 = vadd.f32 %v679_v28, %v678_v27  ;;  %v3171_v27 = vld [vmem:[%s2735_s22 + $0x2b8] sm:$0xff]  ;;  %v3179_v28 = vld [vmem:[%s2735_s22 + $0x1c0] sm:$0xff]  ;;  %v700_v10 = vsel %vm286_vm0, %v3151_v49, 0.0  ;;  %v704_v8 = vsel %vm286_vm0, %v2893_v30, 0.0  ;;  %v3232_v30 = vld [vmem:[%s2735_s22 + $0x1d0] sm:$0xff] }
  0x88   : > { %332 = vst.msk [vmem:[%s2747_s15 + $0x178] sm:$0xff] %vm286_vm0, %v2852_v19  ;;  %v3202_v62 = vadd.f32 %v693_v3, %v692_v6  ;;  %v707_v3 = vsel %vm286_vm0, %v3171_v27, 0.0  ;;  %v770_v6 = vmul.f32 %v3072_v11, %v769_v2  ;;  %v639_v2 = vsel %vm286_vm0, %v3197_v4, 0.0  ;;  %v3406_v19 = vld [vmem:[%s2735_s22 + $0x398] sm:$0xff] }
  0x89   : > { %333 = vst.msk [vmem:[%s2747_s15 + $0x180] sm:$0xff] %vm286_vm0, %v2920_v37  ;;  %v3393_v37 = vld [vmem:[%s2735_s22 + $0x3f0] sm:$0xff] }
  0x8a   : > { %6354 = vst [vmem:[#allocation56_spill] sm:$0xff] %v3148_v61 }
  0x8b   : > { %6355 = vst [vmem:[#allocation57_spill] sm:$0xff] %v3151_v49  ;;  %v705_v49 = vsel %vm286_vm0, %v3168_v1, 0.0 }
  0x8c   : > { %334 = vst.msk [vmem:[%s2747_s15 + $0x188] sm:$0xff] %vm286_vm0, %v2938_v41  ;;  %v3284_v41 = vld [vmem:[%s2735_s22 + $0x380] sm:$0xff] }
  0x8d   : > { %335 = vst.msk [vmem:[%s2747_s15 + $0x190] sm:$0xff] %vm286_vm0, %v2951_v45  ;;  %v3210_v45 = vld [vmem:[%s2735_s22 + $0x2c8] sm:$0xff] }
  0x8e   : > { %6356 = vst [vmem:[#allocation58_spill] sm:$0xff] %v3168_v1 }
  0x8f   : > { %6357 = vst [vmem:[#allocation59_spill] sm:$0xff] %v3171_v27  ;;  %v712_v27 = vsel %vm286_vm0, %v3179_v28, 0.0 }
  0x90   : > { %336 = vst.msk [vmem:[%s2747_s15 + $0x198] sm:$0xff] %vm286_vm0, %v3048_v51  ;;  %v3207_v51 = vld [vmem:[%s2735_s22 + $0x1c8] sm:$0xff] }
  0x91   : > { %6358 = vst [vmem:[#allocation60_spill] sm:$0xff] %v3179_v28 }
  0x92   : > { %6359 = vst [vmem:[#allocation61_spill] sm:$0xff] %v3182_v56 }
  0x93   : > { %337 = vst.msk [vmem:[%s2747_s15 + $0x1a0] sm:$0xff] %vm286_vm0, %v3062_v59  ;;  %v699_v59 = vadd.f32 %v698_v0, %v697_v9  ;;  %v711_v0 = vsel %vm286_vm0, %v2899_v31, 0.0  ;;  %v632_v9 = vsel %vm286_vm0, %v3182_v56, 0.0  ;;  %v3235_v31 = vld [vmem:[%s2735_s22 + $0x2d0] sm:$0xff] }
  0x94   : > { %6360 = vst [vmem:[#allocation62_spill] sm:$0xff] %v3194_v25  ;;  %v713_v56 = vadd.f32 %v712_v27, %v711_v0  ;;  %v719_v27 = vsel %vm286_vm0, %v3207_v51, 0.0  ;;  %v721_v0 = vsel %vm286_vm0, %v3210_v45, 0.0 }
  0x95   : > { %6361 = vst [vmem:[#allocation63_spill] sm:$0xff] %v3197_v4  ;;  %v3259_v4 = vld [vmem:[%s2735_s22 + $0x1d8] sm:$0xff] }
  0x96   : > { %338 = vst.msk [vmem:[%s2747_s15 + $0x1a8] sm:$0xff] %vm286_vm0, %v3078_v58  ;;  %v706_v58 = vadd.f32 %v705_v49, %v704_v8  ;;  %v714_v8 = vsel %vm286_vm0, %v3194_v25, 0.0  ;;  %v3247_v49 = vld [vmem:[%s2735_s22 + $0x370] sm:$0xff]  ;;  %v3278_v25 = vld [vmem:[%s2735_s22 + $0x1e0] sm:$0xff] }
  0x97   : > { %6362 = vst [vmem:[#allocation64_spill] sm:$0xff] %v3207_v51 }
  0x98   : > { %6363 = vst [vmem:[#allocation65_spill] sm:$0xff] %v3210_v45  ;;  %v3275_v45 = vadd.f32 %v3072_v11, %v770_v6  ;;  %v726_v6 = vsel %vm286_vm0, %v3232_v30, 0.0 }
  0x99   : > { %339 = vst.msk [vmem:[%s2747_s15 + $0x1b0] sm:$0xff] %vm286_vm0, %v3103_v55  ;;  %v3227_v55 = vadd.f32 %v700_v10, %v699_v59  ;;  %v718_v59 = vsel %vm286_vm0, %v2905_v32, 0.0  ;;  %v3252_v10 = vadd.f32 %v707_v3, %v706_v58  ;;  %v3265_v32 = vld [vmem:[%s2735_s22 + $0x378] sm:$0xff]  ;;  %v3270_v58 = vadd.f32 %v714_v8, %v713_v56 }
  0x9a   : > { %340 = vst.msk [vmem:[%s2747_s15 + $0x1b8] sm:$0xff] %vm286_vm0, %v3124_v42  ;;  %v720_v3 = vadd.f32 %v719_v27, %v718_v59  ;;  %v3281_v42 = vld [vmem:[%s2735_s22 + $0x1e8] sm:$0xff]  ;;  %v3290_v56 = vadd.f32 %v632_v9, %v2956_v46  ;;  %v3293_v8 = vadd.f32 %v639_v2, %v2958_v47  ;;  %v728_v59 = vsel %vm286_vm0, %v3235_v31, 0.0  ;;  %v3300_v27 = vld [vmem:[%s2735_s22 + $0x2e0] sm:$0xff] }
  0x9b   : > { %6364 = vst [vmem:[#allocation66_spill] sm:$0xff] %v3232_v30  ;;  %v3313_v46 = vsel %vm286_vm0, %v3247_v49, 0.0  ;;  %v732_v2 = vsel %vm286_vm0, %v2926_v38, 0.0  ;;  %v3339_v38 = vld [vmem:[%s2735_s22 + $0x1f8] sm:$0xff] }
  0x9c   : > { %6365 = vst [vmem:[#allocation67_spill] sm:$0xff] %v3235_v31  ;;  %v3315_v47 = vadd.f32 %v721_v0, %v720_v3  ;;  %v733_v0 = vsel %vm286_vm0, %v3259_v4, 0.0  ;;  %v739_v3 = vsel %vm286_vm0, %v2935_v40, 0.0  ;;  %v740_v40 = vsel %vm286_vm0, %v3278_v25, 0.0  ;;  %v3357_v31 = vld [vmem:[%s2735_s22 + $0x2f0] sm:$0xff] }
  0x9d   : > { %341 = vst.msk [vmem:[%s2747_s15 + $0x1c0] sm:$0xff] %vm286_vm0, %v3148_v61  ;;  %v3262_v61 = vld [vmem:[%s2735_s22 + $0x2d8] sm:$0xff] }
  0x9e   : > { %6366 = vst [vmem:[#allocation68_spill] sm:$0xff] %v3247_v49  ;;  %v3342_v49 = vld [vmem:[%s2735_s22 + $0x388] sm:$0xff] }
  0x9f   : > { %342 = vst.msk [vmem:[%s2747_s15 + $0x1c8] sm:$0xff] %vm286_vm0, %v3168_v1  ;;  %v725_v1 = vsel %vm286_vm0, %v2917_v36, 0.0  ;;  %v3303_v36 = vld [vmem:[%s2735_s22 + $0x2e8] sm:$0xff] }
  0xa0   : > { %6367 = vst [vmem:[#allocation69_spill] sm:$0xff] %v3259_v4  ;;  %v727_v9 = vadd.f32 %v726_v6, %v725_v1  ;;  %v735_v1 = vsel %vm286_vm0, %v3262_v61, 0.0  ;;  %v3336_v6 = vld [vmem:[%s2735_s22 + $0x1f0] sm:$0xff] }
  0xa1   : > { %6368 = vst [vmem:[#allocation70_spill] sm:$0xff] %v3262_v61  ;;  %v734_v61 = vadd.f32 %v733_v0, %v732_v2  ;;  %v742_v2 = vsel %vm286_vm0, %v3300_v27, 0.0  ;;  %v746_v0 = vsel %vm286_vm0, %v2948_v44, 0.0  ;;  %v749_v44 = vsel %vm286_vm0, %v3303_v36, 0.0 }
  0xa2   : > { %6369 = vst [vmem:[#allocation71_spill] sm:$0xff] %v3265_v32 }
  0xa3   : > { %343 = vst.msk [vmem:[%s2747_s15 + $0x1d0] sm:$0xff] %vm286_vm0, %v3179_v28  ;;  %v3320_v28 = vld [vmem:[%s2735_s22 + $0x3e0] sm:$0xff] }
  0xa4   : > { %6370 = vst [vmem:[#allocation72_spill] sm:$0xff] %v3278_v25 }
  0xa5   : > { %6371 = vst [vmem:[#allocation73_spill] sm:$0xff] %v3281_v42 }
  0xa6   : > { %6372 = vst [vmem:[#allocation74_spill] sm:$0xff] %v3284_v41 }
  0xa7   : > { %344 = vst.msk [vmem:[%s2747_s15 + $0x1d8] sm:$0xff] %vm286_vm0, %v3207_v51  ;;  %v3306_v51 = vld [vmem:[%s2735_s22 + $0x3d8] sm:$0xff] }
  0xa8   : > { %6373 = vst [vmem:[#allocation75_spill] sm:$0xff] %v3300_v27  ;;  %v3390_v27 = vld [vmem:[%s2735_s22 + $0x390] sm:$0xff] }
  0xa9   : > { %6374 = vst [vmem:[#allocation76_spill] sm:$0xff] %v3303_v36  ;;  %v3403_v36 = vld [vmem:[%s2735_s22 + $0x210] sm:$0xff] }
  0xaa   : > { %6375 = vst [vmem:[#allocation77_spill] sm:$0xff] %v3306_v51 }
  0xab   : > { %345 = vst.msk [vmem:[%s2747_s15 + $0x1e0] sm:$0xff] %vm286_vm0, %v3232_v30  ;;  %v3327_v30 = vsel %vm286_vm0, %v3265_v32, 0.0  ;;  %v3349_v32 = vsel %vm286_vm0, %v3284_v41, 0.0  ;;  %v3372_v41 = vld [vmem:[%s2735_s22 + $0x200] sm:$0xff] }
  0xac   : > { %6376 = vst [vmem:[#allocation78_spill] sm:$0xff] %v3320_v28 }
  0xad   : > { %346 = vst.msk [vmem:[%s2747_s15 + $0x1e8] sm:$0xff] %vm286_vm0, %v3259_v4  ;;  %v3351_v4 = vadd.f32 %v728_v59, %v727_v9  ;;  %v737_v59 = vsel %vm286_vm0, %v3306_v51, 0.0  ;;  %v741_v9 = vadd.f32 %v740_v40, %v739_v3  ;;  %v744_v40 = vsel %vm286_vm0, %v3320_v28, 0.0  ;;  %v3387_v51 = vld [vmem:[%s2735_s22 + $0x2f8] sm:$0xff] }
  0xae   : > { %6377 = vst [vmem:[#allocation79_spill] sm:$0xff] %v3336_v6  ;;  %v747_v3 = vsel %vm286_vm0, %v3281_v42, 0.0 }
  0xaf   : > { %6378 = vst [vmem:[#allocation80_spill] sm:$0xff] %v3342_v49  ;;  %v748_v28 = vadd.f32 %v747_v3, %v746_v0  ;;  %v3420_v0 = vld [vmem:[%s2735_s22 + $0x218] sm:$0xff]  ;;  %v3423_v3 = vld [vmem:[%s2735_s22 + $0x3a0] sm:$0xff] }
  0xb0   : > { %347 = vst.msk [vmem:[%s2747_s15 + $0x1f0] sm:$0xff] %vm286_vm0, %v3278_v25  ;;  %v3375_v25 = vld [vmem:[%s2735_s22 + $0x208] sm:$0xff] }
  0xb1   : > { %6379 = vst [vmem:[#allocation81_spill] sm:$0xff] %v3351_v4  ;;  %v736_v4 = vadd.f32 %v735_v1, %v734_v61  ;;  %v667_v61 = vsel %vm286_vm0, %v3342_v49, 0.0  ;;  %v743_v1 = vadd.f32 %v742_v2, %v741_v9  ;;  %v754_v9 = vsel %vm286_vm0, %v3336_v6, 0.0 }
  0xb2   : > { %6380 = vst [vmem:[#allocation82_spill] sm:$0xff] %v3360_v29  ;;  %v756_v2 = vsel %vm286_vm0, %v3357_v31, 0.0  ;;  %v3436_v29 = vld [vmem:[%s2735_s22 + $0x3a8] sm:$0xff] }
  0xb3   : > { %348 = vst.msk [vmem:[%s2747_s15 + $0x1f8] sm:$0xff] %vm286_vm0, %v3281_v42  ;;  %v753_v42 = vsel %vm286_vm0, %v2965_v50, 0.0  ;;  %v3411_v26 = vadd.f32 %v737_v59, %v736_v4  ;;  %v3426_v50 = vld [vmem:[%s2735_s22 + $0x3f8] sm:$0xff]  ;;  %v3431_v4 = vadd.f32 %v744_v40, %v743_v1  ;;  %v750_v59 = vadd.f32 %v749_v44, %v748_v28  ;;  %v3450_v28 = vld [vmem:[%s2735_s22 + $0x220] sm:$0xff] }
  0xb4   : > { %6381 = vst [vmem:[#allocation83_spill] sm:$0xff] %v3372_v41  ;;  %v755_v49 = vadd.f32 %v754_v9, %v753_v42  ;;  %v758_v40 = vsel %vm286_vm0, %v3393_v37, 0.0  ;;  %v761_v44 = vsel %vm286_vm0, %v3339_v38, 0.0  ;;  %v763_v42 = vsel %vm286_vm0, %v3387_v51, 0.0 }
  0xb5   : > { %6382 = vst [vmem:[#allocation84_spill] sm:$0xff] %v3375_v25  ;;  %v681_v1 = vsel %vm286_vm0, %v3406_v19, 0.0  ;;  %v3457_v9 = vadd.f32 %v751_v48, %v750_v59  ;;  %v688_v48 = vsel %vm286_vm0, %v3423_v3, 0.0  ;;  %v3480_v59 = vld [vmem:[%s2735_s22 + $0x3b8] sm:$0xff] }
  0xb6   : > { %349 = vst.msk [vmem:[%s2747_s15 + $0x200] sm:$0xff] %vm286_vm0, %v3336_v6  ;;  %v674_v6 = vsel %vm286_vm0, %v3390_v27, 0.0 }
  0xb7   : > { %6383 = vst [vmem:[#allocation85_spill] sm:$0xff] %v3390_v27 }
  0xb8   : > { %6384 = vst [vmem:[#allocation86_spill] sm:$0xff] %v3393_v37 }
  0xb9   : > { %350 = vst.msk [vmem:[%s2747_s15 + $0x208] sm:$0xff] %vm286_vm0, %v3339_v38 }
  0xba   : > { %6385 = vst [vmem:[#allocation87_spill] sm:$0xff] %v3403_v36 }
  0xbb   : > { %6386 = vst [vmem:[#allocation88_spill] sm:$0xff] %v3406_v19  ;;  %v675_v19 = vadd.f32 %v674_v6, %v3139_v7  ;;  %v3516_v7 = vld [vmem:[%s2735_s22 + $0x248] sm:$0xff] }
  0xbc   : > { %351 = vst.msk [vmem:[%s2747_s15 + $0x220] sm:$0xff] %vm286_vm0, %v3372_v41  ;;  %v760_v41 = vsel %vm286_vm0, %v2975_v54, 0.0  ;;  %v757_v54 = vadd.f32 %v756_v2, %v755_v49  ;;  %v3474_v49 = vld [vmem:[%s2735_s22 + $0x230] sm:$0xff] }
  0xbd   : > { %6387 = vst [vmem:[#allocation89_spill] sm:$0xff] %v3420_v0  ;;  %v762_v27 = vadd.f32 %v761_v44, %v760_v41  ;;  %v765_v41 = vsel %vm286_vm0, %v3426_v50, 0.0  ;;  %v3477_v2 = vld [vmem:[%s2735_s22 + $0x3b0] sm:$0xff]  ;;  %v3492_v44 = vld [vmem:[%s2735_s22 + $0x238] sm:$0xff] }
  0xbe   : > { %6388 = vst [vmem:[#allocation90_spill] sm:$0xff] %v3423_v3  ;;  %v668_v3 = vadd.f32 %v667_v61, %v3132_v21  ;;  %v3513_v21 = vsel %vm772_vm1, %v3072_v11, %v3275_v45  ;;  %v709_v61 = vsel %vm286_vm0, %v3480_v59, 0.0  ;;  %v3534_v45 = vld [vmem:[%s2735_s22 + $0x250] sm:$0xff] }
  0xbf   : > { %352 = vst.msk [vmem:[%s2747_s15 + $0x228] sm:$0xff] %vm286_vm0, %v3375_v25  ;;  %v647_v25 = vadd.f32 %v3313_v46, %v2988_v57  ;;  %v695_v57 = vsel %vm286_vm0, %v3436_v29, 0.0  ;;  %v764_v46 = vadd.f32 %v763_v42, %v762_v27  ;;  %v3531_v11 = vmul.f32 %v3513_v21, %v3290_v56 }
  0xc0   : > { %353 = vst.msk [vmem:[%s2747_s15 + $0x230] sm:$0xff] %vm286_vm0, %v3403_v36  ;;  %v3460_v36 = vld [vmem:[%s2735_s22 + $0x228] sm:$0xff]  ;;  %v696_v6 = vadd.f32 %v695_v57, %v3202_v62  ;;  %v3544_v62 = vmul.f32 %v3513_v21, %v3293_v8  ;;  %v3565_v8 = vmul.f32 %v3513_v21, %v675_v19  ;;  %v710_v19 = vadd.f32 %v709_v61, %v3252_v10  ;;  %v6416_v61 = vld [vmem:[#allocation51_spill] sm:$0xff] }
  0xc1   : > { %354 = vst.msk [vmem:[%s2747_s15 + $0x238] sm:$0xff] %vm286_vm0, %v3420_v0  ;;  %v654_v0 = vadd.f32 %v3327_v30, %v3056_v53  ;;  %v661_v30 = vadd.f32 %v3349_v32, %v3083_v35  ;;  %v3489_v53 = vadd.f32 %v758_v40, %v757_v54  ;;  %v682_v32 = vadd.f32 %v681_v1, %v3156_v63  ;;  %v3501_v35 = vld [vmem:[%s2735_s22 + $0x240] sm:$0xff]  ;;  %v3537_v40 = vld [vmem:[%s2735_s22 + $0x3c8] sm:$0xff] }
  0xc2   : > { %355 = vst.msk [vmem:[%s2747_s15 + $0x240] sm:$0xff] %vm286_vm0, %v3450_v28  ;;  %v689_v54 = vadd.f32 %v688_v48, %v3176_v5  ;;  %v3507_v27 = vadd.f32 %v765_v41, %v764_v46  ;;  %v3519_v63 = vld [vmem:[%s2735_s22 + $0x3c0] sm:$0xff]  ;;  %v702_v5 = vsel %vm286_vm0, %v3477_v2, 0.0  ;;  %v3547_v42 = vmul.f32 %v3513_v21, %v647_v25  ;;  %v3556_v48 = vld [vmem:[%s2735_s22 + $0x258] sm:$0xff] }
  0xc3   : > { %356 = vst.msk [vmem:[%s2747_s15 + $0x248] sm:$0xff] %vm286_vm0, %v3460_v36  ;;  %v3550_v1 = vmul.f32 %v3513_v21, %v654_v0  ;;  %v3553_v56 = vmul.f32 %v3513_v21, %v661_v30  ;;  %v3562_v41 = vmul.f32 %v3513_v21, %v668_v3  ;;  %v3568_v25 = vmul.f32 %v3513_v21, %v682_v32 }
  0xc4   : > { %357 = vst.msk [vmem:[%s2747_s15 + $0x250] sm:$0xff] %vm286_vm0, %v3474_v49  ;;  %v703_v0 = vadd.f32 %v702_v5, %v3227_v55  ;;  %v716_v30 = vsel %vm286_vm0, %v3519_v63, 0.0  ;;  %v3577_v57 = vmul.f32 %v3513_v21, %v689_v54  ;;  %v723_v3 = vsel %vm286_vm0, %v3537_v40, 0.0 }
  0xc5   : > { %6389 = vst [vmem:[#allocation91_spill] sm:$0xff] %v3501_v35  ;;  %v3586_v46 = vmul.f32 %v3513_v21, %v696_v6  ;;  %v3590_v55 = vsub.f32 %v2813_v12, %v3531_v11  ;;  %v3597_v32 = vsub.f32 %v2819_v13, %v3544_v62  ;;  %v3601_v10 = vsub.f32 %v2825_v14, %v3547_v42  ;;  %v3627_v6 = vld [vmem:[%s2735_s22 + $0x3d0] sm:$0xff] }
  0xc6   : > { %358 = vst.msk [vmem:[%s2747_s15 + $0x258] sm:$0xff] %vm286_vm0, %v3492_v44  ;;  %v3605_v54 = vsub.f32 %v2831_v15, %v3550_v1  ;;  %v3609_v12 = vsub.f32 %v2837_v16, %v3553_v56  ;;  %v3616_v13 = vsub.f32 %v2843_v17, %v3562_v41  ;;  %v3620_v14 = vsub.f32 %v2849_v18, %v3565_v8 }
  0xc7   : > { %6390 = vst [vmem:[#allocation92_spill] sm:$0xff] %v3513_v21  ;;  %v3624_v15 = vsub.f32 %v2858_v20, %v3568_v25  ;;  %v717_v16 = vadd.f32 %v716_v30, %v3270_v58  ;;  %v3634_v5 = vmul.f32 %v3513_v21, %v703_v0  ;;  %v3638_v17 = vsub.f32 %v2867_v22, %v3577_v57  ;;  %v6418_v0 = vld [vmem:[#allocation23_spill] sm:$0xff] }
  0xc8   : > { %6391 = vst [vmem:[#allocation93_spill] sm:$0xff] %v3516_v7  ;;  %v724_v18 = vadd.f32 %v723_v3, %v3315_v47  ;;  %v3648_v20 = vmul.f32 %v3513_v21, %v710_v19  ;;  %v3652_v58 = vsub.f32 %v2873_v23, %v3586_v46  ;;  %v730_v22 = vsel %vm286_vm0, %v3627_v6, 0.0  ;;  %v6420_v23 = vld [vmem:[#allocation21_spill] sm:$0xff]  ;;  %v6422_v3 = vld [vmem:[#allocation28_spill] sm:$0xff] }
  0xc9   : > { %359 = vst.msk [vmem:[%s2747_s15 + $0x260] sm:$0xff] %vm286_vm0, %v3501_v35  ;;  %v3663_v47 = vmul.f32 %v3513_v21, %v717_v16  ;;  %v3667_v30 = vsub.f32 %v6418_v0, %v3634_v5  ;;  %v3671_v19 = vsub.f32 %v6420_v23, %v3544_v62 }
  0xca   : > { %6392 = vst [vmem:[#allocation94_spill] sm:$0xff] %v3531_v11  ;;  %v3681_v16 = vmul.f32 %v3513_v21, %v724_v18 }
  0xcb   : > { %6393 = vst [vmem:[#allocation95_spill] sm:$0xff] %v3534_v45 }
  0xcc   : > { %360 = vst.msk [vmem:[%s2747_s15 + $0x268] sm:$0xff] %vm286_vm0, %v3516_v7 }
  0xcd   : > { %6394 = vst [vmem:[#allocation96_spill] sm:$0xff] %v3544_v62 }
  0xce   : > { %6395 = vst [vmem:[#allocation97_spill] sm:$0xff] %v3547_v42 }
  0xcf   : > { %6396 = vst [vmem:[#allocation98_spill] sm:$0xff] %v3550_v1 }
  0xd0   : > { %6397 = vst [vmem:[#allocation99_spill] sm:$0xff] %v3553_v56 }
  0xd1   : > { %6398 = vst [vmem:[#allocation100_spill] sm:$0xff] %v3556_v48 }
  0xd2   : > { %361 = vst.msk [vmem:[%s2747_s15 + $0x270] sm:$0xff] %vm286_vm0, %v3534_v45 }
  0xd3   : > { %6399 = vst [vmem:[#allocation101_spill] sm:$0xff] %v3562_v41 }
  0xd4   : > { %6400 = vst [vmem:[#allocation102_spill] sm:$0xff] %v3565_v8 }
  0xd5   : > { %6401 = vst [vmem:[#allocation103_spill] sm:$0xff] %v3568_v25 }
  0xd6   : > { %362 = vst.msk [vmem:[%s2747_s15 + $0x278] sm:$0xff] %vm286_vm0, %v3556_v48 }
  0xd7   : > { %6402 = vst [vmem:[#allocation104_spill] sm:$0xff] %v3577_v57 }
  0xd8   : > { %363 = vst.msk [vmem:[%s2747_s15 + $0x280] sm:$0xff] %vm286_vm0, %v2908_v33 }
  0xd9   : > { %6403 = vst [vmem:[#allocation105_spill] sm:$0xff] %v3586_v46 }
  0xda   : > { %6404 = vst [vmem:[#allocation106_spill] sm:$0xff] %v3590_v55  ;;  %v6518_v55 = vld [vmem:[#allocation17_spill] sm:$0xff] }
  0xdb   : > { %364 = vst.msk [vmem:[%s2747_s15 + $0x288] sm:$0xff] %vm286_vm0, %v2911_v34 }
  0xdc   : > { %6405 = vst [vmem:[#allocation107_spill] sm:$0xff] %v3597_v32 }
  0xdd   : > { %6406 = vst [vmem:[#allocation108_spill] sm:$0xff] %v3601_v10 }
  0xde   : > { %6407 = vst [vmem:[#allocation109_spill] sm:$0xff] %v3605_v54 }
  0xdf   : > { %6408 = vst [vmem:[#allocation110_spill] sm:$0xff] %v3609_v12  ;;  %v6442_v12 = vld [vmem:[#allocation81_spill] sm:$0xff] }
  0xe0   : > { %365 = vst.msk [vmem:[%s2747_s15 + $0x290] sm:$0xff] %vm286_vm0, %v2929_v39  ;;  %v731_v54 = vadd.f32 %v730_v22, %v6442_v12  ;;  %v6450_v12 = vld [vmem:[#allocation26_spill] sm:$0xff] }
  0xe1   : > { %6409 = vst [vmem:[#allocation111_spill] sm:$0xff] %v3616_v13  ;;  %v6435_v13 = vld [vmem:[#allocation47_spill] sm:$0xff]  ;;  %v3737_v22 = vsub.f32 %v6450_v12, %v3681_v16  ;;  %v6458_v12 = vld [vmem:[#allocation70_spill] sm:$0xff] }
  0xe2   : > { %6410 = vst [vmem:[#allocation112_spill] sm:$0xff] %v3620_v14  ;;  %v6433_v14 = vld [vmem:[#allocation24_spill] sm:$0xff] }
  0xe3   : > { %6411 = vst [vmem:[#allocation113_spill] sm:$0xff] %v3624_v15  ;;  %v6426_v15 = vld [vmem:[#allocation31_spill] sm:$0xff]  ;;  %v3700_v18 = vsub.f32 %v6433_v14, %v3648_v20 }
  0xe4   : > { %366 = vst.msk [vmem:[%s2747_s15 + $0x298] sm:$0xff] %vm286_vm0, %v3004_v24  ;;  %v3685_v0 = vsub.f32 %v6426_v15, %v3550_v1  ;;  %v3704_v15 = vsub.f32 %v6435_v13, %v3565_v8  ;;  %v6443_v14 = vld [vmem:[#allocation59_spill] sm:$0xff]  ;;  %v6444_v13 = vld [vmem:[#allocation25_spill] sm:$0xff] }
  0xe5   : > { %6412 = vst [vmem:[#allocation114_spill] sm:$0xff] %v3634_v5 }
  0xe6   : > { %6413 = vst [vmem:[#allocation115_spill] sm:$0xff] %v3638_v17  ;;  %v6424_v17 = vld [vmem:[#allocation53_spill] sm:$0xff] }
  0xe7   : > { %367 = vst.msk [vmem:[%s2747_s15 + $0x2a0] sm:$0xff] %vm286_vm0, %v3033_v43 }
  0xe8   : > { %368 = vst.msk [vmem:[%s2747_s15 + $0x2a8] sm:$0xff] %vm286_vm0, %v3051_v52 }
  0xe9   : > { %6414 = vst [vmem:[#allocation116_spill] sm:$0xff] %v3648_v20 }
  0xea   : > { %6415 = vst [vmem:[#allocation117_spill] sm:$0xff] %v3652_v58  ;;  %v3675_v58 = vsub.f32 %v6422_v3, %v3547_v42 }
  0xeb   : > { %369 = vst.msk [vmem:[%s2747_s15 + $0x2b0] sm:$0xff] %vm286_vm0, %v3065_v60 }
  0xec   : > { %370 = vst.msk [vmem:[%s2747_s15 + $0x2b8] sm:$0xff] %vm286_vm0, %v6416_v61 }
  0xed   : > { %6417 = vst [vmem:[#allocation51_spill] sm:$0xff] %v3663_v47 }
  0xee   : > { %6419 = vst [vmem:[#allocation23_spill] sm:$0xff] %v3667_v30  ;;  %v6428_v30 = vld [vmem:[#allocation33_spill] sm:$0xff] }
  0xef   : > { %6421 = vst [vmem:[#allocation21_spill] sm:$0xff] %v3671_v19  ;;  %v3689_v23 = vsub.f32 %v6428_v30, %v3553_v56  ;;  %v6430_v19 = vld [vmem:[#allocation45_spill] sm:$0xff] }
  0xf0   : > { %6423 = vst [vmem:[#allocation28_spill] sm:$0xff] %v3675_v58  ;;  %v3693_v3 = vsub.f32 %v6430_v19, %v3562_v41  ;;  %v6432_v58 = vld [vmem:[#allocation55_spill] sm:$0xff] }
  0xf1   : > { %371 = vst.msk [vmem:[%s2747_s15 + $0x2c0] sm:$0xff] %vm286_vm0, %v6424_v17 }
  0xf2   : > { %6425 = vst [vmem:[#allocation53_spill] sm:$0xff] %v3681_v16 }
  0xf3   : > { %6427 = vst [vmem:[#allocation31_spill] sm:$0xff] %v3685_v0  ;;  %v6437_v0 = vld [vmem:[#allocation49_spill] sm:$0xff] }
  0xf4   : > { %6429 = vst [vmem:[#allocation33_spill] sm:$0xff] %v3689_v23  ;;  %v3708_v30 = vsub.f32 %v6437_v0, %v3568_v25  ;;  %v6439_v23 = vld [vmem:[#allocation52_spill] sm:$0xff]  ;;  %v6446_v0 = vld [vmem:[#allocation54_spill] sm:$0xff] }
  0xf5   : > { %6431 = vst [vmem:[#allocation45_spill] sm:$0xff] %v3693_v3  ;;  %v3712_v19 = vsub.f32 %v6439_v23, %v3577_v57  ;;  %v6441_v3 = vld [vmem:[#allocation57_spill] sm:$0xff] }
  0xf6   : > { %372 = vst.msk [vmem:[%s2747_s15 + $0x2c8] sm:$0xff] %vm286_vm0, %v6432_v58  ;;  %v6449_v23 = vld [vmem:[#allocation65_spill] sm:$0xff] }
  0xf7   : > { %6434 = vst [vmem:[#allocation55_spill] sm:$0xff] %v3700_v18  ;;  %v6448_v18 = vld [vmem:[#allocation62_spill] sm:$0xff] }
  0xf8   : > { %6436 = vst [vmem:[#allocation24_spill] sm:$0xff] %v3704_v15  ;;  %v3723_v15 = vsub.f32 %v6444_v13, %v3663_v47  ;;  %v6454_v13 = vld [vmem:[#allocation67_spill] sm:$0xff] }
  0xf9   : > { %6438 = vst [vmem:[#allocation47_spill] sm:$0xff] %v3708_v30  ;;  %v3727_v30 = vsub.f32 %v6446_v0, %v3586_v46  ;;  %v3747_v0 = vmul.f32 %v3513_v21, %v731_v54 }
  0xfa   : > { %6440 = vst [vmem:[#allocation49_spill] sm:$0xff] %v3712_v19  ;;  %v6452_v19 = vld [vmem:[#allocation56_spill] sm:$0xff] }
  0xfb   : > { %373 = vst.msk [vmem:[%s2747_s15 + $0x2d0] sm:$0xff] %vm286_vm0, %v6441_v3  ;;  %v3741_v10 = vsub.f32 %v6452_v19, %v3634_v5  ;;  %v3762_v19 = vmul.f32 %v3513_v21, %v3431_v4  ;;  %v3781_v4 = vmul.f32 %v3513_v21, %v3457_v9  ;;  %v3800_v9 = vmul.f32 %v3513_v21, %v3489_v53 }
  0xfc   : > { %374 = vst.msk [vmem:[%s2747_s15 + $0x2d8] sm:$0xff] %vm286_vm0, %v6443_v14  ;;  %v3819_v53 = vmul.f32 %v3513_v21, %v3507_v27  ;;  %v3840_v27 = vld [vmem:[%s2735_s22 + $0x308] sm:$0xff] }
  0xfd   : > { %6445 = vst [vmem:[#allocation52_spill] sm:$0xff] %v3723_v15  ;;  %v3755_v15 = vsub.f32 %v2908_v33, %v3531_v11  ;;  %v3774_v33 = vsub.f32 %v2929_v39, %v3547_v42  ;;  %v3793_v39 = vsub.f32 %v3051_v52, %v3562_v41  ;;  %v3812_v52 = vsub.f32 %v6416_v61, %v3568_v25  ;;  %v6479_v61 = vld [vmem:[#allocation64_spill] sm:$0xff]  ;;  %v6527_v11 = vld [vmem:[#allocation43_spill] sm:$0xff] }
  0xfe   : > { %6447 = vst [vmem:[#allocation57_spill] sm:$0xff] %v3727_v30  ;;  %v3751_v30 = vmul.f32 %v3513_v21, %v3411_v26  ;;  %v3770_v26 = vsub.f32 %v2911_v34, %v3544_v62  ;;  %v3789_v34 = vsub.f32 %v3033_v43, %v3553_v56  ;;  %v3808_v43 = vsub.f32 %v3065_v60, %v3565_v8  ;;  %v6522_v8 = vld [vmem:[#allocation39_spill] sm:$0xff]  ;;  %v3978_v56 = vld [vmem:[%s2735_s22 + $0x348] sm:$0xff] }
  0xff   : > { %375 = vst.msk [vmem:[%s2747_s15 + $0x2e0] sm:$0xff] %vm286_vm0, %v6448_v18  ;;  %v3827_v60 = vsub.f32 %v6432_v58, %v3586_v46  ;;  %v565_v41 = vsel %vm286_vm0, %v6522_v8, 0.0  ;;  %v6526_v62 = vld [vmem:[#allocation42_spill] sm:$0xff]  ;;  %v6529_v8 = vld [vmem:[#allocation44_spill] sm:$0xff] }
 0x100   : > { %376 = vst.msk [vmem:[%s2747_s15 + $0x2e8] sm:$0xff] %vm286_vm0, %v6449_v23 }
 0x101   : > { %6451 = vst [vmem:[#allocation81_spill] sm:$0xff] %v3737_v22  ;;  %v6517_v22 = vld [vmem:[#allocation16_spill] sm:$0xff] }
 0x102   : > { %6453 = vst [vmem:[#allocation59_spill] sm:$0xff] %v3741_v10  ;;  %v6460_v10 = vld [vmem:[#allocation58_spill] sm:$0xff]  ;;  %v592_v32 = vsel %vm286_vm0, %v6517_v22, 0.0 }
 0x103   : > { %377 = vst.msk [vmem:[%s2747_s15 + $0x2f0] sm:$0xff] %vm286_vm0, %v6454_v13  ;;  %v3766_v54 = vsub.f32 %v6460_v10, %v3648_v20  ;;  %v3785_v10 = vsub.f32 %v3004_v24, %v3550_v1  ;;  %v6524_v1 = vld [vmem:[#allocation40_spill] sm:$0xff]  ;;  %v6531_v22 = vld [vmem:[#allocation46_spill] sm:$0xff] }
 0x104   : > { %6455 = vst [vmem:[#allocation25_spill] sm:$0xff] %v3747_v0  ;;  %v572_v42 = vsel %vm286_vm0, %v6524_v1, 0.0  ;;  %v6530_v1 = vld [vmem:[#allocation18_spill] sm:$0xff] }
 0x105   : > { %6456 = vst [vmem:[#allocation54_spill] sm:$0xff] %v3751_v30 }
 0x106   : > { %6457 = vst [vmem:[#allocation62_spill] sm:$0xff] %v3755_v15  ;;  %v6464_v15 = vld [vmem:[#allocation75_spill] sm:$0xff] }
 0x107   : > { %378 = vst.msk [vmem:[%s2747_s15 + $0x2f8] sm:$0xff] %vm286_vm0, %v6458_v12 }
 0x108   : > { %6459 = vst [vmem:[#allocation65_spill] sm:$0xff] %v3762_v19 }
 0x109   : > { %6461 = vst [vmem:[#allocation26_spill] sm:$0xff] %v3766_v54 }
 0x10a   : > { %6462 = vst [vmem:[#allocation56_spill] sm:$0xff] %v3770_v26  ;;  %v6471_v26 = vld [vmem:[#allocation60_spill] sm:$0xff] }
 0x10b   : > { %6463 = vst [vmem:[#allocation67_spill] sm:$0xff] %v3774_v33  ;;  %v6469_v33 = vld [vmem:[#allocation76_spill] sm:$0xff]  ;;  %v3804_v24 = vsub.f32 %v6471_v26, %v3663_v47  ;;  %v3823_v26 = vsub.f32 %v6424_v17, %v3577_v57  ;;  %v6482_v17 = vld [vmem:[#allocation66_spill] sm:$0xff] }
 0x10c   : > { %379 = vst.msk [vmem:[%s2747_s15 + $0x300] sm:$0xff] %vm286_vm0, %v6464_v15  ;;  %v3847_v58 = vsub.f32 %v6482_v17, %v3747_v0  ;;  %v6491_v17 = vld [vmem:[#allocation79_spill] sm:$0xff]  ;;  %v6521_v57 = vld [vmem:[#allocation38_spill] sm:$0xff] }
 0x10d   : > { %6465 = vst [vmem:[#allocation70_spill] sm:$0xff] %v3781_v4  ;;  %v558_v25 = vsel %vm286_vm0, %v6521_v57, 0.0  ;;  %v593_v57 = vsel %vm286_vm0, %v6527_v11, 0.0  ;;  %v6534_v11 = vld [vmem:[#allocation48_spill] sm:$0xff] }
 0x10e   : > { %6466 = vst [vmem:[#allocation58_spill] sm:$0xff] %v3785_v10  ;;  %v6489_v10 = vld [vmem:[#allocation73_spill] sm:$0xff] }
 0x10f   : > { %6467 = vst [vmem:[#allocation75_spill] sm:$0xff] %v3789_v34 }
 0x110   : > { %6468 = vst [vmem:[#allocation118_spill] sm:$0xff] %v3793_v39  ;;  %v6486_v39 = vld [vmem:[#allocation72_spill] sm:$0xff] }
 0x111   : > { %380 = vst.msk [vmem:[%s2747_s15 + $0x308] sm:$0xff] %vm286_vm0, %v6469_v33  ;;  %v3855_v34 = vsub.f32 %v6486_v39, %v3762_v19  ;;  %v3877_v39 = vsub.f32 %v6441_v3, %v3634_v5  ;;  %v3899_v3 = vsub.f32 %v6454_v13, %v3747_v0  ;;  %v3921_v13 = vsub.f32 %v3357_v31, %v3800_v9  ;;  %v6520_v5 = vld [vmem:[#allocation37_spill] sm:$0xff] }
 0x112   : > { %6470 = vst [vmem:[#allocation76_spill] sm:$0xff] %v3800_v9  ;;  %v551_v46 = vsel %vm286_vm0, %v6520_v5, 0.0  ;;  %v586_v0 = vsel %vm286_vm0, %v6526_v62, 0.0  ;;  %v3992_v5 = vld [vmem:[%s2735_s22 + $0x350] sm:$0xff] }
 0x113   : > { %6472 = vst [vmem:[#allocation60_spill] sm:$0xff] %v3804_v24  ;;  %v6516_v24 = vld [vmem:[#allocation15_spill] sm:$0xff] }
 0x114   : > { %6473 = vst [vmem:[#allocation119_spill] sm:$0xff] %v3808_v43  ;;  %v3830_v43 = vld [vmem:[%s2735_s22 + $0x300] sm:$0xff]  ;;  %v585_v54 = vsel %vm286_vm0, %v6516_v24, 0.0  ;;  %v6532_v24 = vld [vmem:[#allocation19_spill] sm:$0xff] }
 0x115   : > { %6474 = vst [vmem:[#allocation120_spill] sm:$0xff] %v3812_v52  ;;  %v3837_v52 = vsub.f32 %v6479_v61, %v3681_v16  ;;  %v3858_v61 = vld [vmem:[%s2735_s22 + $0x310] sm:$0xff]  ;;  %v613_v62 = vsel %vm286_vm0, %v6532_v24, 0.0  ;;  %v6539_v24 = vld [vmem:[#allocation78_spill] sm:$0xff] }
 0x116   : > { %381 = vst.msk [vmem:[%s2747_s15 + $0x310] sm:$0xff] %vm286_vm0, %v3357_v31  ;;  %v6510_v31 = vld [vmem:[#allocation10_spill] sm:$0xff] }
 0x117   : > { %6475 = vst [vmem:[#allocation121_spill] sm:$0xff] %v3819_v53 }
 0x118   : > { %6476 = vst [vmem:[#allocation122_spill] sm:$0xff] %v3823_v26 }
 0x119   : > { %6477 = vst [vmem:[#allocation123_spill] sm:$0xff] %v3827_v60  ;;  %v6484_v60 = vld [vmem:[#allocation69_spill] sm:$0xff] }
 0x11a   : > { %6478 = vst [vmem:[#allocation124_spill] sm:$0xff] %v3830_v43  ;;  %v3851_v26 = vsub.f32 %v6484_v60, %v3751_v30  ;;  %v3873_v60 = vsub.f32 %v3339_v38, %v3819_v53  ;;  %v3895_v38 = vsub.f32 %v6449_v23, %v3681_v16  ;;  %v3917_v23 = vsub.f32 %v6469_v33, %v3781_v4 }
 0x11b   : > { %382 = vst.msk [vmem:[%s2747_s15 + $0x318] sm:$0xff] %vm286_vm0, %v3387_v51  ;;  %v3935_v33 = vsub.f32 %v3387_v51, %v3819_v53  ;;  %v599_v16 = vsel %vm286_vm0, %v6518_v55, 0.0  ;;  %v606_v55 = vsel %vm286_vm0, %v6530_v1, 0.0 }
 0x11c   : > { %6480 = vst [vmem:[#allocation64_spill] sm:$0xff] %v3837_v52  ;;  %v3865_v52 = vsub.f32 %v6489_v10, %v3781_v4  ;;  %v3887_v10 = vsub.f32 %v6443_v14, %v3648_v20  ;;  %v3909_v14 = vsub.f32 %v6458_v12, %v3751_v30  ;;  %v6506_v12 = vld [vmem:[#allocation9_spill] sm:$0xff] }
 0x11d   : > { %6481 = vst [vmem:[#allocation125_spill] sm:$0xff] %v3840_v27 }
 0x11e   : > { %383 = vst.msk [vmem:[%s2747_s15 + $0x330] sm:$0xff] %vm286_vm0, %v3830_v43 }
 0x11f   : > { %6483 = vst [vmem:[#allocation66_spill] sm:$0xff] %v3847_v58  ;;  %v3869_v58 = vsub.f32 %v6491_v17, %v3800_v9  ;;  %v3891_v17 = vsub.f32 %v6448_v18, %v3663_v47  ;;  %v3913_v18 = vsub.f32 %v6464_v15, %v3762_v19  ;;  %v3966_v47 = vld [vmem:[%s2735_s22 + $0x340] sm:$0xff] }
 0x120   : > { %6485 = vst [vmem:[#allocation69_spill] sm:$0xff] %v3851_v26 }
 0x121   : > { %6487 = vst [vmem:[#allocation72_spill] sm:$0xff] %v3855_v34  ;;  %v3880_v34 = vld [vmem:[%s2735_s22 + $0x318] sm:$0xff] }
 0x122   : > { %6488 = vst [vmem:[#allocation126_spill] sm:$0xff] %v3858_v61 }
 0x123   : > { %384 = vst.msk [vmem:[%s2747_s15 + $0x338] sm:$0xff] %vm286_vm0, %v3840_v27 }
 0x124   : > { %6490 = vst [vmem:[#allocation73_spill] sm:$0xff] %v3865_v52  ;;  %v6515_v52 = vld [vmem:[#allocation14_spill] sm:$0xff] }
 0x125   : > { %6492 = vst [vmem:[#allocation79_spill] sm:$0xff] %v3869_v58  ;;  %v6513_v58 = vld [vmem:[#allocation13_spill] sm:$0xff]  ;;  %v578_v26 = vsel %vm286_vm0, %v6515_v52, 0.0  ;;  %v4006_v52 = vld [vmem:[%s2735_s22 + $0x358] sm:$0xff] }
 0x126   : > { %6493 = vst [vmem:[#allocation127_spill] sm:$0xff] %v3873_v60  ;;  %v571_v51 = vsel %vm286_vm0, %v6513_v58, 0.0  ;;  %v614_v58 = vsel %vm286_vm0, %v6534_v11, 0.0  ;;  %v6541_v11 = vld [vmem:[#allocation82_spill] sm:$0xff] }
 0x127   : > { %6494 = vst [vmem:[#allocation128_spill] sm:$0xff] %v3877_v39  ;;  %v3902_v39 = vld [vmem:[%s2735_s22 + $0x320] sm:$0xff]  ;;  %v4030_v21 = vsub.f32 %v6541_v11, %v3781_v4  ;;  %v587_v4 = vadd.f32 %v586_v0, %v585_v54  ;;  %v6551_v0 = vld [vmem:[#allocation87_spill] sm:$0xff]  ;;  %v574_v54 = vsel %vm286_vm0, %v3450_v28, 0.0 }
 0x128   : > { %6495 = vst [vmem:[#allocation129_spill] sm:$0xff] %v3880_v34 }
 0x129   : > { %385 = vst.msk [vmem:[%s2747_s15 + $0x340] sm:$0xff] %vm286_vm0, %v3858_v61 }
 0x12a   : > { %6496 = vst [vmem:[#allocation130_spill] sm:$0xff] %v3887_v10  ;;  %v6512_v10 = vld [vmem:[#allocation12_spill] sm:$0xff] }
 0x12b   : > { %6497 = vst [vmem:[#allocation131_spill] sm:$0xff] %v3891_v17  ;;  %v564_v60 = vsel %vm286_vm0, %v6512_v10, 0.0  ;;  %v6535_v10 = vld [vmem:[#allocation20_spill] sm:$0xff] }
 0x12c   : > { %6498 = vst [vmem:[#allocation132_spill] sm:$0xff] %v3895_v38  ;;  %v6507_v38 = vld [vmem:[#allocation36_spill] sm:$0xff] }
 0x12d   : > { %6499 = vst [vmem:[#allocation133_spill] sm:$0xff] %v3899_v3  ;;  %v3924_v3 = vld [vmem:[%s2735_s22 + $0x328] sm:$0xff]  ;;  %v544_v15 = vsel %vm286_vm0, %v6507_v38, 0.0  ;;  %v600_v38 = vsel %vm286_vm0, %v6529_v8, 0.0  ;;  %v620_v8 = vsel %vm286_vm0, %v6535_v10, 0.0  ;;  %v4034_v10 = vsub.f32 %v3393_v37, %v3800_v9  ;;  %v6547_v37 = vld [vmem:[#allocation68_spill] sm:$0xff] }
 0x12e   : > { %6500 = vst [vmem:[#allocation134_spill] sm:$0xff] %v3902_v39  ;;  %v594_v9 = vadd.f32 %v593_v57, %v592_v32  ;;  %v560_v57 = vsel %vm286_vm0, %v6551_v0, 0.0  ;;  %v6552_v32 = vld [vmem:[#allocation89_spill] sm:$0xff] }
 0x12f   : > { %386 = vst.msk [vmem:[%s2747_s15 + $0x348] sm:$0xff] %vm286_vm0, %v3880_v34 }
 0x130   : > { %6501 = vst [vmem:[#allocation135_spill] sm:$0xff] %v3909_v14  ;;  %v543_v14 = vsel %vm286_vm0, %v6506_v12, 0.0  ;;  %v4026_v12 = vsub.f32 %v6539_v24, %v3762_v19  ;;  %v566_v19 = vadd.f32 %v565_v41, %v564_v60  ;;  %v6546_v24 = vld [vmem:[#allocation63_spill] sm:$0xff]  ;;  %v6553_v60 = vld [vmem:[#allocation74_spill] sm:$0xff] }
 0x131   : > { %6502 = vst [vmem:[#allocation136_spill] sm:$0xff] %v3913_v18  ;;  %v6511_v18 = vld [vmem:[#allocation11_spill] sm:$0xff]  ;;  %v545_v20 = vadd.f32 %v544_v15, %v543_v14  ;;  %v6525_v14 = vld [vmem:[#allocation41_spill] sm:$0xff] }
 0x132   : > { %6503 = vst [vmem:[#allocation137_spill] sm:$0xff] %v3917_v23  ;;  %v3938_v23 = vld [vmem:[%s2735_s22 + $0x330] sm:$0xff]  ;;  %v557_v17 = vsel %vm286_vm0, %v6511_v18, 0.0  ;;  %v579_v15 = vsel %vm286_vm0, %v6525_v14, 0.0  ;;  %v607_v14 = vsel %vm286_vm0, %v6531_v22, 0.0  ;;  %v6536_v18 = vld [vmem:[#allocation50_spill] sm:$0xff] }
 0x133   : > { %6504 = vst [vmem:[#allocation138_spill] sm:$0xff] %v3921_v13  ;;  %v550_v13 = vsel %vm286_vm0, %v6510_v31, 0.0  ;;  %v621_v1 = vsel %vm286_vm0, %v6536_v18, 0.0  ;;  %v6537_v22 = vld [vmem:[#allocation77_spill] sm:$0xff]  ;;  %v6549_v41 = vld [vmem:[#allocation71_spill] sm:$0xff] }
 0x134   : > { %6505 = vst [vmem:[#allocation139_spill] sm:$0xff] %v3924_v3  ;;  %v4019_v31 = vsub.f32 %v6537_v22, %v3751_v30  ;;  %v4038_v30 = vsub.f32 %v3426_v50, %v3819_v53  ;;  %v552_v18 = vadd.f32 %v551_v46, %v550_v13  ;;  %v559_v22 = vadd.f32 %v558_v25, %v557_v17 }
 0x135   : > { %387 = vst.msk [vmem:[%s2747_s15 + $0x350] sm:$0xff] %vm286_vm0, %v3902_v39  ;;  %v615_v46 = vadd.f32 %v614_v58, %v613_v62  ;;  %v622_v25 = vadd.f32 %v621_v1, %v620_v8  ;;  %v581_v62 = vsel %vm286_vm0, %v3460_v36, 0.0  ;;  %v588_v1 = vsel %vm286_vm0, %v3474_v49, 0.0  ;;  %v6554_v58 = vld [vmem:[#allocation80_spill] sm:$0xff] }
 0x136   : > { %6508 = vst [vmem:[#allocation140_spill] sm:$0xff] %v3935_v33  ;;  %v3952_v33 = vld [vmem:[%s2735_s22 + $0x338] sm:$0xff]  ;;  %v595_v8 = vsel %vm286_vm0, %v3492_v44, 0.0  ;;  %v616_v13 = vsel %vm286_vm0, %v3534_v45, 0.0  ;;  %v6557_v45 = vld [vmem:[#allocation90_spill] sm:$0xff] }
 0x137   : > { %6509 = vst [vmem:[#allocation141_spill] sm:$0xff] %v3938_v23 }
 0x138   : > { %388 = vst.msk [vmem:[%s2747_s15 + $0x358] sm:$0xff] %vm286_vm0, %v3924_v3 }
 0x139   : > { %6514 = vst [vmem:[#allocation142_spill] sm:$0xff] %v3952_v33 }
 0x13a   : > { %389 = vst.msk [vmem:[%s2747_s15 + $0x360] sm:$0xff] %vm286_vm0, %v3938_v23 }
 0x13b   : > { %6519 = vst [vmem:[#allocation143_spill] sm:$0xff] %v3966_v47 }
 0x13c   : > { %390 = vst.msk [vmem:[%s2747_s15 + $0x368] sm:$0xff] %vm286_vm0, %v3952_v33 }
 0x13d   : > { %6523 = vst [vmem:[#allocation144_spill] sm:$0xff] %v3978_v56 }
 0x13e   : > { %391 = vst.msk [vmem:[%s2747_s15 + $0x370] sm:$0xff] %vm286_vm0, %v3966_v47 }
 0x13f   : > { %6528 = vst [vmem:[#allocation145_spill] sm:$0xff] %v3992_v5 }
 0x140   : > { %392 = vst.msk [vmem:[%s2747_s15 + $0x378] sm:$0xff] %vm286_vm0, %v3978_v56 }
 0x141   : > { %6533 = vst [vmem:[#allocation146_spill] sm:$0xff] %v4006_v52 }
 0x142   : > { %393 = vst.msk [vmem:[%s2747_s15 + $0x380] sm:$0xff] %vm286_vm0, %v3992_v5 }
 0x143   : > { %6538 = vst [vmem:[#allocation147_spill] sm:$0xff] %v4019_v31  ;;  %v6545_v31 = vld [vmem:[#allocation61_spill] sm:$0xff] }
 0x144   : > { %394 = vst.msk [vmem:[%s2747_s15 + $0x388] sm:$0xff] %vm286_vm0, %v4006_v52 }
 0x145   : > { %6540 = vst [vmem:[#allocation148_spill] sm:$0xff] %v4026_v12  ;;  %v573_v12 = vadd.f32 %v572_v42, %v571_v51  ;;  %v6550_v42 = vld [vmem:[#allocation84_spill] sm:$0xff]  ;;  %v623_v51 = vsel %vm286_vm0, %v3556_v48, 0.0  ;;  %v548_v48 = vsel %vm286_vm0, %v3830_v43, 0.0  ;;  %v6706_v43 = vld [vmem:[#allocation79_spill] sm:$0xff] }
 0x146   : > { %6542 = vst [vmem:[#allocation82_spill] sm:$0xff] %v4030_v21  ;;  %v580_v21 = vadd.f32 %v579_v15, %v578_v26  ;;  %v553_v26 = vsel %vm286_vm0, %v6550_v42, 0.0 }
 0x147   : > { %6543 = vst [vmem:[#allocation149_spill] sm:$0xff] %v4034_v10  ;;  %v601_v10 = vadd.f32 %v600_v38, %v599_v16  ;;  %v567_v16 = vsel %vm286_vm0, %v6552_v32, 0.0  ;;  %v609_v38 = vsel %vm286_vm0, %v3516_v7, 0.0  ;;  %v554_v15 = vadd.f32 %v553_v26, %v552_v18 }
 0x148   : > { %6544 = vst [vmem:[#allocation150_spill] sm:$0xff] %v4038_v30  ;;  %v6548_v30 = vld [vmem:[#allocation83_spill] sm:$0xff]  ;;  %v596_v7 = vadd.f32 %v595_v8, %v594_v9  ;;  %v617_v18 = vadd.f32 %v616_v13, %v615_v46  ;;  %v576_v9 = vsel %vm286_vm0, %v3902_v39, 0.0  ;;  %v604_v46 = vsel %vm286_vm0, %v3966_v47, 0.0 }
 0x149   : > { %395 = vst.msk [vmem:[%s2747_s15 + $0x390] sm:$0xff] %vm286_vm0, %v6545_v31  ;;  %v546_v53 = vsel %vm286_vm0, %v6548_v30, 0.0  ;;  %v608_v31 = vadd.f32 %v607_v14, %v606_v55  ;;  %v602_v55 = vsel %vm286_vm0, %v3501_v35, 0.0  ;;  %v6555_v14 = vld [vmem:[#allocation85_spill] sm:$0xff]  ;;  %v561_v35 = vadd.f32 %v560_v57, %v559_v22  ;;  %v6693_v39 = vld [vmem:[#allocation59_spill] sm:$0xff] }
 0x14a   : > { %396 = vst.msk [vmem:[%s2747_s15 + $0x398] sm:$0xff] %vm286_vm0, %v6546_v24  ;;  %v547_v17 = vadd.f32 %v546_v53, %v545_v20  ;;  %v582_v20 = vadd.f32 %v581_v62, %v580_v21  ;;  %v589_v53 = vadd.f32 %v588_v1, %v587_v4  ;;  %v624_v22 = vadd.f32 %v623_v51, %v622_v25 }
 0x14b   : > { %397 = vst.msk [vmem:[%s2747_s15 + $0x3a0] sm:$0xff] %vm286_vm0, %v6547_v37  ;;  %v6556_v37 = vld [vmem:[#allocation88_spill] sm:$0xff]  ;;  %v555_v21 = vsel %vm286_vm0, %v3840_v27, 0.0  ;;  %v569_v4 = vsel %vm286_vm0, %v3880_v34, 0.0  ;;  %v611_v26 = vsel %vm286_vm0, %v3978_v56, 0.0  ;;  %v618_v57 = vsel %vm286_vm0, %v3992_v5, 0.0 }
 0x14c   : > { %398 = vst.msk [vmem:[%s2747_s15 + $0x3a8] sm:$0xff] %vm286_vm0, %v6549_v41  ;;  %v575_v41 = vadd.f32 %v574_v54, %v573_v12  ;;  %v590_v12 = vsel %vm286_vm0, %v3938_v23, 0.0  ;;  %v549_v25 = vadd.f32 %v548_v48, %v547_v17  ;;  %v556_v54 = vadd.f32 %v555_v21, %v554_v15  ;;  %v6558_v5 = vld [vmem:[#allocation77_spill] sm:$0xff]  ;;  %v6685_v23 = vld [vmem:[#allocation28_spill] sm:$0xff] }
 0x14d   : > { %399 = vst.msk [vmem:[%s2747_s15 + $0x3b0] sm:$0xff] %vm286_vm0, %v6553_v60  ;;  %v568_v60 = vadd.f32 %v567_v16, %v566_v19  ;;  %v562_v19 = vsel %vm286_vm0, %v3858_v61, 0.0  ;;  %v625_v16 = vsel %vm286_vm0, %v4006_v52, 0.0  ;;  %v619_v51 = vadd.f32 %v618_v57, %v617_v18  ;;  %v6695_v34 = vld [vmem:[#allocation60_spill] sm:$0xff]  ;;  %v6698_v61 = vld [vmem:[#allocation66_spill] sm:$0xff] }
 0x14e   : > { %400 = vst.msk [vmem:[%s2747_s15 + $0x3b8] sm:$0xff] %vm286_vm0, %v6554_v58  ;;  %v603_v58 = vadd.f32 %v602_v55, %v601_v10  ;;  %v583_v10 = vsel %vm286_vm0, %v3924_v3, 0.0  ;;  %v563_v62 = vadd.f32 %v562_v19, %v561_v35  ;;  %v577_v8 = vadd.f32 %v576_v9, %v575_v41  ;;  %v6559_v35 = vld [vmem:[#allocation92_spill] sm:$0xff]  ;;  %v6691_v3 = vld [vmem:[#allocation49_spill] sm:$0xff] }
 0x14f   : > { %401 = vst.msk [vmem:[%s2747_s15 + $0x3c0] sm:$0xff] %vm286_vm0, %v6555_v14  ;;  %v610_v14 = vadd.f32 %v609_v38, %v608_v31  ;;  %v597_v31 = vsel %vm286_vm0, %v3952_v33, 0.0  ;;  %v570_v1 = vadd.f32 %v569_v4, %v568_v60  ;;  %v584_v48 = vadd.f32 %v583_v10, %v582_v20  ;;  %v6561_v60 = vld [vmem:[#allocation78_spill] sm:$0xff]  ;;  %v6574_v4 = vld [vmem:[#allocation9_spill] sm:$0xff]  ;;  %v6702_v27 = vld [vmem:[#allocation72_spill] sm:$0xff] }
 0x150   : > { %402 = vst.msk [vmem:[%s2747_s15 + $0x3c8] sm:$0xff] %vm286_vm0, %v6556_v37  ;;  %v591_v55 = vadd.f32 %v590_v12, %v589_v53  ;;  %v598_v17 = vadd.f32 %v597_v31, %v596_v7  ;;  %v605_v38 = vadd.f32 %v604_v46, %v603_v58  ;;  %v626_v52 = vadd.f32 %v625_v16, %v624_v22  ;;  %v6570_v22 = vld [vmem:[#allocation86_spill] sm:$0xff]  ;;  %v6578_v31 = vld [vmem:[#allocation11_spill] sm:$0xff] }
 0x151   : > { %403 = vst.msk [vmem:[%s2747_s15 + $0x3d0] sm:$0xff] %vm286_vm0, %v6557_v45  ;;  %v612_v13 = vadd.f32 %v611_v26, %v610_v14  ;;  %v4137_v41 = vmul.f32 %v6559_v35, %v549_v25  ;;  %v4143_v7 = vmul.f32 %v6559_v35, %v556_v54  ;;  %v4146_v58 = vmul.f32 %v6559_v35, %v563_v62  ;;  %v6576_v10 = vld [vmem:[#allocation10_spill] sm:$0xff]  ;;  %v6580_v25 = vld [vmem:[#allocation12_spill] sm:$0xff]  ;;  %v6586_v54 = vld [vmem:[#allocation15_spill] sm:$0xff] }
 0x152   : > { %404 = vst.msk [vmem:[%s2747_s15 + $0x3d8] sm:$0xff] %vm286_vm0, %v3436_v29  ;;  %v4149_v14 = vmul.f32 %v6559_v35, %v570_v1  ;;  %v4152_v15 = vmul.f32 %v6559_v35, %v577_v8  ;;  %v4161_v20 = vmul.f32 %v6559_v35, %v591_v55  ;;  %v4164_v53 = vmul.f32 %v6559_v35, %v598_v17  ;;  %v6588_v1 = vld [vmem:[#allocation16_spill] sm:$0xff]  ;;  %v6592_v17 = vld [vmem:[#allocation18_spill] sm:$0xff] }
 0x153   : > { %405 = vst.msk [vmem:[%s2747_s15 + $0x3e0] sm:$0xff] %vm286_vm0, %v3477_v2  ;;  %v4167_v18 = vmul.f32 %v6559_v35, %v605_v38  ;;  %v4173_v21 = vmul.f32 %v6559_v35, %v612_v13  ;;  %v4179_v19 = vmul.f32 %v6559_v35, %v626_v52  ;;  %v4186_v9 = vsub.f32 %v6574_v4, %v4137_v41  ;;  %v6582_v52 = vld [vmem:[#allocation13_spill] sm:$0xff]  ;;  %v6594_v13 = vld [vmem:[#allocation19_spill] sm:$0xff]  ;;  %v6598_v4 = vld [vmem:[#allocation36_spill] sm:$0xff] }
 0x154   : > { %406 = vst.msk [vmem:[%s2747_s15 + $0x3e8] sm:$0xff] %vm286_vm0, %v3480_v59  ;;  %v4190_v12 = vsub.f32 %v6576_v10, %v4143_v7  ;;  %v4194_v46 = vsub.f32 %v6578_v31, %v4146_v58  ;;  %v4198_v26 = vsub.f32 %v6580_v25, %v4149_v14  ;;  %v4202_v57 = vsub.f32 %v6582_v52, %v4152_v15  ;;  %v6600_v31 = vld [vmem:[#allocation37_spill] sm:$0xff]  ;;  %v6602_v52 = vld [vmem:[#allocation38_spill] sm:$0xff] }
 0x155   : > { %407 = vst.msk [vmem:[%s2747_s15 + $0x3f0] sm:$0xff] %vm286_vm0, %v3519_v63  ;;  %v4210_v62 = vsub.f32 %v6586_v54, %v4161_v20  ;;  %v4214_v8 = vsub.f32 %v6588_v1, %v4164_v53  ;;  %v4222_v38 = vsub.f32 %v6592_v17, %v4173_v21  ;;  %v4234_v10 = vsub.f32 %v6598_v4, %v4137_v41  ;;  %v6604_v54 = vld [vmem:[#allocation39_spill] sm:$0xff]  ;;  %v6610_v4 = vld [vmem:[#allocation42_spill] sm:$0xff] }
 0x156   : > { %408 = vst.msk [vmem:[%s2747_s15 + $0x3f8] sm:$0xff] %vm286_vm0, %v3537_v40  ;;  %v4238_v25 = vsub.f32 %v6600_v31, %v4143_v7  ;;  %v4246_v1 = vsub.f32 %v6604_v54, %v4149_v14  ;;  %v4258_v31 = vsub.f32 %v6610_v4, %v4161_v20 }
 0x157   : > { %409 = vst.msk [vmem:[%s2747_s15 + $0x400] sm:$0xff] %vm286_vm0, %v3627_v6 }
 0x158   : > { %410 = vst.msk [vmem:[%s2747_s15 + $0x408] sm:$0xff] %vm286_vm0, %v6558_v5  ;;  %v4158_v5 = vmul.f32 %v6559_v35, %v584_v48  ;;  %v6590_v48 = vld [vmem:[#allocation17_spill] sm:$0xff] }
 0x159   : > { %6560 = vst [vmem:[#allocation63_spill] sm:$0xff] %v4137_v41  ;;  %v4218_v55 = vsub.f32 %v6590_v48, %v4167_v18  ;;  %v6606_v48 = vld [vmem:[#allocation40_spill] sm:$0xff] }
 0x15a   : > { %411 = vst.msk [vmem:[%s2747_s15 + $0x410] sm:$0xff] %vm286_vm0, %v6561_v60  ;;  %v6596_v60 = vld [vmem:[#allocation20_spill] sm:$0xff]  ;;  %v4250_v17 = vsub.f32 %v6606_v48, %v4152_v15 }
 0x15b   : > { %6562 = vst [vmem:[#allocation83_spill] sm:$0xff] %v4143_v7 }
 0x15c   : > { %6563 = vst [vmem:[#allocation84_spill] sm:$0xff] %v4146_v58 }
 0x15d   : > { %6564 = vst [vmem:[#allocation87_spill] sm:$0xff] %v4149_v14 }
 0x15e   : > { %6565 = vst [vmem:[#allocation89_spill] sm:$0xff] %v4152_v15 }
 0x15f   : > { %412 = vst.msk [vmem:[%s2747_s15 + $0x418] sm:$0xff] %vm286_vm0, %v6541_v11  ;;  %v4176_v11 = vmul.f32 %v6559_v35, %v619_v51  ;;  %v6612_v35 = vld [vmem:[#allocation43_spill] sm:$0xff] }
 0x160   : > { %6566 = vst [vmem:[#allocation88_spill] sm:$0xff] %v4158_v5 }
 0x161   : > { %6567 = vst [vmem:[#allocation90_spill] sm:$0xff] %v4161_v20  ;;  %v4226_v51 = vsub.f32 %v6594_v13, %v4176_v11  ;;  %v6608_v13 = vld [vmem:[#allocation41_spill] sm:$0xff] }
 0x162   : > { %6568 = vst [vmem:[#allocation77_spill] sm:$0xff] %v4164_v53 }
 0x163   : > { %6569 = vst [vmem:[#allocation78_spill] sm:$0xff] %v4167_v18 }
 0x164   : > { %413 = vst.msk [vmem:[%s2747_s15 + $0x420] sm:$0xff] %vm286_vm0, %v6570_v22  ;;  %v4230_v22 = vsub.f32 %v6596_v60, %v4179_v19  ;;  %v4254_v60 = vsub.f32 %v6608_v13, %v4158_v5 }
 0x165   : > { %6571 = vst [vmem:[#allocation86_spill] sm:$0xff] %v4173_v21 }
 0x166   : > { %6572 = vst [vmem:[#allocation151_spill] sm:$0xff] %v4176_v11 }
 0x167   : > { %6573 = vst [vmem:[#allocation152_spill] sm:$0xff] %v4179_v19 }
 0x168   : > { %414 = vst.msk [vmem:[%s2747_s15 + $0x428] sm:$0xff] %vm286_vm0, %v3426_v50  ;;  %v6584_v50 = vld [vmem:[#allocation14_spill] sm:$0xff] }
 0x169   : > { %6575 = vst [vmem:[#allocation9_spill] sm:$0xff] %v4186_v9  ;;  %v4206_v16 = vsub.f32 %v6584_v50, %v4158_v5  ;;  %v4242_v50 = vsub.f32 %v6602_v52, %v4146_v58  ;;  %v4262_v52 = vsub.f32 %v6612_v35, %v4164_v53 }
 0x16a   : > { %6577 = vst [vmem:[#allocation10_spill] sm:$0xff] %v4190_v12  ;;  %v6676_v12 = vld [vmem:[#allocation81_spill] sm:$0xff] }
 0x16b   : > { %6579 = vst [vmem:[#allocation11_spill] sm:$0xff] %v4194_v46  ;;  %v6675_v46 = vld [vmem:[#allocation52_spill] sm:$0xff] }
 0x16c   : > { %6581 = vst [vmem:[#allocation12_spill] sm:$0xff] %v4198_v26  ;;  %v6674_v26 = vld [vmem:[#allocation55_spill] sm:$0xff] }
 0x16d   : > { %6583 = vst [vmem:[#allocation13_spill] sm:$0xff] %v4202_v57  ;;  %v6673_v57 = vld [vmem:[#allocation23_spill] sm:$0xff] }
 0x16e   : > { %6585 = vst [vmem:[#allocation14_spill] sm:$0xff] %v4206_v16  ;;  %v6672_v16 = vld [vmem:[#allocation117_spill] sm:$0xff] }
 0x16f   : > { %6587 = vst [vmem:[#allocation15_spill] sm:$0xff] %v4210_v62  ;;  %v6671_v62 = vld [vmem:[#allocation115_spill] sm:$0xff] }
 0x170   : > { %6589 = vst [vmem:[#allocation16_spill] sm:$0xff] %v4214_v8  ;;  %v6670_v8 = vld [vmem:[#allocation113_spill] sm:$0xff] }
 0x171   : > { %6591 = vst [vmem:[#allocation17_spill] sm:$0xff] %v4218_v55  ;;  %v6655_v55 = vld [vmem:[#allocation85_spill] sm:$0xff] }
 0x172   : > { %6593 = vst [vmem:[#allocation18_spill] sm:$0xff] %v4222_v38 }
 0x173   : > { %6595 = vst [vmem:[#allocation19_spill] sm:$0xff] %v4226_v51 }
 0x174   : > { %6597 = vst [vmem:[#allocation20_spill] sm:$0xff] %v4230_v22 }
 0x175   : > { %6599 = vst [vmem:[#allocation36_spill] sm:$0xff] %v4234_v10  ;;  %v6643_v10 = vld [vmem:[#allocation35_spill] sm:$0xff] }
 0x176   : > { %6601 = vst [vmem:[#allocation37_spill] sm:$0xff] %v4238_v25  ;;  %v6623_v25 = vld [vmem:[#allocation22_spill] sm:$0xff] }
 0x177   : > { %6603 = vst [vmem:[#allocation38_spill] sm:$0xff] %v4242_v50  ;;  %v6614_v50 = vld [vmem:[#allocation44_spill] sm:$0xff] }
 0x178   : > { %6605 = vst [vmem:[#allocation39_spill] sm:$0xff] %v4246_v1  ;;  %v4266_v54 = vsub.f32 %v6614_v50, %v4167_v18  ;;  %v6616_v1 = vld [vmem:[#allocation46_spill] sm:$0xff]  ;;  %v4288_v50 = vsub.f32 %v6550_v42, %v4143_v7  ;;  %v4308_v42 = vsub.f32 %v3474_v49, %v4161_v20  ;;  %v6690_v20 = vld [vmem:[#allocation47_spill] sm:$0xff]  ;;  %v6704_v7 = vld [vmem:[#allocation73_spill] sm:$0xff] }
 0x179   : > { %6607 = vst [vmem:[#allocation40_spill] sm:$0xff] %v4250_v17  ;;  %v4270_v48 = vsub.f32 %v6616_v1, %v4173_v21  ;;  %v6618_v17 = vld [vmem:[#allocation48_spill] sm:$0xff]  ;;  %v4292_v1 = vsub.f32 %v6551_v0, %v4146_v58  ;;  %v4312_v0 = vsub.f32 %v3492_v44, %v4164_v53  ;;  %v6644_v44 = vld [vmem:[#allocation61_spill] sm:$0xff] }
 0x17a   : > { %6609 = vst [vmem:[#allocation41_spill] sm:$0xff] %v4254_v60  ;;  %v4274_v13 = vsub.f32 %v6618_v17, %v4176_v11  ;;  %v6620_v60 = vld [vmem:[#allocation50_spill] sm:$0xff]  ;;  %v4296_v17 = vsub.f32 %v6552_v32, %v4149_v14  ;;  %v6684_v53 = vld [vmem:[#allocation21_spill] sm:$0xff]  ;;  %v6696_v14 = vld [vmem:[#allocation64_spill] sm:$0xff] }
 0x17b   : > { %6611 = vst [vmem:[#allocation42_spill] sm:$0xff] %v4258_v31  ;;  %v4278_v4 = vsub.f32 %v6620_v60, %v4179_v19  ;;  %v6622_v31 = vld [vmem:[#allocation94_spill] sm:$0xff]  ;;  %v4300_v60 = vsub.f32 %v3450_v28, %v4152_v15  ;;  %v6636_v28 = vld [vmem:[#allocation65_spill] sm:$0xff]  ;;  %v6711_v11 = vld [vmem:[#allocation56_spill] sm:$0xff] }
 0x17c   : > { %6613 = vst [vmem:[#allocation43_spill] sm:$0xff] %v4262_v52  ;;  %v850_v35 = vsub.f32 %v6623_v25, %v6622_v31  ;;  %v4284_v52 = vsub.f32 %v6548_v30, %v4137_v41  ;;  %v4304_v30 = vsub.f32 %v3460_v36, %v4158_v5  ;;  %v6632_v25 = vld [vmem:[#allocation25_spill] sm:$0xff]  ;;  %v6639_v36 = vld [vmem:[#allocation32_spill] sm:$0xff]  ;;  %v6694_v15 = vld [vmem:[#allocation26_spill] sm:$0xff]  ;;  %v1011_v21 = vmul.f32 %v6711_v11, %v6711_v11 }
 0x17d   : > { %6615 = vst [vmem:[#allocation44_spill] sm:$0xff] %v4266_v54  ;;  %v6641_v54 = vld [vmem:[#allocation34_spill] sm:$0xff]  ;;  %v6692_v5 = vld [vmem:[#allocation57_spill] sm:$0xff]  ;;  %v6708_v41 = vld [vmem:[#allocation127_spill] sm:$0xff] }
 0x17e   : > { %6617 = vst [vmem:[#allocation46_spill] sm:$0xff] %v4270_v48  ;;  %v6640_v48 = vld [vmem:[#allocation76_spill] sm:$0xff]  ;;  %v978_v33 = vmul.f32 %v850_v35, %v850_v35  ;;  %v6700_v58 = vld [vmem:[#allocation69_spill] sm:$0xff]  ;;  %v6710_v19 = vld [vmem:[#allocation62_spill] sm:$0xff] }
 0x17f   : > { %6619 = vst [vmem:[#allocation48_spill] sm:$0xff] %v4274_v13  ;;  %v6638_v13 = vld [vmem:[#allocation70_spill] sm:$0xff]  ;;  %v836_v49 = vsub.f32 %v6641_v54, %v6640_v48  ;;  %v6650_v54 = vld [vmem:[#allocation99_spill] sm:$0xff]  ;;  %v6689_v35 = vld [vmem:[#allocation24_spill] sm:$0xff] }
 0x180   : > { %6621 = vst [vmem:[#allocation50_spill] sm:$0xff] %v4278_v4  ;;  %v6651_v48 = vld [vmem:[#allocation74_spill] sm:$0xff] }
 0x181   : > { %6624 = vst [vmem:[#allocation94_spill] sm:$0xff] %v4284_v52  ;;  %v4344_v38 = vsub.f32 %v6651_v48, %v6650_v54  ;;  %v6659_v48 = vld [vmem:[#allocation114_spill] sm:$0xff]  ;;  %v4450_v47 = vmul.f32 %v836_v49, %v836_v49  ;;  %v6688_v49 = vld [vmem:[#allocation45_spill] sm:$0xff] }
 0x182   : > { %6625 = vst [vmem:[#allocation22_spill] sm:$0xff] %v4288_v50  ;;  %v6635_v50 = vld [vmem:[#allocation29_spill] sm:$0xff] }
 0x183   : > { %6626 = vst [vmem:[#allocation153_spill] sm:$0xff] %v4292_v1  ;;  %v6633_v1 = vld [vmem:[#allocation27_spill] sm:$0xff] }
 0x184   : > { %6627 = vst [vmem:[#allocation154_spill] sm:$0xff] %v4296_v17  ;;  %v832_v32 = vsub.f32 %v6633_v1, %v6632_v25  ;;  %v6634_v17 = vld [vmem:[#allocation54_spill] sm:$0xff]  ;;  %v6645_v1 = vld [vmem:[#allocation96_spill] sm:$0xff] }
 0x185   : > { %6628 = vst [vmem:[#allocation155_spill] sm:$0xff] %v4300_v60  ;;  %v833_v52 = vsub.f32 %v6635_v50, %v6634_v17  ;;  %v6637_v60 = vld [vmem:[#allocation30_spill] sm:$0xff]  ;;  %v4332_v51 = vsub.f32 %v6546_v24, %v6645_v1  ;;  %v6646_v50 = vld [vmem:[#allocation97_spill] sm:$0xff]  ;;  %v6647_v17 = vld [vmem:[#allocation68_spill] sm:$0xff] }
 0x186   : > { %6629 = vst [vmem:[#allocation156_spill] sm:$0xff] %v4304_v30  ;;  %v834_v4 = vsub.f32 %v6637_v60, %v6636_v28  ;;  %v835_v30 = vsub.f32 %v6639_v36, %v6638_v13  ;;  %v4336_v60 = vsub.f32 %v6647_v17, %v6646_v50  ;;  %v6648_v28 = vld [vmem:[#allocation98_spill] sm:$0xff]  ;;  %v6649_v13 = vld [vmem:[#allocation71_spill] sm:$0xff]  ;;  %v6657_v17 = vld [vmem:[#allocation104_spill] sm:$0xff]  ;;  %v4442_v9 = vmul.f32 %v832_v32, %v832_v32 }
 0x187   : > { %6630 = vst [vmem:[#allocation157_spill] sm:$0xff] %v4308_v42  ;;  %v6642_v42 = vld [vmem:[#allocation121_spill] sm:$0xff]  ;;  %v4340_v36 = vsub.f32 %v6649_v13, %v6648_v28  ;;  %v6656_v1 = vld [vmem:[#allocation103_spill] sm:$0xff]  ;;  %v4360_v28 = vsub.f32 %v6557_v45, %v6657_v17  ;;  %v6663_v17 = vld [vmem:[#allocation106_spill] sm:$0xff] }
 0x188   : > { %6631 = vst [vmem:[#allocation158_spill] sm:$0xff] %v4312_v0  ;;  %v837_v22 = vsub.f32 %v6643_v10, %v6642_v42  ;;  %v4328_v0 = vsub.f32 %v6644_v44, %v6622_v31  ;;  %v6652_v10 = vld [vmem:[#allocation101_spill] sm:$0xff]  ;;  %v6653_v42 = vld [vmem:[#allocation80_spill] sm:$0xff]  ;;  %v6654_v44 = vld [vmem:[#allocation102_spill] sm:$0xff]  ;;  %v4356_v50 = vsub.f32 %v6556_v37, %v6656_v1  ;;  %v4446_v56 = vmul.f32 %v834_v4, %v834_v4 }
 0x189   : > { %v4348_v31 = vsub.f32 %v6653_v42, %v6652_v10  ;;  %v4352_v24 = vsub.f32 %v6655_v55, %v6654_v44  ;;  %v6658_v13 = vld [vmem:[#allocation105_spill] sm:$0xff]  ;;  %v4368_v10 = vsub.f32 %v3477_v2, %v6659_v48  ;;  %v6660_v42 = vld [vmem:[#allocation116_spill] sm:$0xff]  ;;  %v6661_v44 = vld [vmem:[#allocation51_spill] sm:$0xff]  ;;  %v4388_v2 = vmul.f32 %v6663_v17, %v6663_v17  ;;  %6678 = vst [vmem:[#allocation27_spill] sm:$0xff] %v4442_v9 }
 0x18a   : > { %v4364_v54 = vsub.f32 %v3436_v29, %v6658_v13  ;;  %v4372_v55 = vsub.f32 %v3480_v59, %v6660_v42  ;;  %v4376_v37 = vsub.f32 %v3519_v63, %v6661_v44  ;;  %v6662_v1 = vld [vmem:[#allocation53_spill] sm:$0xff]  ;;  %v4384_v29 = vsub.f32 %v3627_v6, %v6632_v25  ;;  %v6664_v13 = vld [vmem:[#allocation107_spill] sm:$0xff]  ;;  %v6665_v48 = vld [vmem:[#allocation108_spill] sm:$0xff]  ;;  %6680 = vst [vmem:[#allocation29_spill] sm:$0xff] %v4446_v56 }
 0x18b   : > { %v4380_v45 = vsub.f32 %v3537_v40, %v6662_v1  ;;  %v4392_v59 = vmul.f32 %v6664_v13, %v6664_v13  ;;  %v4396_v63 = vmul.f32 %v6665_v48, %v6665_v48  ;;  %v6666_v42 = vld [vmem:[#allocation109_spill] sm:$0xff]  ;;  %v6667_v44 = vld [vmem:[#allocation110_spill] sm:$0xff]  ;;  %v6668_v25 = vld [vmem:[#allocation111_spill] sm:$0xff]  ;;  %v4416_v48 = vmul.f32 %v6670_v8, %v6670_v8  ;;  %6682 = vst [vmem:[#allocation30_spill] sm:$0xff] %v4450_v47 }
 0x18c   : > { %v4400_v40 = vmul.f32 %v6666_v42, %v6666_v42  ;;  %v4404_v6 = vmul.f32 %v6667_v44, %v6667_v44  ;;  %v4408_v1 = vmul.f32 %v6668_v25, %v6668_v25  ;;  %v6669_v17 = vld [vmem:[#allocation112_spill] sm:$0xff]  ;;  %v4420_v42 = vmul.f32 %v6671_v62, %v6671_v62  ;;  %v6686_v32 = vld [vmem:[#allocation31_spill] sm:$0xff]  ;;  %v6687_v4 = vld [vmem:[#allocation33_spill] sm:$0xff] }
 0x18d   : > { %v4412_v13 = vmul.f32 %v6669_v17, %v6669_v17  ;;  %v4424_v44 = vmul.f32 %v6672_v16, %v6672_v16  ;;  %v4428_v25 = vmul.f32 %v6673_v57, %v6673_v57  ;;  %v4432_v17 = vmul.f32 %v6674_v26, %v6674_v26  ;;  %v6714_v47 = vld [vmem:[#allocation75_spill] sm:$0xff]  ;;  %v6721_v56 = vld [vmem:[#allocation130_spill] sm:$0xff] }
 0x18e   : > { %v4436_v8 = vmul.f32 %v6675_v46, %v6675_v46  ;;  %v4440_v62 = vmul.f32 %v6676_v12, %v6676_v12  ;;  %v4444_v16 = vmul.f32 %v833_v52, %v833_v52  ;;  %v4448_v57 = vmul.f32 %v835_v30, %v835_v30  ;;  %v6727_v9 = vld [vmem:[#allocation135_spill] sm:$0xff] }
 0x18f   : > { %v4452_v26 = vmul.f32 %v837_v22, %v837_v22  ;;  %v4456_v46 = vmul.f32 %v6684_v53, %v6684_v53  ;;  %v4460_v12 = vmul.f32 %v6685_v23, %v6685_v23  ;;  %v4464_v52 = vmul.f32 %v6686_v32, %v6686_v32 }
 0x190   : > { %6677 = vst [vmem:[#allocation25_spill] sm:$0xff] %v4440_v62  ;;  %v4468_v30 = vmul.f32 %v6687_v4, %v6687_v4  ;;  %v4472_v22 = vmul.f32 %v6688_v49, %v6688_v49  ;;  %v4476_v53 = vmul.f32 %v6689_v35, %v6689_v35  ;;  %v4480_v23 = vmul.f32 %v6690_v20, %v6690_v20  ;;  %v6731_v62 = vld [vmem:[#allocation137_spill] sm:$0xff] }
 0x191   : > { %6679 = vst [vmem:[#allocation54_spill] sm:$0xff] %v4444_v16  ;;  %v4484_v32 = vmul.f32 %v6691_v3, %v6691_v3  ;;  %v4488_v4 = vmul.f32 %v6692_v5, %v6692_v5  ;;  %v4492_v49 = vmul.f32 %v6693_v39, %v6693_v39  ;;  %v4496_v35 = vmul.f32 %v6694_v15, %v6694_v15  ;;  %v6724_v16 = vld [vmem:[#allocation132_spill] sm:$0xff] }
 0x192   : > { %6681 = vst [vmem:[#allocation65_spill] sm:$0xff] %v4448_v57  ;;  %v4500_v20 = vmul.f32 %v6695_v34, %v6695_v34  ;;  %v4504_v3 = vmul.f32 %v6696_v14, %v6696_v14  ;;  %v4508_v5 = vmul.f32 %v6698_v61, %v6698_v61  ;;  %v4512_v39 = vmul.f32 %v6700_v58, %v6700_v58  ;;  %v6718_v57 = vld [vmem:[#allocation122_spill] sm:$0xff] }
 0x193   : > { %6683 = vst [vmem:[#allocation70_spill] sm:$0xff] %v4452_v26  ;;  %v4516_v15 = vmul.f32 %v6702_v27, %v6702_v27  ;;  %v4520_v34 = vmul.f32 %v6704_v7, %v6704_v7  ;;  %v4524_v14 = vmul.f32 %v6706_v43, %v6706_v43  ;;  %v4528_v61 = vmul.f32 %v6708_v41, %v6708_v41  ;;  %v6712_v27 = vld [vmem:[#allocation67_spill] sm:$0xff]  ;;  %v6713_v26 = vld [vmem:[#allocation58_spill] sm:$0xff] }
 0x194   : > { %6697 = vst [vmem:[#allocation32_spill] sm:$0xff] %v4504_v3  ;;  %v1010_v58 = vmul.f32 %v6710_v19, %v6710_v19  ;;  %v1012_v18 = vmul.f32 %v6712_v27, %v6712_v27  ;;  %v1013_v7 = vmul.f32 %v6713_v26, %v6713_v26  ;;  %v1014_v43 = vmul.f32 %v6714_v47, %v6714_v47  ;;  %v6716_v41 = vld [vmem:[#allocation119_spill] sm:$0xff]  ;;  %v6717_v19 = vld [vmem:[#allocation120_spill] sm:$0xff] }
 0x195   : > { %6699 = vst [vmem:[#allocation76_spill] sm:$0xff] %v4508_v5  ;;  %v4550_v11 = vmul.f32 %v6717_v19, %v6717_v19  ;;  %v4554_v27 = vmul.f32 %v6718_v57, %v6718_v57  ;;  %v6719_v26 = vld [vmem:[#allocation123_spill] sm:$0xff]  ;;  %v6720_v47 = vld [vmem:[#allocation128_spill] sm:$0xff]  ;;  %v4574_v57 = vmul.f32 %v6724_v16, %v6724_v16  ;;  %v6726_v5 = vld [vmem:[#allocation133_spill] sm:$0xff] }
 0x196   : > { %6701 = vst [vmem:[#allocation34_spill] sm:$0xff] %v4512_v39  ;;  %v6722_v39 = vld [vmem:[#allocation131_spill] sm:$0xff]  ;;  %v6729_v3 = vld [vmem:[#allocation136_spill] sm:$0xff] }
 0x197   : > { %6703 = vst [vmem:[#allocation121_spill] sm:$0xff] %v4516_v15  ;;  %v4558_v15 = vmul.f32 %v6719_v26, %v6719_v26  ;;  %v4570_v19 = vmul.f32 %v6722_v39, %v6722_v39  ;;  %v4578_v26 = vmul.f32 %v6726_v5, %v6726_v5  ;;  %v4590_v39 = vmul.f32 %v6731_v62, %v6731_v62 }
 0x198   : > { %6705 = vst [vmem:[#allocation35_spill] sm:$0xff] %v4520_v34  ;;  %v1045_v62 = vmul.f32 %v4340_v36, %v4340_v36  ;;  %v4630_v36 = vmul.f32 %v4372_v55, %v4372_v55  ;;  %v1147_v55 = vsel %vm286_vm0, %v978_v33, 0.0 }
 0x199   : > { %6707 = vst [vmem:[#allocation61_spill] sm:$0xff] %v4524_v14  ;;  %v6715_v14 = vld [vmem:[#allocation118_spill] sm:$0xff] }
 0x19a   : > { %6709 = vst [vmem:[#allocation96_spill] sm:$0xff] %v4528_v61  ;;  %v4542_v34 = vmul.f32 %v6715_v14, %v6715_v14  ;;  %v4546_v61 = vmul.f32 %v6716_v41, %v6716_v41  ;;  %v4562_v14 = vmul.f32 %v6720_v47, %v6720_v47  ;;  %v4566_v41 = vmul.f32 %v6721_v56, %v6721_v56 }
 0x19b   : > { %6723 = vst [vmem:[#allocation97_spill] sm:$0xff] %v4570_v19  ;;  %v4582_v47 = vmul.f32 %v6727_v9, %v6727_v9  ;;  %v4586_v56 = vmul.f32 %v6729_v3, %v6729_v3  ;;  %v6733_v19 = vld [vmem:[#allocation138_spill] sm:$0xff]  ;;  %v1042_v9 = vmul.f32 %v4328_v0, %v4328_v0  ;;  %v1044_v3 = vmul.f32 %v4336_v60, %v4336_v60 }
 0x19c   : > { %6725 = vst [vmem:[#allocation68_spill] sm:$0xff] %v4574_v57  ;;  %v4594_v16 = vmul.f32 %v6733_v19, %v6733_v19  ;;  %v6735_v57 = vld [vmem:[#allocation140_spill] sm:$0xff]  ;;  %v1046_v19 = vmul.f32 %v4344_v38, %v4344_v38  ;;  %v1049_v0 = vmul.f32 %v4356_v50, %v4356_v50  ;;  %v4622_v60 = vmul.f32 %v4364_v54, %v4364_v54  ;;  %v6738_v54 = vld [vmem:[#allocation147_spill] sm:$0xff] }
 0x19d   : > { %6728 = vst [vmem:[#allocation98_spill] sm:$0xff] %v4582_v47  ;;  %v4598_v5 = vmul.f32 %v6735_v57, %v6735_v57  ;;  %v1043_v47 = vmul.f32 %v4332_v51, %v4332_v51  ;;  %v1048_v57 = vmul.f32 %v4352_v24, %v4352_v24  ;;  %v4618_v51 = vmul.f32 %v4360_v28, %v4360_v28 }
 0x19e   : > { %6730 = vst [vmem:[#allocation71_spill] sm:$0xff] %v4586_v56  ;;  %v4626_v38 = vmul.f32 %v4368_v10, %v4368_v10  ;;  %v4638_v24 = vmul.f32 %v4380_v45, %v4380_v45  ;;  %v1146_v50 = vsel %vm286_vm0, %v4388_v2, 0.0  ;;  %v4644_v28 = vmul.f32 %v4384_v29, %v4384_v29  ;;  %v6742_v45 = vld [vmem:[#allocation82_spill] sm:$0xff] }
 0x19f   : > { %6732 = vst [vmem:[#allocation99_spill] sm:$0xff] %v4590_v39  ;;  %v4648_v10 = vmul.f32 %v6738_v54, %v6738_v54  ;;  %v4658_v56 = vmul.f32 %v6742_v45, %v6742_v45  ;;  %v1148_v2 = vadd.f32 %v1147_v55, %v1146_v50  ;;  %v1153_v29 = vsel %vm286_vm0, %v4392_v59, 0.0 }
 0x1a0   : > { %6734 = vst [vmem:[#allocation74_spill] sm:$0xff] %v4594_v16  ;;  %v1047_v16 = vmul.f32 %v4348_v31, %v4348_v31  ;;  %v4634_v31 = vmul.f32 %v4376_v37, %v4376_v37  ;;  %v1149_v37 = vsel %vm286_vm0, %v1010_v58, 0.0  ;;  %v1151_v33 = vsel %vm286_vm0, %v1042_v9, 0.0 }
 0x1a1   : > { %6736 = vst [vmem:[#allocation101_spill] sm:$0xff] %v4598_v5  ;;  %v6740_v5 = vld [vmem:[#allocation148_spill] sm:$0xff]  ;;  %v1154_v58 = vsel %vm286_vm0, %v4456_v46, 0.0  ;;  %v1158_v45 = vsel %vm286_vm0, %v1043_v47, 0.0  ;;  %v1160_v50 = vsel %vm286_vm0, %v4396_v63, 0.0  ;;  %v1161_v59 = vsel %vm286_vm0, %v4460_v12, 0.0 }
 0x1a2   : > { %6737 = vst [vmem:[#allocation80_spill] sm:$0xff] %v4644_v28  ;;  %v4654_v39 = vmul.f32 %v6740_v5, %v6740_v5  ;;  %v6743_v28 = vld [vmem:[#allocation149_spill] sm:$0xff]  ;;  %v1156_v5 = vsel %vm286_vm0, %v1011_v21, 0.0  ;;  %v1165_v55 = vsel %vm286_vm0, %v1044_v3, 0.0  ;;  %v1167_v9 = vsel %vm286_vm0, %v4400_v40, 0.0 }
 0x1a3   : > { %6739 = vst [vmem:[#allocation102_spill] sm:$0xff] %v4648_v10  ;;  %v4664_v54 = vmul.f32 %v6743_v28, %v6743_v28  ;;  %v1155_v10 = vadd.f32 %v1154_v58, %v1153_v29  ;;  %v1163_v28 = vsel %vm286_vm0, %v1012_v18, 0.0  ;;  %v1168_v47 = vsel %vm286_vm0, %v4464_v52, 0.0 }
 0x1a4   : > { %6741 = vst [vmem:[#allocation85_spill] sm:$0xff] %v4654_v39  ;;  %v1150_v39 = vadd.f32 %v1149_v37, %v1148_v2  ;;  %v1162_v37 = vadd.f32 %v1161_v59, %v1160_v50  ;;  %v1169_v2 = vadd.f32 %v1168_v47, %v1167_v9  ;;  %v1170_v63 = vsel %vm286_vm0, %v1013_v7, 0.0 }
 0x1a5   : > { %v1157_v21 = vadd.f32 %v1156_v5, %v1155_v10  ;;  %v1172_v29 = vsel %vm286_vm0, %v1045_v62, 0.0  ;;  %v1174_v18 = vsel %vm286_vm0, %v4404_v6, 0.0  ;;  %v1175_v40 = vsel %vm286_vm0, %v4468_v30, 0.0 }
 0x1a6   : > { %v4679_v46 = vadd.f32 %v1151_v33, %v1150_v39  ;;  %v1164_v3 = vadd.f32 %v1163_v28, %v1162_v37  ;;  %v1177_v39 = vsel %vm286_vm0, %v1014_v43, 0.0  ;;  %v1171_v10 = vadd.f32 %v1170_v63, %v1169_v2 }
 0x1a7   : > { %v4687_v12 = vadd.f32 %v1158_v45, %v1157_v21  ;;  %v1176_v33 = vadd.f32 %v1175_v40, %v1174_v18  ;;  %v1179_v52 = vsel %vm286_vm0, %v1046_v19, 0.0  ;;  %v1181_v7 = vsel %vm286_vm0, %v4408_v1, 0.0 }
 0x1a8   : > { %v4695_v58 = vadd.f32 %v1165_v55, %v1164_v3  ;;  %v1182_v6 = vsel %vm286_vm0, %v4472_v22, 0.0  ;;  %v1184_v62 = vsel %vm286_vm0, %v4542_v34, 0.0  ;;  %v1186_v5 = vsel %vm286_vm0, %v1047_v16, 0.0 }
 0x1a9   : > { %v4702_v30 = vadd.f32 %v1172_v29, %v1171_v10  ;;  %v1178_v43 = vadd.f32 %v1177_v39, %v1176_v33  ;;  %v1183_v45 = vadd.f32 %v1182_v6, %v1181_v7  ;;  %v1188_v19 = vsel %vm286_vm0, %v4412_v13, 0.0  ;;  %v6752_v7 = vld [vmem:[#allocation97_spill] sm:$0xff] }
 0x1aa   : > { %6744 = vst [vmem:[#allocation103_spill] sm:$0xff] %v4695_v58  ;;  %v1189_v1 = vsel %vm286_vm0, %v4476_v53, 0.0  ;;  %v1191_v50 = vsel %vm286_vm0, %v4546_v61, 0.0  ;;  %v1193_v22 = vsel %vm286_vm0, %v1048_v57, 0.0  ;;  %v1195_v34 = vsel %vm286_vm0, %v4416_v48, 0.0 }
 0x1ab   : > { %6745 = vst [vmem:[#allocation104_spill] sm:$0xff] %v4702_v30  ;;  %v4713_v59 = vadd.f32 %v1179_v52, %v1178_v43  ;;  %v1185_v16 = vadd.f32 %v1184_v62, %v1183_v45  ;;  %v1190_v28 = vadd.f32 %v1189_v1, %v1188_v19  ;;  %v1196_v55 = vsel %vm286_vm0, %v4480_v23, 0.0  ;;  %v6756_v19 = vld [vmem:[#allocation68_spill] sm:$0xff] }
 0x1ac   : > { %v1197_v9 = vadd.f32 %v1196_v55, %v1195_v34  ;;  %v1198_v13 = vsel %vm286_vm0, %v4550_v11, 0.0  ;;  %v1200_v53 = vsel %vm286_vm0, %v1049_v0, 0.0  ;;  %v1202_v61 = vsel %vm286_vm0, %v4420_v42, 0.0 }
 0x1ad   : > { %6746 = vst [vmem:[#allocation105_spill] sm:$0xff] %v4713_v59  ;;  %v4722_v57 = vadd.f32 %v1186_v5, %v1185_v16  ;;  %v1192_v21 = vadd.f32 %v1191_v50, %v1190_v28  ;;  %v1203_v48 = vsel %vm286_vm0, %v4484_v32, 0.0  ;;  %v1205_v37 = vsel %vm286_vm0, %v4554_v27, 0.0  ;;  %v6753_v5 = vld [vmem:[#allocation25_spill] sm:$0xff]  ;;  %v6758_v16 = vld [vmem:[#allocation27_spill] sm:$0xff]  ;;  %v6759_v28 = vld [vmem:[#allocation76_spill] sm:$0xff] }
 0x1ae   : > { %v1199_v47 = vadd.f32 %v1198_v13, %v1197_v9  ;;  %v1204_v23 = vadd.f32 %v1203_v48, %v1202_v61  ;;  %v1207_v2 = vsel %vm286_vm0, %v4618_v51, 0.0  ;;  %v1209_v11 = vsel %vm286_vm0, %v4424_v44, 0.0  ;;  %v6760_v13 = vld [vmem:[#allocation80_spill] sm:$0xff]  ;;  %v6761_v61 = vld [vmem:[#allocation54_spill] sm:$0xff] }
 0x1af   : > { %6747 = vst [vmem:[#allocation114_spill] sm:$0xff] %v4722_v57  ;;  %v4732_v0 = vadd.f32 %v1193_v22, %v1192_v21  ;;  %v1210_v42 = vsel %vm286_vm0, %v4488_v4, 0.0  ;;  %v1212_v63 = vsel %vm286_vm0, %v4558_v15, 0.0  ;;  %v1214_v32 = vsel %vm286_vm0, %v4622_v60, 0.0 }
 0x1b0   : > { %v4740_v27 = vadd.f32 %v1200_v53, %v1199_v47  ;;  %v1206_v29 = vadd.f32 %v1205_v37, %v1204_v23  ;;  %v1211_v18 = vadd.f32 %v1210_v42, %v1209_v11  ;;  %v1216_v51 = vsel %vm286_vm0, %v4428_v25, 0.0  ;;  %v6763_v47 = vld [vmem:[#allocation34_spill] sm:$0xff] }
 0x1b1   : > { %6748 = vst [vmem:[#allocation116_spill] sm:$0xff] %v4732_v0  ;;  %v1217_v44 = vsel %vm286_vm0, %v4492_v49, 0.0  ;;  %v1219_v3 = vsel %vm286_vm0, %v4562_v14, 0.0  ;;  %v1221_v4 = vsel %vm286_vm0, %v4626_v38, 0.0  ;;  %v1223_v15 = vsel %vm286_vm0, %v4432_v17, 0.0  ;;  %v6764_v11 = vld [vmem:[#allocation98_spill] sm:$0xff] }
 0x1b2   : > { %6749 = vst [vmem:[#allocation51_spill] sm:$0xff] %v4740_v27  ;;  %v4752_v60 = vadd.f32 %v1207_v2, %v1206_v29  ;;  %v1213_v40 = vadd.f32 %v1212_v63, %v1211_v18  ;;  %v1218_v39 = vadd.f32 %v1217_v44, %v1216_v51  ;;  %v1224_v10 = vsel %vm286_vm0, %v4496_v35, 0.0  ;;  %v6765_v63 = vld [vmem:[#allocation102_spill] sm:$0xff]  ;;  %v6768_v44 = vld [vmem:[#allocation121_spill] sm:$0xff] }
 0x1b3   : > { %v1225_v25 = vadd.f32 %v1224_v10, %v1223_v15  ;;  %v1226_v49 = vsel %vm286_vm0, %v4566_v41, 0.0  ;;  %v1228_v14 = vsel %vm286_vm0, %v4630_v36, 0.0  ;;  %v1230_v38 = vsel %vm286_vm0, %v4436_v8, 0.0  ;;  %v6755_v8 = vld [vmem:[#allocation32_spill] sm:$0xff] }
 0x1b4   : > { %6750 = vst [vmem:[#allocation53_spill] sm:$0xff] %v4752_v60  ;;  %v4762_v33 = vadd.f32 %v1214_v32, %v1213_v40  ;;  %v1220_v17 = vadd.f32 %v1219_v3, %v1218_v39  ;;  %v1231_v52 = vsel %vm286_vm0, %v4500_v20, 0.0  ;;  %v1233_v6 = vsel %vm286_vm0, %v6752_v7, 0.0  ;;  %v6766_v32 = vld [vmem:[#allocation29_spill] sm:$0xff]  ;;  %v6770_v40 = vld [vmem:[#allocation150_spill] sm:$0xff]  ;;  %v6774_v7 = vld [vmem:[#allocation35_spill] sm:$0xff] }
 0x1b5   : > { %v1227_v35 = vadd.f32 %v1226_v49, %v1225_v25  ;;  %v1232_v62 = vadd.f32 %v1231_v52, %v1230_v38  ;;  %v1235_v41 = vsel %vm286_vm0, %v4634_v31, 0.0  ;;  %v1237_v36 = vsel %vm286_vm0, %v6753_v5, 0.0  ;;  %v6771_v49 = vld [vmem:[#allocation65_spill] sm:$0xff] }
 0x1b6   : > { %6751 = vst [vmem:[#allocation106_spill] sm:$0xff] %v4762_v33  ;;  %v4772_v43 = vadd.f32 %v1221_v4, %v1220_v17  ;;  %v1238_v45 = vsel %vm286_vm0, %v6755_v8, 0.0  ;;  %v1240_v1 = vsel %vm286_vm0, %v6756_v19, 0.0  ;;  %v1242_v20 = vsel %vm286_vm0, %v4638_v24, 0.0  ;;  %v6769_v4 = vld [vmem:[#allocation71_spill] sm:$0xff]  ;;  %v6773_v17 = vld [vmem:[#allocation85_spill] sm:$0xff] }
 0x1b7   : > { %v4780_v50 = vadd.f32 %v1228_v14, %v1227_v35  ;;  %v1234_v22 = vadd.f32 %v1233_v6, %v1232_v62  ;;  %v1239_v34 = vadd.f32 %v1238_v45, %v1237_v36  ;;  %v1244_v31 = vsel %vm286_vm0, %v6758_v16, 0.0  ;;  %v6775_v35 = vld [vmem:[#allocation99_spill] sm:$0xff]  ;;  %v6777_v8 = vld [vmem:[#allocation30_spill] sm:$0xff] }
 0x1b8   : > { %6754 = vst [vmem:[#allocation107_spill] sm:$0xff] %v4772_v43  ;;  %v1245_v55 = vsel %vm286_vm0, %v6759_v28, 0.0  ;;  %v1247_v9 = vsel %vm286_vm0, %v4578_v26, 0.0  ;;  %v1249_v53 = vsel %vm286_vm0, %v6760_v13, 0.0  ;;  %v1251_v21 = vsel %vm286_vm0, %v6761_v61, 0.0  ;;  %v6780_v16 = vld [vmem:[#allocation70_spill] sm:$0xff] }
 0x1b9   : > { %6757 = vst [vmem:[#allocation108_spill] sm:$0xff] %v4780_v50  ;;  %v4792_v24 = vadd.f32 %v1235_v41, %v1234_v22  ;;  %v1241_v48 = vadd.f32 %v1240_v1, %v1239_v34  ;;  %v1246_v37 = vadd.f32 %v1245_v55, %v1244_v31  ;;  %v1252_v23 = vsel %vm286_vm0, %v6763_v47, 0.0  ;;  %v6778_v1 = vld [vmem:[#allocation61_spill] sm:$0xff]  ;;  %v6779_v22 = vld [vmem:[#allocation74_spill] sm:$0xff]  ;;  %v6782_v13 = vld [vmem:[#allocation96_spill] sm:$0xff] }
 0x1ba   : > { %v1253_v2 = vadd.f32 %v1252_v23, %v1251_v21  ;;  %v1254_v42 = vsel %vm286_vm0, %v6764_v11, 0.0  ;;  %v1256_v26 = vsel %vm286_vm0, %v6765_v63, 0.0  ;;  %v1258_v29 = vsel %vm286_vm0, %v6766_v32, 0.0  ;;  %v6783_v61 = vld [vmem:[#allocation78_spill] sm:$0xff]  ;;  %v6784_v21 = vld [vmem:[#allocation91_spill] sm:$0xff]  ;;  %v6785_v47 = vld [vmem:[#allocation101_spill] sm:$0xff] }
 0x1bb   : > { %6762 = vst [vmem:[#allocation109_spill] sm:$0xff] %v4792_v24  ;;  %v4802_v18 = vadd.f32 %v1242_v20, %v1241_v48  ;;  %v1248_v51 = vadd.f32 %v1247_v9, %v1246_v37  ;;  %v1259_v3 = vsel %vm286_vm0, %v6768_v44, 0.0  ;;  %v1261_v15 = vsel %vm286_vm0, %v6769_v4, 0.0  ;;  %v6787_v11 = vld [vmem:[#allocation93_spill] sm:$0xff]  ;;  %v6792_v4 = vld [vmem:[#allocation100_spill] sm:$0xff]  ;;  %v6846_v33 = vld [vmem:[#allocation158_spill] sm:$0xff] }
 0x1bc   : > { %v1061_v39 = vmul.f32 %v6770_v40, %v6770_v40  ;;  %v1255_v10 = vadd.f32 %v1254_v42, %v1253_v2  ;;  %v1260_v25 = vadd.f32 %v1259_v3, %v1258_v29  ;;  %v1265_v14 = vsel %vm286_vm0, %v6771_v49, 0.0  ;;  %v6786_v2 = vld [vmem:[#allocation86_spill] sm:$0xff]  ;;  %v6789_v29 = vld [vmem:[#allocation151_spill] sm:$0xff]  ;;  %v6791_v3 = vld [vmem:[#allocation152_spill] sm:$0xff] }
 0x1bd   : > { %6767 = vst [vmem:[#allocation110_spill] sm:$0xff] %v4802_v18  ;;  %v4812_v38 = vadd.f32 %v1249_v53, %v1248_v51  ;;  %v1263_v52 = vsel %vm286_vm0, %v6773_v17, 0.0  ;;  %v1266_v6 = vsel %vm286_vm0, %v6774_v7, 0.0  ;;  %v1268_v62 = vsel %vm286_vm0, %v6775_v35, 0.0  ;;  %v6790_v51 = vld [vmem:[#allocation95_spill] sm:$0xff]  ;;  %v6794_v40 = vld [vmem:[#allocation124_spill] sm:$0xff] }
 0x1be   : > { %v4820_v41 = vadd.f32 %v1256_v26, %v1255_v10  ;;  %v1262_v5 = vadd.f32 %v1261_v15, %v1260_v25  ;;  %v1267_v36 = vadd.f32 %v1266_v6, %v1265_v14  ;;  %v1272_v45 = vsel %vm286_vm0, %v6777_v8, 0.0  ;;  %v6795_v49 = vld [vmem:[#allocation83_spill] sm:$0xff]  ;;  %v6796_v14 = vld [vmem:[#allocation125_spill] sm:$0xff]  ;;  %v6798_v7 = vld [vmem:[#allocation126_spill] sm:$0xff] }
 0x1bf   : > { %6772 = vst [vmem:[#allocation111_spill] sm:$0xff] %v4812_v38  ;;  %v1270_v19 = vsel %vm286_vm0, %v4658_v56, 0.0  ;;  %v1273_v20 = vsel %vm286_vm0, %v6778_v1, 0.0  ;;  %v1275_v34 = vsel %vm286_vm0, %v6779_v22, 0.0  ;;  %v1279_v31 = vsel %vm286_vm0, %v6780_v16, 0.0  ;;  %v6799_v35 = vld [vmem:[#allocation87_spill] sm:$0xff] }
 0x1c0   : > { %6776 = vst [vmem:[#allocation112_spill] sm:$0xff] %v4820_v41  ;;  %v4832_v28 = vadd.f32 %v1263_v52, %v1262_v5  ;;  %v1269_v55 = vadd.f32 %v1268_v62, %v1267_v36  ;;  %v1274_v9 = vadd.f32 %v1273_v20, %v1272_v45  ;;  %v1280_v53 = vsel %vm286_vm0, %v6782_v13, 0.0  ;;  %v6797_v52 = vld [vmem:[#allocation84_spill] sm:$0xff]  ;;  %v6800_v62 = vld [vmem:[#allocation129_spill] sm:$0xff]  ;;  %v6803_v8 = vld [vmem:[#allocation134_spill] sm:$0xff] }
 0x1c1   : > { %v878_v48 = vsub.f32 %v6784_v21, %v6783_v61  ;;  %v1277_v56 = vsel %vm286_vm0, %v4664_v54, 0.0  ;;  %v1281_v37 = vadd.f32 %v1280_v53, %v1279_v31  ;;  %v1282_v23 = vsel %vm286_vm0, %v6785_v47, 0.0  ;;  %v6793_v54 = vld [vmem:[#allocation63_spill] sm:$0xff]  ;;  %v6802_v36 = vld [vmem:[#allocation89_spill] sm:$0xff]  ;;  %v6806_v22 = vld [vmem:[#allocation90_spill] sm:$0xff] }
 0x1c2   : > { %6781 = vst [vmem:[#allocation113_spill] sm:$0xff] %v4832_v28  ;;  %v879_v42 = vsub.f32 %v6787_v11, %v6786_v2  ;;  %v4844_v63 = vadd.f32 %v1270_v19, %v1269_v55  ;;  %v1276_v26 = vadd.f32 %v1275_v34, %v1274_v9  ;;  %v1284_v32 = vsel %vm286_vm0, %v1061_v39, 0.0  ;;  %v6804_v19 = vld [vmem:[#allocation88_spill] sm:$0xff]  ;;  %v6805_v1 = vld [vmem:[#allocation139_spill] sm:$0xff]  ;;  %v6807_v34 = vld [vmem:[#allocation141_spill] sm:$0xff] }
 0x1c3   : > { %v880_v44 = vsub.f32 %v6790_v51, %v6789_v29  ;;  %v4851_v15 = vsub.f32 %v6792_v4, %v6791_v3  ;;  %v902_v10 = vsub.f32 %v6794_v40, %v6793_v54  ;;  %v1283_v25 = vadd.f32 %v1282_v23, %v1281_v37  ;;  %v6809_v55 = vld [vmem:[#allocation77_spill] sm:$0xff]  ;;  %v6810_v9 = vld [vmem:[#allocation142_spill] sm:$0xff]  ;;  %v6811_v53 = vld [vmem:[#allocation143_spill] sm:$0xff] }
 0x1c4   : > { %6788 = vst [vmem:[#allocation115_spill] sm:$0xff] %v4844_v63  ;;  %v903_v17 = vsub.f32 %v6796_v14, %v6795_v49  ;;  %v904_v6 = vsub.f32 %v6798_v7, %v6797_v52  ;;  %v4861_v39 = vsub.f32 %v6800_v62, %v6799_v35  ;;  %v4863_v5 = vadd.f32 %v1277_v56, %v1276_v26  ;;  %v6812_v56 = vld [vmem:[#allocation144_spill] sm:$0xff]  ;;  %v6813_v47 = vld [vmem:[#allocation145_spill] sm:$0xff]  ;;  %v6814_v11 = vld [vmem:[#allocation146_spill] sm:$0xff] }
 0x1c5   : > { %v4867_v45 = vsub.f32 %v6803_v8, %v6802_v36  ;;  %v4871_v20 = vsub.f32 %v6805_v1, %v6804_v19  ;;  %v4875_v16 = vsub.f32 %v6807_v34, %v6806_v22  ;;  %v4877_v31 = vadd.f32 %v1284_v32, %v1283_v25  ;;  %v6815_v32 = vld [vmem:[#allocation9_spill] sm:$0xff]  ;;  %v6816_v4 = vld [vmem:[#allocation10_spill] sm:$0xff]  ;;  %v6818_v25 = vld [vmem:[#allocation12_spill] sm:$0xff] }
 0x1c6   : > { %6801 = vst [vmem:[#allocation117_spill] sm:$0xff] %v4863_v5  ;;  %v4881_v13 = vsub.f32 %v6810_v9, %v6809_v55  ;;  %v4885_v21 = vsub.f32 %v6811_v53, %v6783_v61  ;;  %v4889_v37 = vsub.f32 %v6812_v56, %v6786_v2  ;;  %v4893_v23 = vsub.f32 %v6813_v47, %v6789_v29  ;;  %v6817_v61 = vld [vmem:[#allocation11_spill] sm:$0xff]  ;;  %v6819_v49 = vld [vmem:[#allocation13_spill] sm:$0xff]  ;;  %v6820_v14 = vld [vmem:[#allocation14_spill] sm:$0xff] }
 0x1c7   : > { %6808 = vst [vmem:[#allocation23_spill] sm:$0xff] %v4877_v31  ;;  %v4897_v26 = vsub.f32 %v6814_v11, %v6791_v3  ;;  %v934_v51 = vmul.f32 %v6815_v32, %v6815_v32  ;;  %v935_v54 = vmul.f32 %v6816_v4, %v6816_v4  ;;  %v936_v40 = vmul.f32 %v6817_v61, %v6817_v61  ;;  %v6821_v3 = vld [vmem:[#allocation15_spill] sm:$0xff]  ;;  %v6822_v35 = vld [vmem:[#allocation16_spill] sm:$0xff]  ;;  %v6823_v36 = vld [vmem:[#allocation17_spill] sm:$0xff] }
 0x1c8   : > { %v937_v2 = vmul.f32 %v6818_v25, %v6818_v25  ;;  %v938_v29 = vmul.f32 %v6819_v49, %v6819_v49  ;;  %v4911_v52 = vmul.f32 %v6820_v14, %v6820_v14  ;;  %v4915_v7 = vmul.f32 %v6821_v3, %v6821_v3  ;;  %v6824_v19 = vld [vmem:[#allocation18_spill] sm:$0xff]  ;;  %v6825_v22 = vld [vmem:[#allocation19_spill] sm:$0xff]  ;;  %v6826_v55 = vld [vmem:[#allocation20_spill] sm:$0xff] }
 0x1c9   : > { %v4919_v62 = vmul.f32 %v6822_v35, %v6822_v35  ;;  %v4923_v8 = vmul.f32 %v6823_v36, %v6823_v36  ;;  %v4927_v1 = vmul.f32 %v6824_v19, %v6824_v19  ;;  %v4931_v34 = vmul.f32 %v6825_v22, %v6825_v22  ;;  %v6827_v53 = vld [vmem:[#allocation36_spill] sm:$0xff]  ;;  %v6828_v47 = vld [vmem:[#allocation37_spill] sm:$0xff]  ;;  %v6829_v32 = vld [vmem:[#allocation38_spill] sm:$0xff] }
 0x1ca   : > { %v4935_v9 = vmul.f32 %v6826_v55, %v6826_v55  ;;  %v966_v56 = vmul.f32 %v6827_v53, %v6827_v53  ;;  %v967_v11 = vmul.f32 %v6828_v47, %v6828_v47  ;;  %v968_v4 = vmul.f32 %v6829_v32, %v6829_v32  ;;  %v6830_v61 = vld [vmem:[#allocation39_spill] sm:$0xff]  ;;  %v6831_v49 = vld [vmem:[#allocation40_spill] sm:$0xff]  ;;  %v6832_v3 = vld [vmem:[#allocation41_spill] sm:$0xff] }
 0x1cb   : > { %v969_v25 = vmul.f32 %v6830_v61, %v6830_v61  ;;  %v970_v14 = vmul.f32 %v6831_v49, %v6831_v49  ;;  %v971_v35 = vmul.f32 %v6832_v3, %v6832_v3  ;;  %v6833_v36 = vld [vmem:[#allocation42_spill] sm:$0xff]  ;;  %v6834_v22 = vld [vmem:[#allocation43_spill] sm:$0xff]  ;;  %v6835_v53 = vld [vmem:[#allocation44_spill] sm:$0xff]  ;;  %v1076_v27 = vsel %vm286_vm0, %v936_v40, 0.0 }
 0x1cc   : > { %v4951_v19 = vmul.f32 %v6833_v36, %v6833_v36  ;;  %v4955_v55 = vmul.f32 %v6834_v22, %v6834_v22  ;;  %v4959_v47 = vmul.f32 %v6835_v53, %v6835_v53  ;;  %v6836_v32 = vld [vmem:[#allocation46_spill] sm:$0xff]  ;;  %v6837_v49 = vld [vmem:[#allocation48_spill] sm:$0xff]  ;;  %v6841_v53 = vld [vmem:[#allocation153_spill] sm:$0xff]  ;;  %v1063_v60 = vsel %vm286_vm0, %v966_v56, 0.0 }
 0x1cd   : > { %v4963_v61 = vmul.f32 %v6836_v32, %v6836_v32  ;;  %v4967_v31 = vmul.f32 %v6837_v49, %v6837_v49  ;;  %v6838_v3 = vld [vmem:[#allocation50_spill] sm:$0xff]  ;;  %v1000_v41 = vmul.f32 %v6841_v53, %v6841_v53  ;;  %v6843_v18 = vld [vmem:[#allocation155_spill] sm:$0xff]  ;;  %v6844_v24 = vld [vmem:[#allocation156_spill] sm:$0xff]  ;;  %v1062_v53 = vsel %vm286_vm0, %v934_v51, 0.0 }
 0x1ce   : > { %v4971_v36 = vmul.f32 %v6838_v3, %v6838_v3  ;;  %v6839_v5 = vld [vmem:[#allocation94_spill] sm:$0xff]  ;;  %v1002_v49 = vmul.f32 %v6843_v18, %v6843_v18  ;;  %v1003_v50 = vmul.f32 %v6844_v24, %v6844_v24  ;;  %v6845_v3 = vld [vmem:[#allocation157_spill] sm:$0xff]  ;;  %v1070_v18 = vsel %vm286_vm0, %v967_v11, 0.0 }
 0x1cf   : > { %v998_v22 = vmul.f32 %v6839_v5, %v6839_v5  ;;  %v6840_v63 = vld [vmem:[#allocation22_spill] sm:$0xff]  ;;  %v1004_v43 = vmul.f32 %v6845_v3, %v6845_v3  ;;  %v4989_v5 = vmul.f32 %v6846_v33, %v6846_v33  ;;  %v1077_v24 = vsel %vm286_vm0, %v968_v4, 0.0 }
 0x1d0   : > { %v999_v28 = vmul.f32 %v6840_v63, %v6840_v63  ;;  %v6842_v38 = vld [vmem:[#allocation154_spill] sm:$0xff]  ;;  %v4991_v63 = vmul.f32 %v878_v48, %v878_v48  ;;  %v4999_v0 = vmul.f32 %v879_v42, %v879_v42  ;;  %v5001_v3 = vmul.f32 %v880_v44, %v880_v44 }
 0x1d1   : > { %v1001_v32 = vmul.f32 %v6842_v38, %v6842_v38  ;;  %v1069_v38 = vsel %vm286_vm0, %v935_v54, 0.0  ;;  %v1083_v33 = vsel %vm286_vm0, %v937_v2, 0.0  ;;  %v1084_v48 = vsel %vm286_vm0, %v969_v25, 0.0 }
 0x1d2   : > { %v1030_v57 = vmul.f32 %v902_v10, %v902_v10  ;;  %v1031_v51 = vmul.f32 %v903_v17, %v903_v17  ;;  %v1032_v59 = vmul.f32 %v904_v6, %v904_v6  ;;  %v1064_v56 = vadd.f32 %v1063_v60, %v1062_v53 }
 0x1d3   : > { %v1071_v30 = vadd.f32 %v1070_v18, %v1069_v38  ;;  %v1078_v54 = vadd.f32 %v1077_v24, %v1076_v27  ;;  %v1090_v11 = vsel %vm286_vm0, %v938_v29, 0.0  ;;  %v1091_v40 = vsel %vm286_vm0, %v970_v14, 0.0 }
 0x1d4   : > { %v1065_v4 = vsel %vm286_vm0, %v998_v22, 0.0  ;;  %v1072_v42 = vsel %vm286_vm0, %v999_v28, 0.0  ;;  %v1079_v44 = vsel %vm286_vm0, %v1000_v41, 0.0  ;;  %v1085_v58 = vadd.f32 %v1084_v48, %v1083_v33 }
 0x1d5   : > { %v1009_v2 = vmul.f32 %v4851_v15, %v4851_v15  ;;  %v1033_v10 = vmul.f32 %v4861_v39, %v4861_v39  ;;  %v1034_v27 = vmul.f32 %v4867_v45, %v4867_v45  ;;  %v1086_v60 = vsel %vm286_vm0, %v1001_v32, 0.0 }
 0x1d6   : > { %v1035_v17 = vmul.f32 %v4871_v20, %v4871_v20  ;;  %v1036_v28 = vmul.f32 %v4875_v16, %v4875_v16  ;;  %v1037_v41 = vmul.f32 %v4881_v13, %v4881_v13  ;;  %v1092_v6 = vadd.f32 %v1091_v40, %v1090_v11  ;;  %v6847_v40 = vld [vmem:[#allocation92_spill] sm:$0xff] }
 0x1d7   : > { %v1066_v29 = vadd.f32 %v1065_v4, %v1064_v56  ;;  %v1073_v15 = vadd.f32 %v1072_v42, %v1071_v30  ;;  %v1080_v25 = vadd.f32 %v1079_v44, %v1078_v54  ;;  %v1093_v39 = vsel %vm286_vm0, %v1002_v49, 0.0 }
 0x1d8   : > { %v1067_v14 = vsel %vm286_vm0, %v1030_v57, 0.0  ;;  %v1074_v45 = vsel %vm286_vm0, %v1031_v51, 0.0  ;;  %v1081_v22 = vsel %vm286_vm0, %v1032_v59, 0.0  ;;  %v1087_v32 = vadd.f32 %v1086_v60, %v1085_v58 }
 0x1d9   : > { %v1038_v20 = vmul.f32 %v4885_v21, %v4885_v21  ;;  %v1088_v16 = vsel %vm286_vm0, %v1033_v10, 0.0  ;;  %v1097_v13 = vsel %vm286_vm0, %v4911_v52, 0.0  ;;  %v1098_v30 = vsel %vm286_vm0, %v971_v35, 0.0 }
 0x1da   : > { %v1039_v49 = vmul.f32 %v4889_v37, %v4889_v37  ;;  %v1040_v57 = vmul.f32 %v4893_v23, %v4893_v23  ;;  %v1041_v59 = vmul.f32 %v4897_v26, %v4897_v26  ;;  %v1094_v58 = vadd.f32 %v1093_v39, %v1092_v6 }
 0x1db   : > { %v1068_v53 = vadd.f32 %v1067_v14, %v1066_v29  ;;  %v1075_v38 = vadd.f32 %v1074_v45, %v1073_v15  ;;  %v1082_v21 = vadd.f32 %v1081_v22, %v1080_v25  ;;  %v1095_v18 = vsel %vm286_vm0, %v1034_v27, 0.0 }
 0x1dc   : > { %v1089_v24 = vadd.f32 %v1088_v16, %v1087_v32  ;;  %v1099_v33 = vadd.f32 %v1098_v30, %v1097_v13  ;;  %v1100_v52 = vsel %vm286_vm0, %v1003_v50, 0.0  ;;  %v1102_v35 = vsel %vm286_vm0, %v1035_v17, 0.0 }
 0x1dd   : > { %v1104_v37 = vsel %vm286_vm0, %v4915_v7, 0.0  ;;  %v1105_v23 = vsel %vm286_vm0, %v4951_v19, 0.0  ;;  %v1107_v26 = vsel %vm286_vm0, %v1004_v43, 0.0  ;;  %v1109_v48 = vsel %vm286_vm0, %v1036_v28, 0.0 }
 0x1de   : > { %v1096_v51 = vadd.f32 %v1095_v18, %v1094_v58  ;;  %v1111_v56 = vsel %vm286_vm0, %v4919_v62, 0.0  ;;  %v1112_v54 = vsel %vm286_vm0, %v4955_v55, 0.0  ;;  %v1118_v50 = vsel %vm286_vm0, %v4923_v8, 0.0 }
 0x1df   : > { %v1119_v7 = vsel %vm286_vm0, %v4959_v47, 0.0  ;;  %v1125_v19 = vsel %vm286_vm0, %v4927_v1, 0.0  ;;  %v1126_v43 = vsel %vm286_vm0, %v4963_v61, 0.0  ;;  %v1132_v11 = vsel %vm286_vm0, %v4931_v34, 0.0 }
 0x1e0   : > { %v1133_v62 = vsel %vm286_vm0, %v4967_v31, 0.0  ;;  %v1139_v55 = vsel %vm286_vm0, %v4935_v9, 0.0  ;;  %v1140_v8 = vsel %vm286_vm0, %v4971_v36, 0.0  ;;  %v1286_v47 = vmul.f32 %v1068_v53, %v6847_v40 }
 0x1e1   : > { %v1101_v4 = vadd.f32 %v1100_v52, %v1099_v33  ;;  %v1106_v42 = vadd.f32 %v1105_v23, %v1104_v37  ;;  %v1113_v1 = vadd.f32 %v1112_v54, %v1111_v56  ;;  %v1114_v61 = vsel %vm286_vm0, %v4989_v5, 0.0  ;;  %v6848_v56 = vld [vmem:[#allocation103_spill] sm:$0xff] }
 0x1e2   : > { %v1116_v44 = vsel %vm286_vm0, %v1037_v41, 0.0  ;;  %v1120_v34 = vadd.f32 %v1119_v7, %v1118_v50  ;;  %v1121_v31 = vsel %vm286_vm0, %v4991_v63, 0.0  ;;  %v1128_v9 = vsel %vm286_vm0, %v4999_v0, 0.0  ;;  %v6849_v50 = vld [vmem:[#allocation104_spill] sm:$0xff] }
 0x1e3   : > { %v1127_v10 = vadd.f32 %v1126_v43, %v1125_v19  ;;  %v1134_v27 = vadd.f32 %v1133_v62, %v1132_v11  ;;  %v1141_v36 = vadd.f32 %v1140_v8, %v1139_v55  ;;  %v1287_v60 = vmul.f32 %v1075_v38, %v6847_v40  ;;  %v6850_v43 = vld [vmem:[#allocation105_spill] sm:$0xff]  ;;  %v6851_v62 = vld [vmem:[#allocation114_spill] sm:$0xff] }
 0x1e4   : > { %v1135_v17 = vsel %vm286_vm0, %v5001_v3, 0.0  ;;  %v1142_v28 = vsel %vm286_vm0, %v1009_v2, 0.0  ;;  %v1288_v5 = vmul.f32 %v1082_v21, %v6847_v40  ;;  %v5081_v41 = vadd.f32 1e-08, %v1286_v47 }
 0x1e5   : > { %v1103_v6 = vadd.f32 %v1102_v35, %v1101_v4  ;;  %v1108_v29 = vadd.f32 %v1107_v26, %v1106_v42  ;;  %v1115_v63 = vadd.f32 %v1114_v61, %v1113_v1  ;;  %v1289_v15 = vmul.f32 %v1089_v24, %v6847_v40  ;;  %v6853_v4 = vld [vmem:[#allocation51_spill] sm:$0xff]  ;;  %v6854_v1 = vld [vmem:[#allocation53_spill] sm:$0xff] }
 0x1e6   : > { %v1122_v0 = vadd.f32 %v1121_v31, %v1120_v34  ;;  %v1123_v25 = vsel %vm286_vm0, %v1038_v20, 0.0  ;;  %v1130_v39 = vsel %vm286_vm0, %v1039_v49, 0.0  ;;  %v1137_v14 = vsel %vm286_vm0, %v1040_v57, 0.0 }
 0x1e7   : > { %v1129_v45 = vadd.f32 %v1128_v9, %v1127_v10  ;;  %v1136_v3 = vadd.f32 %v1135_v17, %v1134_v27  ;;  %v1143_v22 = vadd.f32 %v1142_v28, %v1141_v36  ;;  %v5087_v2 = vadd.f32 1e-08, %v1287_v60  ;;  %v6856_v9 = vld [vmem:[#allocation107_spill] sm:$0xff]  ;;  %v6857_v27 = vld [vmem:[#allocation108_spill] sm:$0xff]  ;;  %v6858_v60 = vld [vmem:[#allocation109_spill] sm:$0xff] }
 0x1e8   : > { %v1144_v32 = vsel %vm286_vm0, %v1041_v59, 0.0  ;;  %v1290_v16 = vmul.f32 %v1096_v51, %v6847_v40  ;;  %v5091_v13 = vadd.f32 1e-08, %v1288_v5  ;;  %2542 = vrsqrt.f32 %v5081_v41  ;;  %v6859_v5 = vld [vmem:[#allocation110_spill] sm:$0xff] }
 0x1e9   : > { %v5094_v30 = vadd.f32 1e-08, %v1289_v15  ;;  %v1110_v20 = vadd.f32 %v1109_v48, %v1108_v29  ;;  %v1117_v58 = vadd.f32 %v1116_v44, %v1115_v63  ;;  %v1124_v49 = vadd.f32 %v1123_v25, %v1122_v0  ;;  %v6855_v44 = vld [vmem:[#allocation106_spill] sm:$0xff]  ;;  %v6860_v29 = vld [vmem:[#allocation111_spill] sm:$0xff]  ;;  %v6861_v15 = vld [vmem:[#allocation112_spill] sm:$0xff] }
 0x1ea   : > { %v1291_v57 = vmul.f32 %v1103_v6, %v6847_v40  ;;  %v1131_v53 = vadd.f32 %v1130_v39, %v1129_v45  ;;  %v1138_v38 = vadd.f32 %v1137_v14, %v1136_v3  ;;  %v1145_v21 = vadd.f32 %v1144_v32, %v1143_v22  ;;  %v6862_v39 = vld [vmem:[#allocation113_spill] sm:$0xff]  ;;  %v6863_v45 = vld [vmem:[#allocation115_spill] sm:$0xff] }
 0x1eb   : > { %2544 = vrsqrt.f32 %v5087_v2  ;;  %v5098_v18 = vadd.f32 1e-08, %v1290_v16  ;;  %v1292_v24 = vmul.f32 %v1110_v20, %v6847_v40  ;;  %v1293_v33 = vmul.f32 %v1117_v58, %v6847_v40 }
 0x1ec   : > { %2546 = vrsqrt.f32 %v5091_v13  ;;  %v1294_v52 = vmul.f32 %v1124_v49, %v6847_v40  ;;  %v5107_v35 = vadd.f32 1e-08, %v1291_v57  ;;  %v1295_v37 = vmul.f32 %v1131_v53, %v6847_v40 }
 0x1ed   : > { %2548 = vrsqrt.f32 %v5094_v30  ;;  %v1296_v23 = vmul.f32 %v1138_v38, %v6847_v40  ;;  %v1297_v26 = vmul.f32 %v1145_v21, %v6847_v40  ;;  %v1298_v48 = vmul.f32 %v4679_v46, %v6847_v40  ;;  %v6852_v46 = vld [vmem:[#allocation116_spill] sm:$0xff] }
 0x1ee   : > { %v5102_v59 = vpop.eup %2542  ;;  %v1299_v51 = vmul.f32 %v4687_v12, %v6847_v40  ;;  %v1300_v54 = vmul.f32 %v6848_v56, %v6847_v40  ;;  %v1301_v7 = vmul.f32 %v6849_v50, %v6847_v40  ;;  %2550 = vrsqrt.f32 %v5098_v18 }
 0x1ef   : > { %v1302_v11 = vmul.f32 %v6850_v43, %v6847_v40  ;;  %v1303_v55 = vmul.f32 %v6851_v62, %v6847_v40  ;;  %v1304_v8 = vmul.f32 %v6852_v46, %v6847_v40  ;;  %v1351_v12 = vmul.f32 %v5102_v59, %v5081_v41 }
 0x1f0   : > { %v1305_v42 = vmul.f32 %v6853_v4, %v6847_v40  ;;  %v1306_v61 = vmul.f32 %v6854_v1, %v6847_v40  ;;  %v1307_v34 = vmul.f32 %v6855_v44, %v6847_v40  ;;  %2552 = vrsqrt.f32 %v5107_v35  ;;  %v6864_v4 = vld [vmem:[#allocation117_spill] sm:$0xff] }
 0x1f1   : > { %v5121_v19 = vpop.eup %2544  ;;  %v1308_v10 = vmul.f32 %v6856_v9, %v6847_v40  ;;  %v1309_v36 = vmul.f32 %v6857_v27, %v6847_v40  ;;  %v1310_v17 = vmul.f32 %v6858_v60, %v6847_v40  ;;  %v5148_v28 = vadd.f32 1e-08, %v1292_v24  ;;  %v6865_v27 = vld [vmem:[#allocation23_spill] sm:$0xff] }
 0x1f2   : > { %v5131_v47 = vpop.eup %2546  ;;  %v1311_v6 = vmul.f32 %v6859_v5, %v6847_v40  ;;  %v1312_v63 = vmul.f32 %v6860_v29, %v6847_v40  ;;  %v1313_v0 = vmul.f32 %v6861_v15, %v6847_v40  ;;  %v1363_v25 = vmul.f32 %v5121_v19, %v5087_v2 }
 0x1f3   : > { %v5140_v31 = vpop.eup %2548  ;;  %v1314_v14 = vmul.f32 %v6862_v39, %v6847_v40  ;;  %v1315_v3 = vmul.f32 %v6863_v45, %v6847_v40  ;;  %v1352_v22 = vmul.f32 %v5102_v59, %v1351_v12  ;;  %v1375_v32 = vmul.f32 %v5131_v47, %v5091_v13 }
 0x1f4   : > { %v5165_v16 = vpop.eup %2550  ;;  %v5167_v20 = vadd.f32 1e-08, %v1293_v33  ;;  %v5169_v58 = vadd.f32 1e-08, %v1294_v52  ;;  %v5171_v49 = vadd.f32 1e-08, %v1295_v37  ;;  %v1387_v57 = vmul.f32 %v5140_v31, %v5094_v30 }
 0x1f5   : > { %v5175_v53 = vadd.f32 1e-08, %v1296_v23  ;;  %v5177_v38 = vadd.f32 1e-08, %v1297_v26  ;;  %v5179_v21 = vadd.f32 1e-08, %v1298_v48  ;;  %2554 = vrsqrt.f32 %v5148_v28 }
 0x1f6   : > { %v5182_v24 = vpop.eup %2552  ;;  %v5184_v56 = vadd.f32 1e-08, %v1299_v51  ;;  %v5186_v33 = vadd.f32 1e-08, %v1300_v54  ;;  %v5188_v52 = vadd.f32 1e-08, %v1301_v7  ;;  %v1364_v37 = vmul.f32 %v5121_v19, %v1363_v25 }
 0x1f7   : > { %v5191_v50 = vadd.f32 1e-08, %v1302_v11  ;;  %v1353_v23 = vmul.f32 0.5, %v1352_v22  ;;  %v1376_v26 = vmul.f32 %v5131_v47, %v1375_v32  ;;  %v1399_v48 = vmul.f32 %v5165_v16, %v5098_v18 }
 0x1f8   : > { %v5196_v43 = vadd.f32 1e-08, %v1303_v55  ;;  %v5198_v62 = vadd.f32 1e-08, %v1304_v8  ;;  %v5200_v51 = vadd.f32 1e-08, %v1305_v42  ;;  %v1388_v54 = vmul.f32 %v5140_v31, %v1387_v57 }
 0x1f9   : > { %v5203_v7 = vadd.f32 1e-08, %v1306_v61  ;;  %v5205_v46 = vadd.f32 1e-08, %v1307_v34  ;;  %v5207_v11 = vadd.f32 1e-08, %v1308_v10  ;;  %v1411_v12 = vmul.f32 %v5182_v24, %v5107_v35 }
 0x1fa   : > { %v1316_v1 = vmul.f32 %v6864_v4, %v6847_v40  ;;  %v5213_v55 = vadd.f32 1e-08, %v1309_v36  ;;  %v5215_v8 = vadd.f32 1e-08, %v1310_v17  ;;  %v1365_v42 = vmul.f32 0.5, %v1364_v37 }
 0x1fb   : > { %v5217_v44 = vpop.eup %2554  ;;  %v5219_v9 = vadd.f32 1e-08, %v1311_v6  ;;  %v1354_v61 = vsub.f32 1.5, %v1353_v23  ;;  %v1377_v34 = vmul.f32 0.5, %v1376_v26  ;;  %v1400_v10 = vmul.f32 %v5165_v16, %v1399_v48 }
 0x1fc   : > { %v1317_v60 = vmul.f32 %v6865_v27, %v6847_v40  ;;  %v5224_v5 = vadd.f32 1e-08, %v1312_v63  ;;  %v5226_v29 = vadd.f32 1e-08, %v1313_v0  ;;  %v1389_v36 = vmul.f32 0.5, %v1388_v54 }
 0x1fd   : > { %v5228_v15 = vadd.f32 1e-08, %v1314_v14  ;;  %v5230_v17 = vadd.f32 1e-08, %v1315_v3  ;;  %v1412_v25 = vmul.f32 %v5182_v24, %v1411_v12  ;;  %2556 = vrsqrt.f32 %v5167_v20 }
 0x1fe   : > { %v5234_v6 = vadd.f32 1e-08, %v1316_v1  ;;  %v1366_v39 = vsub.f32 1.5, %v1365_v42  ;;  %v1423_v45 = vmul.f32 %v5217_v44, %v5148_v28  ;;  %2558 = vrsqrt.f32 %v5169_v58 }
 0x1ff   : > { %6866 = vst [vmem:[#allocation55_spill] sm:$0xff] %v5230_v17  ;;  %v1355_v40 = vmul.f32 %v5102_v59, %v1354_v61  ;;  %v1378_v63 = vsub.f32 1.5, %v1377_v34  ;;  %v1401_v0 = vmul.f32 0.5, %v1400_v10  ;;  %2560 = vrsqrt.f32 %v5171_v49 }
 0x200   : > { %6867 = vst [vmem:[#allocation52_spill] sm:$0xff] %v5234_v6  ;;  %v5241_v14 = vadd.f32 1e-08, %v1317_v60  ;;  %vm1357_vm2 = vcmp.eq.f32.partialorder %v5081_v41, inf  ;;  %v1390_v3 = vsub.f32 1.5, %v1389_v36  ;;  %2562 = vrsqrt.f32 %v5175_v53 }
 0x201   : > { %vm1359_vm3 = vcmp.eq.f32.partialorder %v5081_v41, 0.0  ;;  %v1360_v22 = vand.u32 2147483648, %v5081_v41  ;;  %vm1369_vm4 = vcmp.eq.f32.partialorder %v5087_v2, inf  ;;  %v1413_v32 = vmul.f32 0.5, %v1412_v25 }
 0x202   : > { %6868 = vst [vmem:[#allocation81_spill] sm:$0xff] %v5241_v14  ;;  %2564 = vrsqrt.f32 %v5177_v38  ;;  %v1367_v59 = vmul.f32 %v5121_v19, %v1366_v39  ;;  %v1372_v57 = vand.u32 2147483648, %v5087_v2  ;;  %v1424_v37 = vmul.f32 %v5217_v44, %v1423_v45 }
 0x203   : > { %2566 = vrsqrt.f32 %v5179_v21  ;;  %v5253_v23 = vpop.eup %2556  ;;  %v1356_v26 = vmul.f32 %v1355_v40, %v5081_v41  ;;  %vm1371_vm5 = vcmp.eq.f32.partialorder %v5087_v2, 0.0  ;;  %v1379_v48 = vmul.f32 %v5131_v47, %v1378_v63 }
 0x204   : > { %vm1381_vm6 = vcmp.eq.f32.partialorder %v5091_v13, inf  ;;  %v1402_v54 = vsub.f32 1.5, %v1401_v0  ;;  %v5259_v12 = vpop.eup %2558  ;;  %vm1383_vm7 = vcmp.eq.f32.partialorder %v5091_v13, 0.0  ;;  %v1384_v19 = vand.u32 2147483648, %v5091_v13 }
 0x205   : > { %v1391_v4 = vmul.f32 %v5140_v31, %v1390_v3  ;;  %vm1393_vm8 = vcmp.eq.f32.partialorder %v5094_v30, inf  ;;  %v5265_v1 = vpop.eup %2560  ;;  %vm1395_vm9 = vcmp.eq.f32.partialorder %v5094_v30, 0.0  ;;  %v1396_v42 = vand.u32 2147483648, %v5094_v30 }
 0x206   : > { %vm1405_vm10 = vcmp.eq.f32.partialorder %v5098_v18, inf  ;;  %v1414_v47 = vsub.f32 1.5, %v1413_v32  ;;  %v5270_v61 = vpop.eup %2562  ;;  %v1368_v34 = vmul.f32 %v1367_v59, %v5087_v2  ;;  %v1408_v10 = vand.u32 2147483648, %v5098_v18 }
 0x207   : > { %v1425_v27 = vmul.f32 0.5, %v1424_v37  ;;  %2568 = vrsqrt.f32 %v5184_v56  ;;  %v1358_v60 = vsel %vm1357_vm2, %v5081_v41, %v1356_v26  ;;  %v1380_v36 = vmul.f32 %v1379_v48, %v5091_v13 }
 0x208   : > { %v5275_v31 = vpop.eup %2564  ;;  %v1403_v25 = vmul.f32 %v5165_v16, %v1402_v54  ;;  %vm1407_vm11 = vcmp.eq.f32.partialorder %v5098_v18, 0.0  ;;  %vm1417_vm12 = vcmp.eq.f32.partialorder %v5107_v35, inf  ;;  %v1392_v45 = vmul.f32 %v1391_v4, %v5094_v30 }
 0x209   : > { %v5284_v39 = vpop.eup %2566  ;;  %v1435_v40 = vmul.f32 %v5253_v23, %v5167_v20  ;;  %v1447_v63 = vmul.f32 %v5259_v12, %v5169_v58  ;;  %2570 = vrsqrt.f32 %v5186_v33  ;;  %v1415_v0 = vmul.f32 %v5182_v24, %v1414_v47 }
 0x20a   : > { %vm1419_vm13 = vcmp.eq.f32.partialorder %v5107_v35, 0.0  ;;  %v1459_v16 = vmul.f32 %v5265_v1, %v5171_v49  ;;  %v1471_v3 = vmul.f32 %v5270_v61, %v5175_v53  ;;  %2572 = vrsqrt.f32 %v5188_v52 }
 0x20b   : > { %v1370_v32 = vsel %vm1369_vm4, %v5087_v2, %v1368_v34  ;;  %v1420_v59 = vand.u32 2147483648, %v5107_v35  ;;  %v1426_v37 = vsub.f32 1.5, %v1425_v27  ;;  %v1483_v24 = vmul.f32 %v5275_v31, %v5177_v38 }
 0x20c   : > { %v1382_v26 = vsel %vm1381_vm6, %v5091_v13, %v1380_v36  ;;  %v1404_v48 = vmul.f32 %v1403_v25, %v5098_v18  ;;  %v1495_v54 = vmul.f32 %v5284_v39, %v5179_v21  ;;  %2574 = vrsqrt.f32 %v5191_v50 }
 0x20d   : > { %v5312_v4 = vpop.eup %2568  ;;  %v5316_v47 = vsel %vm1359_vm3, %v1360_v22, %v1358_v60  ;;  %vm1429_vm14 = vcmp.eq.f32.partialorder %v5148_v28, inf  ;;  %v1436_v34 = vmul.f32 %v5253_v23, %v1435_v40  ;;  %v1448_v27 = vmul.f32 %v5259_v12, %v1447_v63 }
 0x20e   : > { %v1394_v36 = vsel %vm1393_vm8, %v5094_v30, %v1392_v45  ;;  %v1416_v25 = vmul.f32 %v1415_v0, %v5107_v35  ;;  %v1460_v14 = vmul.f32 %v5265_v1, %v1459_v16  ;;  %v1472_v6 = vmul.f32 %v5270_v61, %v1471_v3 }
 0x20f   : > { %v5327_v17 = vpop.eup %2570  ;;  %v5331_v41 = vsel %vm1371_vm5, %v1372_v57, %v1370_v32  ;;  %v5335_v22 = vsel %vm1383_vm7, %v1384_v19, %v1382_v26  ;;  %v1427_v60 = vmul.f32 %v5217_v44, %v1426_v37  ;;  %v1484_v45 = vmul.f32 %v5275_v31, %v1483_v24 }
 0x210   : > { %v5339_v40 = vpop.eup %2572  ;;  %v1406_v63 = vsel %vm1405_vm10, %v5098_v18, %v1404_v48  ;;  %vm1431_vm15 = vcmp.eq.f32.partialorder %v5148_v28, 0.0  ;;  %v1496_v2 = vmul.f32 %v5284_v39, %v1495_v54  ;;  %v1507_v57 = vmul.f32 %v5312_v4, %v5184_v56 }
 0x211   : > { %v5350_v13 = vsel %vm1395_vm9, %v1396_v42, %v1394_v36  ;;  %v1432_v44 = vand.u32 2147483648, %v5148_v28  ;;  %v1437_v19 = vmul.f32 0.5, %v1436_v34  ;;  %v1449_v0 = vmul.f32 0.5, %v1448_v27 }
 0x212   : > { %v5353_v16 = vpop.eup %2574  ;;  %v1418_v3 = vsel %vm1417_vm12, %v5107_v35, %v1416_v25  ;;  %v1461_v32 = vmul.f32 0.5, %v1460_v14  ;;  %v1473_v37 = vmul.f32 0.5, %v1472_v6  ;;  %v1519_v24 = vmul.f32 %v5327_v17, %v5186_v33 }
 0x213   : > { %v5362_v30 = vsel %vm1407_vm11, %v1408_v10, %v1406_v63  ;;  %v1428_v42 = vmul.f32 %v1427_v60, %v5148_v28  ;;  %v1485_v26 = vmul.f32 0.5, %v1484_v45  ;;  %v1531_v48 = vmul.f32 %v5339_v40, %v5188_v52 }
 0x214   : > { %v1444_v54 = vand.u32 2147483648, %v5167_v20  ;;  %v1456_v34 = vand.u32 2147483648, %v5169_v58  ;;  %v1497_v27 = vmul.f32 0.5, %v1496_v2  ;;  %v1508_v6 = vmul.f32 %v5312_v4, %v1507_v57 }
 0x215   : > { %v5372_v14 = vsel %vm1419_vm13, %v1420_v59, %v1418_v3  ;;  %v1438_v18 = vsub.f32 1.5, %v1437_v19  ;;  %v1450_v10 = vsub.f32 1.5, %v1449_v0  ;;  %v1543_v36 = vmul.f32 %v5353_v16, %v5191_v50 }
 0x216   : > { %vm1441_vm1 = vcmp.eq.f32.partialorder %v5167_v20, inf  ;;  %vm1453_vm2 = vcmp.eq.f32.partialorder %v5169_v58, inf  ;;  %v1462_v25 = vsub.f32 1.5, %v1461_v32  ;;  %v1468_v60 = vand.u32 2147483648, %v5171_v49 }
 0x217   : > { %v1474_v45 = vsub.f32 1.5, %v1473_v37  ;;  %v1520_v63 = vmul.f32 %v5327_v17, %v1519_v24  ;;  %v1430_v35 = vsel %vm1429_vm14, %v5148_v28, %v1428_v42  ;;  %vm1465_vm3 = vcmp.eq.f32.partialorder %v5171_v49, inf }
 0x218   : > { %vm1477_vm4 = vcmp.eq.f32.partialorder %v5175_v53, inf  ;;  %v1486_v59 = vsub.f32 1.5, %v1485_v26  ;;  %v1532_v2 = vmul.f32 %v5339_v40, %v1531_v48  ;;  %v1480_v57 = vand.u32 2147483648, %v5175_v53 }
 0x219   : > { %vm1489_vm5 = vcmp.eq.f32.partialorder %v5177_v38, inf  ;;  %v1498_v19 = vsub.f32 1.5, %v1497_v27  ;;  %v1509_v0 = vmul.f32 0.5, %v1508_v6  ;;  %v1439_v3 = vmul.f32 %v5253_v23, %v1438_v18 }
 0x21a   : > { %vm1443_vm6 = vcmp.eq.f32.partialorder %v5167_v20, 0.0  ;;  %v1451_v32 = vmul.f32 %v5259_v12, %v1450_v10  ;;  %v1544_v37 = vmul.f32 %v5353_v16, %v1543_v36  ;;  %2576 = vrsqrt.f32 %v5196_v43 }
 0x21b   : > { %v5395_v24 = vsel %vm1431_vm15, %v1432_v44, %v1430_v35  ;;  %vm1455_vm7 = vcmp.eq.f32.partialorder %v5169_v58, 0.0  ;;  %v1463_v42 = vmul.f32 %v5265_v1, %v1462_v25  ;;  %vm1467_vm8 = vcmp.eq.f32.partialorder %v5171_v49, 0.0 }
 0x21c   : > { %v1475_v23 = vmul.f32 %v5270_v61, %v1474_v45  ;;  %vm1479_vm9 = vcmp.eq.f32.partialorder %v5175_v53, 0.0  ;;  %v1521_v26 = vmul.f32 0.5, %v1520_v63  ;;  %v1487_v12 = vmul.f32 %v5275_v31, %v1486_v59 }
 0x21d   : > { %vm1491_vm10 = vcmp.eq.f32.partialorder %v5177_v38, 0.0  ;;  %v1492_v48 = vand.u32 2147483648, %v5177_v38  ;;  %v1533_v28 = vmul.f32 0.5, %v1532_v2  ;;  %2578 = vrsqrt.f32 %v5198_v62 }
 0x21e   : > { %v1499_v44 = vmul.f32 %v5284_v39, %v1498_v19  ;;  %vm1501_vm11 = vcmp.eq.f32.partialorder %v5179_v21, inf  ;;  %vm1503_vm12 = vcmp.eq.f32.partialorder %v5179_v21, 0.0  ;;  %v1510_v1 = vsub.f32 1.5, %v1509_v0 }
 0x21f   : > { %v1440_v61 = vmul.f32 %v1439_v3, %v5167_v20  ;;  %v1452_v27 = vmul.f32 %v1451_v32, %v5169_v58  ;;  %v1504_v31 = vand.u32 2147483648, %v5179_v21  ;;  %v1545_v6 = vmul.f32 0.5, %v1544_v37 }
 0x220   : > { %v1464_v18 = vmul.f32 %v1463_v42, %v5171_v49  ;;  %v1476_v10 = vmul.f32 %v1475_v23, %v5175_v53  ;;  %vm1513_vm13 = vcmp.eq.f32.partialorder %v5184_v56, inf  ;;  %v1522_v36 = vsub.f32 1.5, %v1521_v26  ;;  %v5415_v39 = vpop.eup %2576 }
 0x221   : > { %v1488_v25 = vmul.f32 %v1487_v12, %v5177_v38  ;;  %v1516_v45 = vand.u32 2147483648, %v5184_v56  ;;  %v1534_v63 = vsub.f32 1.5, %v1533_v28  ;;  %2580 = vrsqrt.f32 %v5200_v51 }
 0x222   : > { %v1500_v35 = vmul.f32 %v1499_v44, %v5179_v21  ;;  %v1511_v59 = vmul.f32 %v5312_v4, %v1510_v1  ;;  %vm1525_vm15 = vcmp.eq.f32.partialorder %v5186_v33, inf  ;;  %v1528_v2 = vand.u32 2147483648, %v5186_v33 }
 0x223   : > { %v5425_v19 = vpop.eup %2578  ;;  %v1442_v0 = vsel %vm1441_vm1, %v5167_v20, %v1440_v61  ;;  %v1454_v3 = vsel %vm1453_vm2, %v5169_v58, %v1452_v27  ;;  %v1546_v32 = vsub.f32 1.5, %v1545_v6  ;;  %2582 = vrsqrt.f32 %v5203_v7 }
 0x224   : > { %v1466_v4 = vsel %vm1465_vm3, %v5171_v49, %v1464_v18  ;;  %v1478_v37 = vsel %vm1477_vm4, %v5175_v53, %v1476_v10  ;;  %v1523_v42 = vmul.f32 %v5327_v17, %v1522_v36  ;;  %vm1527_vm14 = vcmp.eq.f32.partialorder %v5186_v33, 0.0 }
 0x225   : > { %v1555_v23 = vmul.f32 %v5415_v39, %v5196_v43  ;;  %v1490_v26 = vsel %vm1489_vm5, %v5177_v38, %v1488_v25  ;;  %v1535_v12 = vmul.f32 %v5339_v40, %v1534_v63  ;;  %vm1537_vm1 = vcmp.eq.f32.partialorder %v5188_v52, inf }
 0x226   : > { %v1540_v28 = vand.u32 2147483648, %v5188_v52  ;;  %v5454_v17 = vsel %vm1443_vm6, %v1444_v54, %v1442_v0  ;;  %v1502_v44 = vsel %vm1501_vm11, %v5179_v21, %v1500_v35  ;;  %v1512_v1 = vmul.f32 %v1511_v59, %v5184_v56 }
 0x227   : > { %vm1539_vm2 = vcmp.eq.f32.partialorder %v5188_v52, 0.0  ;;  %v1567_v40 = vmul.f32 %v5425_v19, %v5198_v62  ;;  %v5463_v61 = vpop.eup %2580  ;;  %v5469_v20 = vsel %vm1455_vm7, %v1456_v34, %v1454_v3  ;;  %v5475_v54 = vsel %vm1467_vm8, %v1468_v60, %v1466_v4 }
 0x228   : > { %v5481_v27 = vsel %vm1479_vm9, %v1480_v57, %v1478_v37  ;;  %v1547_v6 = vmul.f32 %v5353_v16, %v1546_v32  ;;  %v5486_v18 = vsel %vm1491_vm10, %v1492_v48, %v1490_v26  ;;  %v1524_v58 = vmul.f32 %v1523_v42, %v5186_v33 }
 0x229   : > { %v1556_v34 = vmul.f32 %v5415_v39, %v1555_v23  ;;  %2584 = vrsqrt.f32 %v5205_v46  ;;  %v5491_v49 = vpop.eup %2582  ;;  %v5495_v60 = vsel %vm1503_vm12, %v1504_v31, %v1502_v44  ;;  %v1536_v53 = vmul.f32 %v1535_v12, %v5188_v52 }
 0x22a   : > { %vm1549_vm3 = vcmp.eq.f32.partialorder %v5191_v50, inf  ;;  %vm1551_vm4 = vcmp.eq.f32.partialorder %v5191_v50, 0.0  ;;  %v1514_v38 = vsel %vm1513_vm13, %v5184_v56, %v1512_v1  ;;  %v1568_v16 = vmul.f32 %v5425_v19, %v1567_v40 }
 0x22b   : > { %v1579_v57 = vmul.f32 %v5463_v61, %v5200_v51  ;;  %v1734_v21 = vsel %vm286_vm0, %v5316_v47, 0.0  ;;  %v1548_v48 = vmul.f32 %v1547_v6, %v5191_v50  ;;  %2586 = vrsqrt.f32 %v5207_v11 }
 0x22c   : > { %v1735_v31 = vsel %vm286_vm0, %v5331_v41, 0.0  ;;  %v1737_v10 = vsel %vm286_vm0, %v5335_v22, 0.0  ;;  %v1526_v36 = vsel %vm1525_vm15, %v5186_v33, %v1524_v58  ;;  %v1557_v25 = vmul.f32 0.5, %v1556_v34 }
 0x22d   : > { %v1591_v63 = vmul.f32 %v5491_v49, %v5203_v7  ;;  %v1736_v35 = vadd.f32 %v1735_v31, %v1734_v21  ;;  %vm6869_vm5 = vcmp.eq.f32.partialorder %v5184_v56, 0.0  ;;  %v1538_v41 = vsel %vm1537_vm1, %v5188_v52, %v1536_v53 }
 0x22e   : > { %v5521_v47 = vsel %vm6869_vm5, %v1516_v45, %v1514_v38  ;;  %v1552_v59 = vand.u32 2147483648, %v5191_v50  ;;  %2588 = vrsqrt.f32 %v5213_v55  ;;  %v1569_v0 = vmul.f32 0.5, %v1568_v16 }
 0x22f   : > { %v5528_v22 = vpop.eup %2584  ;;  %v1580_v3 = vmul.f32 %v5463_v61, %v1579_v57  ;;  %v1738_v32 = vadd.f32 %v1737_v10, %v1736_v35  ;;  %v1739_v4 = vsel %vm286_vm0, %v5350_v13, 0.0  ;;  %v5535_v56 = vsel %vm1527_vm14, %v1528_v2, %v1526_v36 }
 0x230   : > { %v1550_v45 = vsel %vm1549_vm3, %v5191_v50, %v1548_v48  ;;  %v1564_v37 = vand.u32 2147483648, %v5196_v43  ;;  %v1576_v42 = vand.u32 2147483648, %v5198_v62  ;;  %v1558_v23 = vsub.f32 1.5, %v1557_v25 }
 0x231   : > { %v1592_v26 = vmul.f32 %v5491_v49, %v1591_v63  ;;  %2590 = vrsqrt.f32 %v5215_v8  ;;  %v1741_v13 = vsel %vm286_vm0, %v5362_v30, 0.0  ;;  %v5546_v12 = vpop.eup %2586  ;;  %v5550_v33 = vsel %vm1539_vm2, %v1540_v28, %v1538_v41 }
 0x232   : > { %vm1561_vm6 = vcmp.eq.f32.partialorder %v5196_v43, inf  ;;  %v1588_v2 = vand.u32 2147483648, %v5200_v51  ;;  %v1603_v44 = vmul.f32 %v5528_v22, %v5205_v46  ;;  %v1740_v1 = vadd.f32 %v1739_v4, %v1738_v32 }
 0x233   : > { %v1570_v40 = vsub.f32 1.5, %v1569_v0  ;;  %v1581_v6 = vmul.f32 0.5, %v1580_v3  ;;  %2592 = vrsqrt.f32 %v5219_v9  ;;  %v1743_v30 = vsel %vm286_vm0, %v5372_v14, 0.0 }
 0x234   : > { %v5559_v58 = vpop.eup %2588  ;;  %v5563_v52 = vsel %vm1551_vm4, %v1552_v59, %v1550_v45  ;;  %vm1573_vm7 = vcmp.eq.f32.partialorder %v5198_v62, inf  ;;  %v1600_v28 = vand.u32 2147483648, %v5203_v7  ;;  %v1612_v34 = vand.u32 2147483648, %v5205_v46 }
 0x235   : > { %v1742_v53 = vadd.f32 %v1741_v13, %v1740_v1  ;;  %v1559_v38 = vmul.f32 %v5415_v39, %v1558_v23  ;;  %v1593_v16 = vmul.f32 0.5, %v1592_v26  ;;  %v1615_v57 = vmul.f32 %v5546_v12, %v5207_v11 }
 0x236   : > { %v1745_v14 = vsel %vm286_vm0, %v5395_v24, 0.0  ;;  %vm1563_vm8 = vcmp.eq.f32.partialorder %v5196_v43, 0.0  ;;  %v1604_v50 = vmul.f32 %v5528_v22, %v1603_v44  ;;  %v1624_v21 = vand.u32 2147483648, %v5207_v11 }
 0x237   : > { %2594 = vrsqrt.f32 %v5224_v5  ;;  %v1744_v48 = vadd.f32 %v1743_v30, %v1742_v53  ;;  %v5577_v31 = vpop.eup %2590  ;;  %v1571_v39 = vmul.f32 %v5425_v19, %v1570_v40  ;;  %vm1575_vm9 = vcmp.eq.f32.partialorder %v5198_v62, 0.0  ;;  %v6870_v40 = vld [vmem:[#allocation55_spill] sm:$0xff] }
 0x238   : > { %v1582_v10 = vsub.f32 1.5, %v1581_v6  ;;  %v1636_v36 = vand.u32 2147483648, %v5213_v55  ;;  %v1747_v24 = vsel %vm286_vm0, %v5454_v17, 0.0  ;;  %vm1585_vm10 = vcmp.eq.f32.partialorder %v5200_v51, inf }
 0x239   : > { %v1627_v25 = vmul.f32 %v5559_v58, %v5213_v55  ;;  %v1648_v63 = vand.u32 2147483648, %v5215_v8  ;;  %2596 = vrsqrt.f32 %v5226_v29  ;;  %v1746_v35 = vadd.f32 %v1745_v14, %v1744_v48  ;;  %v5589_v41 = vpop.eup %2592  ;;  %v6871_v14 = vld [vmem:[#allocation52_spill] sm:$0xff] }
 0x23a   : > { %v1560_v19 = vmul.f32 %v1559_v38, %v5196_v43  ;;  %v1594_v59 = vsub.f32 1.5, %v1593_v16  ;;  %v1616_v0 = vmul.f32 %v5546_v12, %v1615_v57  ;;  %v1749_v17 = vsel %vm286_vm0, %v5469_v20, 0.0 }
 0x23b   : > { %v1605_v3 = vmul.f32 0.5, %v1604_v50  ;;  %v1639_v32 = vmul.f32 %v5577_v31, %v5215_v8  ;;  %2598 = vrsqrt.f32 %v5228_v15  ;;  %v1748_v4 = vadd.f32 %v1747_v24, %v1746_v35  ;;  %v6872_v35 = vld [vmem:[#allocation81_spill] sm:$0xff] }
 0x23c   : > { %v1572_v45 = vmul.f32 %v1571_v39, %v5198_v62  ;;  %v1583_v23 = vmul.f32 %v5463_v61, %v1582_v10  ;;  %vm1587_vm11 = vcmp.eq.f32.partialorder %v5200_v51, 0.0  ;;  %vm1597_vm12 = vcmp.eq.f32.partialorder %v5203_v7, inf }
 0x23d   : > { %v1660_v26 = vand.u32 2147483648, %v5219_v9  ;;  %v1751_v20 = vsel %vm286_vm0, %v5475_v54, 0.0  ;;  %v5605_v13 = vpop.eup %2594  ;;  %v1628_v44 = vmul.f32 %v5559_v58, %v1627_v25  ;;  %v1651_v1 = vmul.f32 %v5589_v41, %v5219_v9 }
 0x23e   : > { %2600 = vrsqrt.f32 %v6870_v40  ;;  %v1750_v6 = vadd.f32 %v1749_v17, %v1748_v4  ;;  %v1562_v61 = vsel %vm1561_vm6, %v5196_v43, %v1560_v19  ;;  %v1595_v30 = vmul.f32 %v5491_v49, %v1594_v59 }
 0x23f   : > { %v1617_v53 = vmul.f32 0.5, %v1616_v0  ;;  %v1753_v54 = vsel %vm286_vm0, %v5481_v27, 0.0  ;;  %v5617_v38 = vpop.eup %2596  ;;  %v1606_v16 = vsub.f32 1.5, %v1605_v3  ;;  %v1640_v57 = vmul.f32 %v5577_v31, %v1639_v32 }
 0x240   : > { %2602 = vrsqrt.f32 %v6871_v14  ;;  %v1752_v50 = vadd.f32 %v1751_v20, %v1750_v6  ;;  %v1574_v48 = vsel %vm1573_vm7, %v5198_v62, %v1572_v45  ;;  %v1584_v39 = vmul.f32 %v1583_v23, %v5200_v51 }
 0x241   : > { %vm1599_vm13 = vcmp.eq.f32.partialorder %v5203_v7, 0.0  ;;  %v1663_v49 = vmul.f32 %v5605_v13, %v5224_v5  ;;  %v1755_v27 = vsel %vm286_vm0, %v5486_v18, 0.0  ;;  %v5630_v10 = vpop.eup %2598  ;;  %v1629_v24 = vmul.f32 0.5, %v1628_v44 }
 0x242   : > { %v1652_v25 = vmul.f32 %v5589_v41, %v1651_v1  ;;  %2604 = vrsqrt.f32 %v6872_v35  ;;  %v1754_v19 = vadd.f32 %v1753_v54, %v1752_v50  ;;  %v1565_v59 = vsel %vm1563_vm8, %v1564_v37, %v1562_v61 }
 0x243   : > { %vm1609_vm14 = vcmp.eq.f32.partialorder %v5205_v46, inf  ;;  %v1618_v0 = vsub.f32 1.5, %v1617_v53  ;;  %v1675_v17 = vmul.f32 %v5617_v38, %v5226_v29  ;;  %v1757_v18 = vsel %vm286_vm0, %v5495_v60, 0.0 }
 0x244   : > { %v5643_v3 = vpop.eup %2600  ;;  %v1577_v32 = vsel %vm1575_vm9, %v1576_v42, %v1574_v48  ;;  %v1596_v4 = vmul.f32 %v1595_v30, %v5203_v7  ;;  %v1641_v43 = vmul.f32 0.5, %v1640_v57  ;;  %v1756_v37 = vadd.f32 %v1755_v27, %v1754_v19 }
 0x245   : > { %v1586_v45 = vsel %vm1585_vm10, %v5200_v51, %v1584_v39  ;;  %vm1621_vm15 = vcmp.eq.f32.partialorder %v5207_v11, inf  ;;  %v1664_v23 = vmul.f32 %v5605_v13, %v1663_v49  ;;  %v1687_v60 = vmul.f32 %v5630_v10, %v5228_v15 }
 0x246   : > { %v1759_v20 = vsel %vm286_vm0, %v5521_v47, 0.0  ;;  %v5659_v62 = vpop.eup %2602  ;;  %v1607_v42 = vmul.f32 %v5528_v22, %v1606_v16  ;;  %v1630_v44 = vsub.f32 1.5, %v1629_v24  ;;  %v1653_v1 = vmul.f32 0.5, %v1652_v25 }
 0x247   : > { %v1758_v6 = vadd.f32 %v1757_v18, %v1756_v37  ;;  %vm1611_vm1 = vcmp.eq.f32.partialorder %v5205_v46, 0.0  ;;  %v1619_v61 = vmul.f32 %v5546_v12, %v1618_v0  ;;  %vm1633_vm2 = vcmp.eq.f32.partialorder %v5213_v55, inf }
 0x248   : > { %v1676_v30 = vmul.f32 %v5617_v38, %v1675_v17  ;;  %v1699_v53 = vmul.f32 %v5643_v3, %v6870_v40  ;;  %v1761_v47 = vsel %vm286_vm0, %v5535_v56, 0.0  ;;  %v5670_v54 = vpop.eup %2604  ;;  %v1589_v22 = vsel %vm1587_vm11, %v1588_v2, %v1586_v45 }
 0x249   : > { %v1598_v12 = vsel %vm1597_vm12, %v5203_v7, %v1596_v4  ;;  %v1642_v16 = vsub.f32 1.5, %v1641_v43  ;;  %v1760_v57 = vadd.f32 %v1759_v20, %v1758_v6  ;;  %vm1623_vm3 = vcmp.eq.f32.partialorder %v5207_v11, 0.0 }
 0x24a   : > { %vm1645_vm4 = vcmp.eq.f32.partialorder %v5215_v8, inf  ;;  %v1665_v50 = vmul.f32 0.5, %v1664_v23  ;;  %v1688_v56 = vmul.f32 %v5630_v10, %v1687_v60  ;;  %v1711_v48 = vmul.f32 %v5659_v62, %v6871_v14 }
 0x24b   : > { %v1763_v51 = vsel %vm286_vm0, %v5550_v33, 0.0  ;;  %v1608_v2 = vmul.f32 %v1607_v42, %v5205_v46  ;;  %v1631_v39 = vmul.f32 %v5559_v58, %v1630_v44  ;;  %v1654_v49 = vsub.f32 1.5, %v1653_v1 }
 0x24c   : > { %v1762_v27 = vadd.f32 %v1761_v47, %v1760_v57  ;;  %vm1635_vm5 = vcmp.eq.f32.partialorder %v5213_v55, 0.0  ;;  %vm1657_vm6 = vcmp.eq.f32.partialorder %v5219_v9, inf  ;;  %v1677_v24 = vmul.f32 0.5, %v1676_v30 }
 0x24d   : > { %v1700_v25 = vmul.f32 %v5643_v3, %v1699_v53  ;;  %v1723_v19 = vmul.f32 %v5670_v54, %v6872_v35  ;;  %v1765_v0 = vsel %vm286_vm0, %v5563_v52, 0.0  ;;  %v1601_v33 = vsel %vm1599_vm13, %v1600_v28, %v1598_v12 }
 0x24e   : > { %v1620_v58 = vmul.f32 %v1619_v61, %v5207_v11  ;;  %v1643_v17 = vmul.f32 %v5577_v31, %v1642_v16  ;;  %v1764_v18 = vadd.f32 %v1763_v51, %v1762_v27  ;;  %vm1647_vm7 = vcmp.eq.f32.partialorder %v5215_v8, 0.0 }
 0x24f   : > { %v1666_v4 = vsub.f32 1.5, %v1665_v50  ;;  %v1689_v43 = vmul.f32 0.5, %v1688_v56  ;;  %v1712_v37 = vmul.f32 %v5659_v62, %v1711_v48  ;;  %v1767_v45 = vsel %vm286_vm0, %v1565_v59, 0.0 }
 0x250   : > { %v1610_v52 = vsel %vm1609_vm14, %v5205_v46, %v1608_v2  ;;  %v1632_v7 = vmul.f32 %v1631_v39, %v5213_v55  ;;  %v1655_v28 = vmul.f32 %v5589_v41, %v1654_v49  ;;  %v1766_v23 = vadd.f32 %v1765_v0, %v1764_v18 }
 0x251   : > { %vm1659_vm8 = vcmp.eq.f32.partialorder %v5219_v9, 0.0  ;;  %v1678_v31 = vsub.f32 1.5, %v1677_v24  ;;  %v1701_v60 = vmul.f32 0.5, %v1700_v25  ;;  %v1724_v20 = vmul.f32 %v5670_v54, %v1723_v19 }
 0x252   : > { %v1769_v42 = vsel %vm286_vm0, %v1577_v32, 0.0  ;;  %v1622_v59 = vsel %vm1621_vm15, %v5207_v11, %v1620_v58  ;;  %v1644_v44 = vmul.f32 %v1643_v17, %v5215_v8  ;;  %vm1669_vm9 = vcmp.eq.f32.partialorder %v5224_v5, inf }
 0x253   : > { %v1768_v1 = vadd.f32 %v1767_v45, %v1766_v23  ;;  %v1667_v41 = vmul.f32 %v5605_v13, %v1666_v4  ;;  %v1690_v6 = vsub.f32 1.5, %v1689_v43  ;;  %v1713_v61 = vmul.f32 0.5, %v1712_v37 }
 0x254   : > { %v1771_v30 = vsel %vm286_vm0, %v1589_v22, 0.0  ;;  %v1613_v32 = vsel %vm1611_vm1, %v1612_v34, %v1610_v52  ;;  %v1634_v53 = vsel %vm1633_vm2, %v5213_v55, %v1632_v7  ;;  %v1656_v47 = vmul.f32 %v1655_v28, %v5219_v9 }
 0x255   : > { %v1770_v12 = vadd.f32 %v1769_v42, %v1768_v1  ;;  %v1679_v16 = vmul.f32 %v5617_v38, %v1678_v31  ;;  %v1702_v57 = vsub.f32 1.5, %v1701_v60  ;;  %v1725_v13 = vmul.f32 0.5, %v1724_v20 }
 0x256   : > { %v1773_v50 = vsel %vm286_vm0, %v1601_v33, 0.0  ;;  %v1625_v22 = vsel %vm1623_vm3, %v1624_v21, %v1622_v59  ;;  %v1646_v46 = vsel %vm1645_vm4, %v5215_v8, %v1644_v44  ;;  %vm1671_vm10 = vcmp.eq.f32.partialorder %v5224_v5, 0.0 }
 0x257   : > { %v1772_v34 = vadd.f32 %v1771_v30, %v1770_v12  ;;  %v1668_v56 = vmul.f32 %v1667_v41, %v5224_v5  ;;  %v1691_v38 = vmul.f32 %v5630_v10, %v1690_v6  ;;  %v1714_v48 = vsub.f32 1.5, %v1713_v61 }
 0x258   : > { %v1775_v51 = vsel %vm286_vm0, %v1613_v32, 0.0  ;;  %v1637_v11 = vsel %vm1635_vm5, %v1636_v36, %v1634_v53  ;;  %v1658_v21 = vsel %vm1657_vm6, %v5219_v9, %v1656_v47  ;;  %v1672_v2 = vand.u32 2147483648, %v5224_v5 }
 0x259   : > { %v1774_v39 = vadd.f32 %v1773_v50, %v1772_v34  ;;  %v1680_v49 = vmul.f32 %v1679_v16, %v5226_v29  ;;  %v1703_v27 = vmul.f32 %v5643_v3, %v1702_v57  ;;  %v1726_v10 = vsub.f32 1.5, %v1725_v13 }
 0x25a   : > { %v1777_v24 = vsel %vm286_vm0, %v1625_v22, 0.0  ;;  %v1649_v55 = vsel %vm1647_vm7, %v1648_v63, %v1646_v46  ;;  %vm1681_vm11 = vcmp.eq.f32.partialorder %v5226_v29, inf  ;;  %vm1683_vm12 = vcmp.eq.f32.partialorder %v5226_v29, 0.0 }
 0x25b   : > { %v1776_v36 = vadd.f32 %v1775_v51, %v1774_v39  ;;  %v1670_v25 = vsel %vm1669_vm9, %v5224_v5, %v1668_v56  ;;  %v1692_v19 = vmul.f32 %v1691_v38, %v5228_v15  ;;  %v1715_v3 = vmul.f32 %v5659_v62, %v1714_v48 }
 0x25c   : > { %v1779_v0 = vsel %vm286_vm0, %v1637_v11, 0.0  ;;  %v1661_v8 = vsel %vm1659_vm8, %v1660_v26, %v1658_v21  ;;  %v1684_v63 = vand.u32 2147483648, %v5226_v29  ;;  %vm1693_vm13 = vcmp.eq.f32.partialorder %v5228_v15, inf }
 0x25d   : > { %v1778_v33 = vadd.f32 %v1777_v24, %v1776_v36  ;;  %v1682_v58 = vsel %vm1681_vm11, %v5226_v29, %v1680_v49  ;;  %v1704_v17 = vmul.f32 %v1703_v27, %v6870_v40  ;;  %v1727_v18 = vmul.f32 %v5670_v54, %v1726_v10  ;;  %v2130_v49 = vld [vmem:[%s2747_s15] sm:$0xff] (%p2706_p8)  ;;  %v2132_v27 = vld [vmem:[%s2747_s15 + $0x8] sm:$0xff] (%p2706_p8)  ;;  %v2134_v10 = vld [vmem:[%s2747_s15 + $0x10] sm:$0xff] (%p2706_p8) }
 0x25e   : > { %v1781_v62 = vsel %vm286_vm0, %v1649_v55, 0.0  ;;  %v1673_v4 = vsel %vm1671_vm10, %v1672_v2, %v1670_v25  ;;  %v1696_v43 = vand.u32 2147483648, %v5228_v15  ;;  %vm1705_vm14 = vcmp.eq.f32.partialorder %v6870_v40, inf  ;;  %2131 = vst [vmem:[%s5825_s24] sm:$0xff] (%p2706_p8), %v2130_v49  ;;  %v2136_v24 = vld [vmem:[%s2747_s15 + $0x18] sm:$0xff] (%p2706_p8)  ;;  %v2138_v55 = vld [vmem:[%s2747_s15 + $0x20] sm:$0xff] (%p2706_p8)  ;;  %v2140_v36 = vld [vmem:[%s2747_s15 + $0x28] sm:$0xff] (%p2706_p8) }
 0x25f   : > { %v1780_v9 = vadd.f32 %v1779_v0, %v1778_v33  ;;  %v1694_v26 = vsel %vm1693_vm13, %v5228_v15, %v1692_v19  ;;  %vm1695_vm15 = vcmp.eq.f32.partialorder %v5228_v15, 0.0  ;;  %v1716_v37 = vmul.f32 %v1715_v3, %v6871_v14  ;;  %2133 = vst [vmem:[%s5825_s24 + $0x8] sm:$0xff] (%p2706_p8), %v2132_v27  ;;  %v2142_v25 = vld [vmem:[%s2747_s15 + $0x30] sm:$0xff] (%p2706_p8)  ;;  %v2144_v19 = vld [vmem:[%s2747_s15 + $0x38] sm:$0xff] (%p2706_p8)  ;;  %v2146_v3 = vld [vmem:[%s2747_s15 + $0x40] sm:$0xff] (%p2706_p8) }
 0x260   : > { %v1783_v45 = vsel %vm286_vm0, %v1661_v8, 0.0  ;;  %v1685_v54 = vsel %vm1683_vm12, %v1684_v63, %v1682_v58  ;;  %v1708_v52 = vand.u32 2147483648, %v6870_v40  ;;  %vm1717_vm1 = vcmp.eq.f32.partialorder %v6871_v14, inf  ;;  %2135 = vst [vmem:[%s5825_s24 + $0x10] sm:$0xff] (%p2706_p8), %v2134_v10  ;;  %v2148_v0 = vld [vmem:[%s2747_s15 + $0x48] sm:$0xff] (%p2706_p8)  ;;  %v2150_v8 = vld [vmem:[%s2747_s15 + $0x50] sm:$0xff] (%p2706_p8) }
 0x261   : > { %v1782_v5 = vadd.f32 %v1781_v62, %v1780_v9  ;;  %v1706_v7 = vsel %vm1705_vm14, %v6870_v40, %v1704_v17  ;;  %vm1707_vm2 = vcmp.eq.f32.partialorder %v6870_v40, 0.0  ;;  %v1728_v28 = vmul.f32 %v1727_v18, %v6872_v35  ;;  %2137 = vst [vmem:[%s5825_s24 + $0x18] sm:$0xff] (%p2706_p8), %v2136_v24  ;;  %v2152_v63 = vld [vmem:[%s2747_s15 + $0x58] sm:$0xff] (%p2706_p8)  ;;  %v2154_v33 = vld [vmem:[%s2747_s15 + $0x60] sm:$0xff] (%p2706_p8)  ;;  %v2156_v58 = vld [vmem:[%s2747_s15 + $0x68] sm:$0xff] (%p2706_p8) }
 0x262   : > { %v1785_v15 = vsel %vm286_vm0, %v1673_v4, 0.0  ;;  %v1697_v23 = vsel %vm1695_vm15, %v1696_v43, %v1694_v26  ;;  %v1720_v31 = vand.u32 2147483648, %v6871_v14  ;;  %vm1729_vm3 = vcmp.eq.f32.partialorder %v6872_v35, inf  ;;  %2139 = vst [vmem:[%s5825_s24 + $0x20] sm:$0xff] (%p2706_p8), %v2138_v55  ;;  %v2158_v17 = vld [vmem:[%s2747_s15 + $0x70] sm:$0xff] (%p2706_p8)  ;;  %v2160_v18 = vld [vmem:[%s2747_s15 + $0x78] sm:$0xff] (%p2706_p8) }
 0x263   : > { %v1784_v29 = vadd.f32 %v1783_v45, %v1782_v5  ;;  %v1718_v60 = vsel %vm1717_vm1, %v6871_v14, %v1716_v37  ;;  %vm1719_vm4 = vcmp.eq.f32.partialorder %v6871_v14, 0.0  ;;  %v1787_v20 = vsel %vm286_vm0, %v1685_v54, 0.0  ;;  %2141 = vst [vmem:[%s5825_s24 + $0x28] sm:$0xff] (%p2706_p8), %v2140_v36  ;;  %v2162_v62 = vld [vmem:[%s2747_s15 + $0x80] sm:$0xff] (%p2706_p8)  ;;  %v2164_v4 = vld [vmem:[%s2747_s15 + $0x88] sm:$0xff] (%p2706_p8)  ;;  %v2166_v43 = vld [vmem:[%s2747_s15 + $0x90] sm:$0xff] (%p2706_p8) }
 0x264   : > { %v1709_v42 = vsel %vm1707_vm2, %v1708_v52, %v1706_v7  ;;  %v1732_v59 = vand.u32 2147483648, %v6872_v35  ;;  %v1730_v44 = vsel %vm1729_vm3, %v6872_v35, %v1728_v28  ;;  %vm1731_vm5 = vcmp.eq.f32.partialorder %v6872_v35, 0.0  ;;  %2143 = vst [vmem:[%s5825_s24 + $0x30] sm:$0xff] (%p2706_p8), %v2142_v25  ;;  %v2168_v9 = vld [vmem:[%s2747_s15 + $0x98] sm:$0xff] (%p2706_p8)  ;;  %v2170_v26 = vld [vmem:[%s2747_s15 + $0xa0] sm:$0xff] (%p2706_p8)  ;;  %v2172_v37 = vld [vmem:[%s2747_s15 + $0xa8] sm:$0xff] (%p2706_p8) }
 0x265   : > { %v1786_v40 = vadd.f32 %v1785_v15, %v1784_v29  ;;  %v1789_v1 = vsel %vm286_vm0, %v1697_v23, 0.0  ;;  %v1721_v41 = vsel %vm1719_vm4, %v1720_v31, %v1718_v60  ;;  %v1791_v61 = vsel %vm286_vm0, %v1709_v42, 0.0  ;;  %2145 = vst [vmem:[%s5825_s24 + $0x38] sm:$0xff] (%p2706_p8), %v2144_v19  ;;  %v2174_v45 = vld [vmem:[%s2747_s15 + $0xb0] sm:$0xff] (%p2706_p8)  ;;  %v2176_v54 = vld [vmem:[%s2747_s15 + $0xb8] sm:$0xff] (%p2706_p8)  ;;  %v2178_v52 = vld [vmem:[%s2747_s15 + $0xc0] sm:$0xff] (%p2706_p8) }
 0x266   : > { %v1733_v30 = vsel %vm1731_vm5, %v1732_v59, %v1730_v44  ;;  %v1793_v14 = vsel %vm286_vm0, %v1721_v41, 0.0  ;;  %v2651_v57 = vmov 4096.0   ;;  %2147 = vst [vmem:[%s5825_s24 + $0x40] sm:$0xff] (%p2706_p8), %v2146_v3  ;;  %v2180_v5 = vld [vmem:[%s2747_s15 + $0xc8] sm:$0xff] (%p2706_p8)  ;;  %v2182_v7 = vld [vmem:[%s2747_s15 + $0xd0] sm:$0xff] (%p2706_p8)  ;;  %v2184_v28 = vld [vmem:[%s2747_s15 + $0xd8] sm:$0xff] (%p2706_p8) }
 0x267   : > { %v1788_v6 = vadd.f32 %v1787_v20, %v1786_v40  ;;  %v1795_v47 = vsel %vm286_vm0, %v1733_v30, 0.0  ;;  %2606 = vrcp.f32 %v2651_v57  ;;  %2149 = vst [vmem:[%s5825_s24 + $0x48] sm:$0xff] (%p2706_p8), %v2148_v0  ;;  %v2186_v15 = vld [vmem:[%s2747_s15 + $0xe0] sm:$0xff] (%p2706_p8)  ;;  %v2188_v23 = vld [vmem:[%s2747_s15 + $0xe8] sm:$0xff] (%p2706_p8)  ;;  %v2190_v31 = vld [vmem:[%s2747_s15 + $0xf0] sm:$0xff] (%p2706_p8) }
 0x268   : > { %2151 = vst [vmem:[%s5825_s24 + $0x50] sm:$0xff] (%p2706_p8), %v2150_v8  ;;  %v2192_v29 = vld [vmem:[%s2747_s15 + $0xf8] sm:$0xff] (%p2706_p8)  ;;  %v2198_v42 = vld [vmem:[%s2747_s15 + $0x110] sm:$0xff] (%p2706_p8)  ;;  %v2202_v40 = vld [vmem:[%s2747_s15 + $0x120] sm:$0xff] (%p2706_p8) }
 0x269   : > { %v1790_v32 = vadd.f32 %v1789_v1, %v1788_v6  ;;  %2153 = vst [vmem:[%s5825_s24 + $0x58] sm:$0xff] (%p2706_p8), %v2152_v63  ;;  %v2200_v59 = vld [vmem:[%s2747_s15 + $0x118] sm:$0xff] (%p2706_p8)  ;;  %v2204_v44 = vld [vmem:[%s2747_s15 + $0x128] sm:$0xff] (%p2706_p8)  ;;  %v2206_v1 = vld [vmem:[%s2747_s15 + $0x130] sm:$0xff] (%p2706_p8) }
 0x26a   : > { %2155 = vst [vmem:[%s5825_s24 + $0x60] sm:$0xff] (%p2706_p8), %v2154_v33  ;;  %v2208_v41 = vld [vmem:[%s2747_s15 + $0x138] sm:$0xff] (%p2706_p8)  ;;  %v2210_v6 = vld [vmem:[%s2747_s15 + $0x140] sm:$0xff] (%p2706_p8)  ;;  %v2214_v30 = vld [vmem:[%s2747_s15 + $0x150] sm:$0xff] (%p2706_p8) }
 0x26b   : > { %v1792_v53 = vadd.f32 %v1791_v61, %v1790_v32  ;;  %2157 = vst [vmem:[%s5825_s24 + $0x68] sm:$0xff] (%p2706_p8), %v2156_v58  ;;  %v2212_v61 = vld [vmem:[%s2747_s15 + $0x148] sm:$0xff] (%p2706_p8)  ;;  %v2216_v32 = vld [vmem:[%s2747_s15 + $0x158] sm:$0xff] (%p2706_p8)  ;;  %v2258_v49 = vld [vmem:[%s2747_s15 + $0x200] sm:$0xff] (%p2706_p8) }
 0x26c   : > { %2159 = vst [vmem:[%s5825_s24 + $0x70] sm:$0xff] (%p2706_p8), %v2158_v17  ;;  %v2228_v57 = vld [vmem:[%s2747_s15 + $0x188] sm:$0xff] (%p2706_p8)  ;;  %v2266_v55 = vld [vmem:[%s2747_s15 + $0x220] sm:$0xff] (%p2706_p8)  ;;  %v2270_v25 = vld [vmem:[%s2747_s15 + $0x230] sm:$0xff] (%p2706_p8) }
 0x26d   : > { %v1794_v12 = vadd.f32 %v1793_v14, %v1792_v53  ;;  %v2607_v35 = vpop.eup %2606  ;;  %2161 = vst [vmem:[%s5825_s24 + $0x78] sm:$0xff] (%p2706_p8), %v2160_v18  ;;  %v2218_v14 = vld [vmem:[%s2747_s15 + $0x160] sm:$0xff] (%p2706_p8)  ;;  %v2220_v53 = vld [vmem:[%s2747_s15 + $0x168] sm:$0xff] (%p2706_p8)  ;;  %v2272_v19 = vld [vmem:[%s2747_s15 + $0x238] sm:$0xff] (%p2706_p8) }
 0x26e   : > { %v1806_v13 = vmul.f32 4096.0, %v2607_v35  ;;  %vm1810_vm6 = vweird.f32 %v2607_v35  ;;  %2163 = vst [vmem:[%s5825_s24 + $0x80] sm:$0xff] (%p2706_p8), %v2162_v62  ;;  %v2260_v27 = vld [vmem:[%s2747_s15 + $0x208] sm:$0xff] (%p2706_p8)  ;;  %v2274_v3 = vld [vmem:[%s2747_s15 + $0x240] sm:$0xff] (%p2706_p8)  ;;  %v2278_v8 = vld [vmem:[%s2747_s15 + $0x250] sm:$0xff] (%p2706_p8) }
 0x26f   : > { %v1796_v16 = vadd.f32 %v1795_v47, %v1794_v12  ;;  %2165 = vst [vmem:[%s5825_s24 + $0x88] sm:$0xff] (%p2706_p8), %v2164_v4  ;;  %v2222_v47 = vld [vmem:[%s2747_s15 + $0x170] sm:$0xff] (%p2706_p8)  ;;  %v2224_v12 = vld [vmem:[%s2747_s15 + $0x178] sm:$0xff] (%p2706_p8)  ;;  %v2268_v36 = vld [vmem:[%s2747_s15 + $0x228] sm:$0xff] (%p2706_p8) }
 0x270   : > { %v1807_v50 = vsub.f32 1.0, %v1806_v13  ;;  %2167 = vst [vmem:[%s5825_s24 + $0x90] sm:$0xff] (%p2706_p8), %v2166_v43  ;;  %v2232_v13 = vld [vmem:[%s2747_s15 + $0x198] sm:$0xff] (%p2706_p8)  ;;  %v2276_v0 = vld [vmem:[%s2747_s15 + $0x248] sm:$0xff] (%p2706_p8)  ;;  %v2282_v33 = vld [vmem:[%s2747_s15 + $0x260] sm:$0xff] (%p2706_p8) }
 0x271   : > { %1797 = vadd.xlane.f32.xlu0 %v1796_v16  ;;  %2169 = vst [vmem:[%s5825_s24 + $0x98] sm:$0xff] (%p2706_p8), %v2168_v9  ;;  %v2226_v16 = vld [vmem:[%s2747_s15 + $0x180] sm:$0xff] (%p2706_p8)  ;;  %v2280_v63 = vld [vmem:[%s2747_s15 + $0x258] sm:$0xff] (%p2706_p8)  ;;  %v2284_v58 = vld [vmem:[%s2747_s15 + $0x268] sm:$0xff] (%p2706_p8) }
 0x272   : > { %v1808_v34 = vmul.f32 %v2607_v35, %v1807_v50  ;;  %2171 = vst [vmem:[%s5825_s24 + $0xa0] sm:$0xff] (%p2706_p8), %v2170_v26  ;;  %v2234_v50 = vld [vmem:[%s2747_s15 + $0x1a0] sm:$0xff] (%p2706_p8)  ;;  %v2286_v17 = vld [vmem:[%s2747_s15 + $0x270] sm:$0xff] (%p2706_p8)  ;;  %v2288_v18 = vld [vmem:[%s2747_s15 + $0x278] sm:$0xff] (%p2706_p8) }
 0x273   : > { %2173 = vst [vmem:[%s5825_s24 + $0xa8] sm:$0xff] (%p2706_p8), %v2172_v37  ;;  %v2290_v62 = vld [vmem:[%s2747_s15 + $0x280] sm:$0xff] (%p2706_p8)  ;;  %v2292_v4 = vld [vmem:[%s2747_s15 + $0x288] sm:$0xff] (%p2706_p8)  ;;  %v2294_v43 = vld [vmem:[%s2747_s15 + $0x290] sm:$0xff] (%p2706_p8) }
 0x274   : > { %v1809_v48 = vadd.f32 %v2607_v35, %v1808_v34  ;;  %2175 = vst [vmem:[%s5825_s24 + $0xb0] sm:$0xff] (%p2706_p8), %v2174_v45  ;;  %v2240_v34 = vld [vmem:[%s2747_s15 + $0x1b8] sm:$0xff] (%p2706_p8)  ;;  %v2298_v26 = vld [vmem:[%s2747_s15 + $0x2a0] sm:$0xff] (%p2706_p8)  ;;  %v2300_v37 = vld [vmem:[%s2747_s15 + $0x2a8] sm:$0xff] (%p2706_p8) }
 0x275   : > { %2177 = vst [vmem:[%s5825_s24 + $0xb8] sm:$0xff] (%p2706_p8), %v2176_v54  ;;  %v2296_v9 = vld [vmem:[%s2747_s15 + $0x298] sm:$0xff] (%p2706_p8)  ;;  %v2302_v45 = vld [vmem:[%s2747_s15 + $0x2b0] sm:$0xff] (%p2706_p8) }
 0x276   : > { %v1811_v21 = vsel %vm1810_vm6, %v2607_v35, %v1809_v48  ;;  %2179 = vst [vmem:[%s5825_s24 + $0xc0] sm:$0xff] (%p2706_p8), %v2178_v52  ;;  %v2230_v35 = vld [vmem:[%s2747_s15 + $0x190] sm:$0xff] (%p2706_p8)  ;;  %v2304_v54 = vld [vmem:[%s2747_s15 + $0x2b8] sm:$0xff] (%p2706_p8)  ;;  %v2306_v52 = vld [vmem:[%s2747_s15 + $0x2c0] sm:$0xff] (%p2706_p8) }
 0x277   : > { %2181 = vst [vmem:[%s5825_s24 + $0xc8] sm:$0xff] (%p2706_p8), %v2180_v5  ;;  %v2246_v48 = vld [vmem:[%s2747_s15 + $0x1d0] sm:$0xff] (%p2706_p8)  ;;  %v2308_v5 = vld [vmem:[%s2747_s15 + $0x2c8] sm:$0xff] (%p2706_p8) }
 0x278   : > { %2183 = vst [vmem:[%s5825_s24 + $0xd0] sm:$0xff] (%p2706_p8), %v2182_v7  ;;  %v2310_v7 = vld [vmem:[%s2747_s15 + $0x2d0] sm:$0xff] (%p2706_p8) }
 0x279   : > { %2185 = vst [vmem:[%s5825_s24 + $0xd8] sm:$0xff] (%p2706_p8), %v2184_v28  ;;  %v2312_v28 = vld [vmem:[%s2747_s15 + $0x2d8] sm:$0xff] (%p2706_p8) }
 0x27a   : > { %2187 = vst [vmem:[%s5825_s24 + $0xe0] sm:$0xff] (%p2706_p8), %v2186_v15  ;;  %v2314_v15 = vld [vmem:[%s2747_s15 + $0x2e0] sm:$0xff] (%p2706_p8) }
 0x27b   : > { %2189 = vst [vmem:[%s5825_s24 + $0xe8] sm:$0xff] (%p2706_p8), %v2188_v23  ;;  %v2316_v23 = vld [vmem:[%s2747_s15 + $0x2e8] sm:$0xff] (%p2706_p8) }
 0x27c   : > { %2191 = vst [vmem:[%s5825_s24 + $0xf0] sm:$0xff] (%p2706_p8), %v2190_v31  ;;  %v2318_v31 = vld [vmem:[%s2747_s15 + $0x2f0] sm:$0xff] (%p2706_p8) }
 0x27d   : > { %2193 = vst [vmem:[%s5825_s24 + $0xf8] sm:$0xff] (%p2706_p8), %v2192_v29  ;;  %v2320_v29 = vld [vmem:[%s2747_s15 + $0x2f8] sm:$0xff] (%p2706_p8) }
 0x27e   : > { %2199 = vst [vmem:[%s5825_s24 + $0x220] sm:$0xff] (%p2706_p8), %v2198_v42  ;;  %v2326_v42 = vld [vmem:[%s2747_s15 + $0x310] sm:$0xff] (%p2706_p8) }
 0x27f   : > { %2201 = vst [vmem:[%s5825_s24 + $0x228] sm:$0xff] (%p2706_p8), %v2200_v59  ;;  %v2328_v59 = vld [vmem:[%s2747_s15 + $0x318] sm:$0xff] (%p2706_p8) }
 0x280   : > { %2203 = vst [vmem:[%s5825_s24 + $0x230] sm:$0xff] (%p2706_p8), %v2202_v40 }
 0x281   : > { %2205 = vst [vmem:[%s5825_s24 + $0x238] sm:$0xff] (%p2706_p8), %v2204_v44 }
 0x282   : > { %2207 = vst [vmem:[%s5825_s24 + $0x240] sm:$0xff] (%p2706_p8), %v2206_v1  ;;  %v2334_v1 = vld [vmem:[%s2747_s15 + $0x330] sm:$0xff] (%p2706_p8) }
 0x283   : > { %2209 = vst [vmem:[%s5825_s24 + $0x248] sm:$0xff] (%p2706_p8), %v2208_v41  ;;  %v2336_v41 = vld [vmem:[%s2747_s15 + $0x338] sm:$0xff] (%p2706_p8) }
 0x284   : > { %2211 = vst [vmem:[%s5825_s24 + $0x250] sm:$0xff] (%p2706_p8), %v2210_v6  ;;  %v2338_v6 = vld [vmem:[%s2747_s15 + $0x340] sm:$0xff] (%p2706_p8) }
 0x285   : > { %2213 = vst [vmem:[%s5825_s24 + $0x258] sm:$0xff] (%p2706_p8), %v2212_v61  ;;  %v2340_v61 = vld [vmem:[%s2747_s15 + $0x348] sm:$0xff] (%p2706_p8) }
 0x286   : > { %2215 = vst [vmem:[%s5825_s24 + $0x260] sm:$0xff] (%p2706_p8), %v2214_v30  ;;  %v2342_v30 = vld [vmem:[%s2747_s15 + $0x350] sm:$0xff] (%p2706_p8) }
 0x287   : > { %2217 = vst [vmem:[%s5825_s24 + $0x268] sm:$0xff] (%p2706_p8), %v2216_v32  ;;  %v2344_v32 = vld [vmem:[%s2747_s15 + $0x358] sm:$0xff] (%p2706_p8) }
 0x288   : > { %2219 = vst [vmem:[%s5825_s24 + $0x270] sm:$0xff] (%p2706_p8), %v2218_v14  ;;  %v2346_v14 = vld [vmem:[%s2747_s15 + $0x360] sm:$0xff] (%p2706_p8) }
 0x289   : > { %2221 = vst [vmem:[%s5825_s24 + $0x278] sm:$0xff] (%p2706_p8), %v2220_v53  ;;  %v2348_v53 = vld [vmem:[%s2747_s15 + $0x368] sm:$0xff] (%p2706_p8) }
 0x28a   : > { %2223 = vst [vmem:[%s5825_s24 + $0x280] sm:$0xff] (%p2706_p8), %v2222_v47  ;;  %v2350_v47 = vld [vmem:[%s2747_s15 + $0x370] sm:$0xff] (%p2706_p8) }
 0x28b   : > { %2225 = vst [vmem:[%s5825_s24 + $0x288] sm:$0xff] (%p2706_p8), %v2224_v12  ;;  %v2352_v12 = vld [vmem:[%s2747_s15 + $0x378] sm:$0xff] (%p2706_p8) }
 0x28c   : > { %2227 = vst [vmem:[%s5825_s24 + $0x290] sm:$0xff] (%p2706_p8), %v2226_v16  ;;  %v2354_v16 = vld [vmem:[%s2747_s15 + $0x380] sm:$0xff] (%p2706_p8) }
 0x28d   : > { %2229 = vst [vmem:[%s5825_s24 + $0x298] sm:$0xff] (%p2706_p8), %v2228_v57  ;;  %v2356_v57 = vld [vmem:[%s2747_s15 + $0x388] sm:$0xff] (%p2706_p8) }
 0x28e   : > { %2231 = vst [vmem:[%s5825_s24 + $0x2a0] sm:$0xff] (%p2706_p8), %v2230_v35  ;;  %v2358_v35 = vld [vmem:[%s2747_s15 + $0x390] sm:$0xff] (%p2706_p8) }
 0x28f   : > { %2233 = vst [vmem:[%s5825_s24 + $0x2a8] sm:$0xff] (%p2706_p8), %v2232_v13  ;;  %v2360_v13 = vld [vmem:[%s2747_s15 + $0x398] sm:$0xff] (%p2706_p8) }
 0x290   : > { %2235 = vst [vmem:[%s5825_s24 + $0x2b0] sm:$0xff] (%p2706_p8), %v2234_v50  ;;  %v2362_v50 = vld [vmem:[%s2747_s15 + $0x3a0] sm:$0xff] (%p2706_p8) }
 0x291   : > { %2241 = vst [vmem:[%s5825_s24 + $0x2c8] sm:$0xff] (%p2706_p8), %v2240_v34  ;;  %v2368_v34 = vld [vmem:[%s2747_s15 + $0x3b8] sm:$0xff] (%p2706_p8) }
 0x292   : > { %2247 = vst [vmem:[%s5825_s24 + $0x2e0] sm:$0xff] (%p2706_p8), %v2246_v48  ;;  %v2374_v48 = vld [vmem:[%s2747_s15 + $0x3d0] sm:$0xff] (%p2706_p8) }
 0x293   : > { %2259 = vst [vmem:[%s5825_s24 + $0x310] sm:$0xff] (%p2706_p8), %v2258_v49  ;;  %v2386_v49 = vld [vmem:[%s2747_s15 + $0x400] sm:$0xff] (%p2706_p8) }
 0x294   : > { %2261 = vst [vmem:[%s5825_s24 + $0x318] sm:$0xff] (%p2706_p8), %v2260_v27  ;;  %v2388_v27 = vld [vmem:[%s2747_s15 + $0x408] sm:$0xff] (%p2706_p8) }
 0x295   : > { %2267 = vst [vmem:[%s5825_s24 + $0x440] sm:$0xff] (%p2706_p8), %v2266_v55  ;;  %v2394_v55 = vld [vmem:[%s2747_s15 + $0x420] sm:$0xff] (%p2706_p8) }
 0x296   : > { %2269 = vst [vmem:[%s5825_s24 + $0x448] sm:$0xff] (%p2706_p8), %v2268_v36  ;;  %v2396_v36 = vld [vmem:[%s2747_s15 + $0x428] sm:$0xff] (%p2706_p8) }
 0x297   : > { %2271 = vst [vmem:[%s5825_s24 + $0x450] sm:$0xff] (%p2706_p8), %v2270_v25 }
 0x298   : > { %2273 = vst [vmem:[%s5825_s24 + $0x458] sm:$0xff] (%p2706_p8), %v2272_v19 }
 0x299   : > { %2275 = vst [vmem:[%s5825_s24 + $0x460] sm:$0xff] (%p2706_p8), %v2274_v3 }
 0x29a   : > { %2277 = vst [vmem:[%s5825_s24 + $0x468] sm:$0xff] (%p2706_p8), %v2276_v0 }
 0x29b   : > { %2279 = vst [vmem:[%s5825_s24 + $0x470] sm:$0xff] (%p2706_p8), %v2278_v8 }
 0x29c   : > { %2281 = vst [vmem:[%s5825_s24 + $0x478] sm:$0xff] (%p2706_p8), %v2280_v63 }
 0x29d   : > { %2283 = vst [vmem:[%s5825_s24 + $0x480] sm:$0xff] (%p2706_p8), %v2282_v33 }
 0x29e   : > { %2285 = vst [vmem:[%s5825_s24 + $0x488] sm:$0xff] (%p2706_p8), %v2284_v58 }
 0x29f   : > { %2287 = vst [vmem:[%s5825_s24 + $0x490] sm:$0xff] (%p2706_p8), %v2286_v17 }
 0x2a0   : > { %2289 = vst [vmem:[%s5825_s24 + $0x498] sm:$0xff] (%p2706_p8), %v2288_v18 }
 0x2a1   : > { %2291 = vst [vmem:[%s5825_s24 + $0x4a0] sm:$0xff] (%p2706_p8), %v2290_v62 }
 0x2a2   : > { %2293 = vst [vmem:[%s5825_s24 + $0x4a8] sm:$0xff] (%p2706_p8), %v2292_v4 }
 0x2a3   : > { %2295 = vst [vmem:[%s5825_s24 + $0x4b0] sm:$0xff] (%p2706_p8), %v2294_v43 }
 0x2a4   : > { %2297 = vst [vmem:[%s5825_s24 + $0x4b8] sm:$0xff] (%p2706_p8), %v2296_v9 }
 0x2a5   : > { %2299 = vst [vmem:[%s5825_s24 + $0x4c0] sm:$0xff] (%p2706_p8), %v2298_v26 }
 0x2a6   : > { %2301 = vst [vmem:[%s5825_s24 + $0x4c8] sm:$0xff] (%p2706_p8), %v2300_v37 }
 0x2a7   : > { %2303 = vst [vmem:[%s5825_s24 + $0x4d0] sm:$0xff] (%p2706_p8), %v2302_v45 }
 0x2a8   : > { %2305 = vst [vmem:[%s5825_s24 + $0x4d8] sm:$0xff] (%p2706_p8), %v2304_v54 }
 0x2a9   : > { %2307 = vst [vmem:[%s5825_s24 + $0x4e0] sm:$0xff] (%p2706_p8), %v2306_v52 }
 0x2aa   : > { %2309 = vst [vmem:[%s5825_s24 + $0x4e8] sm:$0xff] (%p2706_p8), %v2308_v5 }
 0x2ab   : > { %2311 = vst [vmem:[%s5825_s24 + $0x4f0] sm:$0xff] (%p2706_p8), %v2310_v7 }
 0x2ac   : > { %2313 = vst [vmem:[%s5825_s24 + $0x4f8] sm:$0xff] (%p2706_p8), %v2312_v28 }
 0x2ad   : > { %2315 = vst [vmem:[%s5825_s24 + $0x500] sm:$0xff] (%p2706_p8), %v2314_v15 }
 0x2ae   : > { %2317 = vst [vmem:[%s5825_s24 + $0x508] sm:$0xff] (%p2706_p8), %v2316_v23 }
 0x2af   : > { %2319 = vst [vmem:[%s5825_s24 + $0x510] sm:$0xff] (%p2706_p8), %v2318_v31 }
 0x2b0   : > { %2321 = vst [vmem:[%s5825_s24 + $0x518] sm:$0xff] (%p2706_p8), %v2320_v29 }
 0x2b1   : > { %2327 = vst [vmem:[%s5825_s24 + $0x530] sm:$0xff] (%p2706_p8), %v2326_v42 }
 0x2b2   : > { %2329 = vst [vmem:[%s5825_s24 + $0x538] sm:$0xff] (%p2706_p8), %v2328_v59 }
 0x2b3   : > { %2335 = vst [vmem:[%s5825_s24 + $0x660] sm:$0xff] (%p2706_p8), %v2334_v1 }
 0x2b4   : > { %2337 = vst [vmem:[%s5825_s24 + $0x668] sm:$0xff] (%p2706_p8), %v2336_v41 }
 0x2b5   : > { %2339 = vst [vmem:[%s5825_s24 + $0x670] sm:$0xff] (%p2706_p8), %v2338_v6 }
 0x2b6   : > { %2341 = vst [vmem:[%s5825_s24 + $0x678] sm:$0xff] (%p2706_p8), %v2340_v61 }
 0x2b7   : > { %2343 = vst [vmem:[%s5825_s24 + $0x680] sm:$0xff] (%p2706_p8), %v2342_v30 }
 0x2b8   : > { %2345 = vst [vmem:[%s5825_s24 + $0x688] sm:$0xff] (%p2706_p8), %v2344_v32 }
 0x2b9   : > { %2347 = vst [vmem:[%s5825_s24 + $0x690] sm:$0xff] (%p2706_p8), %v2346_v14 }
 0x2ba   : > { %2349 = vst [vmem:[%s5825_s24 + $0x698] sm:$0xff] (%p2706_p8), %v2348_v53 }
 0x2bb   : > { %2351 = vst [vmem:[%s5825_s24 + $0x6a0] sm:$0xff] (%p2706_p8), %v2350_v47 }
 0x2bc   : > { %2353 = vst [vmem:[%s5825_s24 + $0x6a8] sm:$0xff] (%p2706_p8), %v2352_v12 }
 0x2bd   : > { %2355 = vst [vmem:[%s5825_s24 + $0x6b0] sm:$0xff] (%p2706_p8), %v2354_v16 }
 0x2be   : > { %2357 = vst [vmem:[%s5825_s24 + $0x6b8] sm:$0xff] (%p2706_p8), %v2356_v57 }
 0x2bf   : > { %2359 = vst [vmem:[%s5825_s24 + $0x6c0] sm:$0xff] (%p2706_p8), %v2358_v35 }
 0x2c0   : > { %2361 = vst [vmem:[%s5825_s24 + $0x6c8] sm:$0xff] (%p2706_p8), %v2360_v13 }
 0x2c1   : > { %2363 = vst [vmem:[%s5825_s24 + $0x6d0] sm:$0xff] (%p2706_p8), %v2362_v50 }
 0x2c2   : > { %2369 = vst [vmem:[%s5825_s24 + $0x6e8] sm:$0xff] (%p2706_p8), %v2368_v34 }
 0x2c3   : > { %2375 = vst [vmem:[%s5825_s24 + $0x700] sm:$0xff] (%p2706_p8), %v2374_v48 }
 0x2c4   : > { %2387 = vst [vmem:[%s5825_s24 + $0x730] sm:$0xff] (%p2706_p8), %v2386_v49 }
 0x2c5   : > { %2389 = vst [vmem:[%s5825_s24 + $0x738] sm:$0xff] (%p2706_p8), %v2388_v27 }
 0x2c6   : > { %2395 = vst [vmem:[%s5825_s24 + $0x750] sm:$0xff] (%p2706_p8), %v2394_v55 }
 0x2c7   : > { %2397 = vst [vmem:[%s5825_s24 + $0x758] sm:$0xff] (%p2706_p8), %v2396_v36 }
 0x2e4   : > { %v1798_v22 = vpop.xlane.xlu0 %1797 }
 0x2e5   : > { %v1799_v46 = vrot.slane %v1798_v22, 4 }
 0x2e7   : > { %v1800_v56 = vadd.f32 %v1799_v46, %v1798_v22  ;;  %v2236_v22 = vld [vmem:[%s2747_s15 + $0x1a8] sm:$0xff] (%p2706_p8)  ;;  %v2238_v46 = vld [vmem:[%s2747_s15 + $0x1b0] sm:$0xff] (%p2706_p8) }
 0x2e8   : > { %2237 = vst [vmem:[%s5825_s24 + $0x2b8] sm:$0xff] (%p2706_p8), %v2236_v22  ;;  %v2364_v22 = vld [vmem:[%s2747_s15 + $0x3a8] sm:$0xff] (%p2706_p8) }
 0x2e9   : > { %v1801_v38 = vrot.slane %v1800_v56, 2  ;;  %2239 = vst [vmem:[%s5825_s24 + $0x2c0] sm:$0xff] (%p2706_p8), %v2238_v46  ;;  %v2366_v46 = vld [vmem:[%s2747_s15 + $0x3b0] sm:$0xff] (%p2706_p8) }
 0x2ea   : > { %2365 = vst [vmem:[%s5825_s24 + $0x6d8] sm:$0xff] (%p2706_p8), %v2364_v22 }
 0x2eb   : > { %v1802_v51 = vadd.f32 %v1801_v38, %v1800_v56  ;;  %v2242_v56 = vld [vmem:[%s2747_s15 + $0x1c0] sm:$0xff] (%p2706_p8)  ;;  %v2244_v38 = vld [vmem:[%s2747_s15 + $0x1c8] sm:$0xff] (%p2706_p8)  ;;  %2367 = vst [vmem:[%s5825_s24 + $0x6e0] sm:$0xff] (%p2706_p8), %v2366_v46 }
 0x2ec   : > { %2243 = vst [vmem:[%s5825_s24 + $0x2d0] sm:$0xff] (%p2706_p8), %v2242_v56  ;;  %v2370_v56 = vld [vmem:[%s2747_s15 + $0x3c0] sm:$0xff] (%p2706_p8) }
 0x2ed   : > { %v1803_v11 = vrot.slane %v1802_v51, 1  ;;  %2245 = vst [vmem:[%s5825_s24 + $0x2d8] sm:$0xff] (%p2706_p8), %v2244_v38  ;;  %v2372_v38 = vld [vmem:[%s2747_s15 + $0x3c8] sm:$0xff] (%p2706_p8) }
 0x2ee   : > { %2371 = vst [vmem:[%s5825_s24 + $0x6f0] sm:$0xff] (%p2706_p8), %v2370_v56 }
 0x2ef   : > { %v1804_v2 = vadd.f32 %v1803_v11, %v1802_v51  ;;  %v2248_v51 = vld [vmem:[%s2747_s15 + $0x1d8] sm:$0xff] (%p2706_p8)  ;;  %v2250_v11 = vld [vmem:[%s2747_s15 + $0x1e0] sm:$0xff] (%p2706_p8)  ;;  %2373 = vst [vmem:[%s5825_s24 + $0x6f8] sm:$0xff] (%p2706_p8), %v2372_v38 }
 0x2f0   : > { %2249 = vst [vmem:[%s5825_s24 + $0x2e8] sm:$0xff] (%p2706_p8), %v2248_v51  ;;  %v2376_v51 = vld [vmem:[%s2747_s15 + $0x3d8] sm:$0xff] (%p2706_p8) }
 0x2f1   : > { %v1812_v39 = vmul.f32 %v1811_v21, %v1804_v2  ;;  %v2252_v21 = vld [vmem:[%s2747_s15 + $0x1e8] sm:$0xff] (%p2706_p8)  ;;  %v2254_v2 = vld [vmem:[%s2747_s15 + $0x1f0] sm:$0xff] (%p2706_p8)  ;;  %2251 = vst [vmem:[%s5825_s24 + $0x2f0] sm:$0xff] (%p2706_p8), %v2250_v11  ;;  %v2378_v11 = vld [vmem:[%s2747_s15 + $0x3e0] sm:$0xff] (%p2706_p8) }
 0x2f2   : > { %2253 = vst [vmem:[%s5825_s24 + $0x2f8] sm:$0xff] (%p2706_p8), %v2252_v21  ;;  %v2380_v21 = vld [vmem:[%s2747_s15 + $0x3e8] sm:$0xff] (%p2706_p8) }
 0x2f3   : > { %2477 = vst.msk [vmem:[%s2747_s15 + $0x100] sm:$0xff] %vm286_vm0, %v1812_v39 }
 0x2f4   : > { %2478 = vst.msk [vmem:[%s2747_s15 + $0x108] sm:$0xff] %vm286_vm0, %v1812_v39 }
 0x2f5   : > { %2479 = vst.msk [vmem:[%s2747_s15 + $0x210] sm:$0xff] %vm286_vm0, %v1812_v39 }
 0x2f6   : > { %2480 = vst.msk [vmem:[%s2747_s15 + $0x218] sm:$0xff] %vm286_vm0, %v1812_v39  ;;  %1828 = sbr.rel (!%p2706_p8) target bundleno = 782 (0x30e), region = 32 }
 0x2f7   : > { %2481 = vst.msk [vmem:[%s2747_s15 + $0x320] sm:$0xff] %vm286_vm0, %v1812_v39 }
 0x2f8   : > { %2482 = vst.msk [vmem:[%s2747_s15 + $0x328] sm:$0xff] %vm286_vm0, %v1812_v39 }
 0x2f9   : > { %2483 = vst.msk [vmem:[%s2747_s15 + $0x430] sm:$0xff] %vm286_vm0, %v1812_v39 }
 0x2fa   : > { %2484 = vst.msk [vmem:[%s2747_s15 + $0x438] sm:$0xff] %vm286_vm0, %v1812_v39  ;;  %v2194_v60 = vld [vmem:[%s2747_s15 + $0x100] sm:$0xff] (%p2706_p8)  ;;  %v2256_v39 = vld [vmem:[%s2747_s15 + $0x1f8] sm:$0xff] (%p2706_p8) }
 0x2fb   : > { %v2196_v20 = vld [vmem:[%s2747_s15 + $0x108] sm:$0xff]  ;;  %2195 = vst [vmem:[%s5825_s24 + $0x100] sm:$0xff] %v2194_v60  ;;  %v2322_v60 = vld [vmem:[%s2747_s15 + $0x300] sm:$0xff] }
 0x2fc   : > { %2197 = vst [vmem:[%s5825_s24 + $0x108] sm:$0xff] %v2196_v20  ;;  %v2262_v10 = vld [vmem:[%s2747_s15 + $0x210] sm:$0xff]  ;;  %v2324_v20 = vld [vmem:[%s2747_s15 + $0x308] sm:$0xff] }
 0x2fd   : > { %2255 = vst [vmem:[%s5825_s24 + $0x300] sm:$0xff] %v2254_v2  ;;  %v2264_v24 = vld [vmem:[%s2747_s15 + $0x218] sm:$0xff]  ;;  %v2382_v2 = vld [vmem:[%s2747_s15 + $0x3f0] sm:$0xff] }
 0x2fe   : > { %2257 = vst [vmem:[%s5825_s24 + $0x308] sm:$0xff] %v2256_v39  ;;  %v2330_v40 = vld [vmem:[%s2747_s15 + $0x320] sm:$0xff]  ;;  %v2384_v39 = vld [vmem:[%s2747_s15 + $0x3f8] sm:$0xff] }
 0x2ff   : > { %2263 = vst [vmem:[%s5825_s24 + $0x320] sm:$0xff] %v2262_v10  ;;  %v2332_v44 = vld [vmem:[%s2747_s15 + $0x328] sm:$0xff]  ;;  %v2390_v10 = vld [vmem:[%s2747_s15 + $0x410] sm:$0xff] }
 0x300   : > { %2265 = vst [vmem:[%s5825_s24 + $0x328] sm:$0xff] %v2264_v24  ;;  %v2392_v24 = vld [vmem:[%s2747_s15 + $0x418] sm:$0xff]  ;;  %v2398_v25 = vld [vmem:[%s2747_s15 + $0x430] sm:$0xff] }
 0x301   : > { %2323 = vst [vmem:[%s5825_s24 + $0x520] sm:$0xff] %v2322_v60  ;;  %v2400_v19 = vld [vmem:[%s2747_s15 + $0x438] sm:$0xff] }
 0x302   : > { %2325 = vst [vmem:[%s5825_s24 + $0x528] sm:$0xff] %v2324_v20 }
 0x303   : > { %2331 = vst [vmem:[%s5825_s24 + $0x540] sm:$0xff] %v2330_v40 }
 0x304   : > { %2333 = vst [vmem:[%s5825_s24 + $0x548] sm:$0xff] %v2332_v44 }
 0x305   : > { %2377 = vst [vmem:[%s5825_s24 + $0x708] sm:$0xff] %v2376_v51 }
 0x306   : > { %2379 = vst [vmem:[%s5825_s24 + $0x710] sm:$0xff] %v2378_v11 }
 0x307   : > { %2381 = vst [vmem:[%s5825_s24 + $0x718] sm:$0xff] %v2380_v21 }
 0x308   : > { %2383 = vst [vmem:[%s5825_s24 + $0x720] sm:$0xff] %v2382_v2 }
 0x309   : > { %2385 = vst [vmem:[%s5825_s24 + $0x728] sm:$0xff] %v2384_v39 }
 0x30a   : > { %2391 = vst [vmem:[%s5825_s24 + $0x740] sm:$0xff] %v2390_v10 }
 0x30b   : > { %2393 = vst [vmem:[%s5825_s24 + $0x748] sm:$0xff] %v2392_v24 }
 0x30c   : > { %2399 = vst [vmem:[%s5825_s24 + $0x760] sm:$0xff] %v2398_v25 }
 0x30d   : > { %2401 = vst [vmem:[%s5825_s24 + $0x768] sm:$0xff] %v2400_v19 }
 0x30e PF: > { %p11_p13 = scmp.ge.s32.totalorder %s2684_s11, 4   ;;  %s6873_s6 = smov %s2634_s7 }
 0x30f   : > { %s6874_s7 = smov %s2638_s8  ;;  %s6875_s8 = smov %s2694_s14 }
 0x310   : > { %s6876_s9 = smov %s2684_s11  ;;  %13 = sbr.rel (!%p11_p13) target bundleno = 3 (0x3), region = 108 }
 0x315   :  { %2417 = vsyncpa [#allocation3], 1 }
 0x316   :  { %2419 = vsyncpa [#allocation3 + $0x1], 1 }

</bundles_post_ra>
